<compile_context>
chip_gen: v6e
topology: v6e:2x2x1
jax: 0.10.0
libtpu: 0.0.40
codegen_flags: <defaults>
</compile_context>

<pallas_src>
import functools
import math

import numpy as np
import jax
import jax.numpy as jnp
from jax.experimental import pallas as pl
from jax.experimental.pallas import tpu as pltpu


def _smearing_kernel(coeff, dist_ref, expand_ref, offs_ref, out_ref):
    # dist_ref:   (tile_r, fold)     f32  -- `fold` original rows per folded row
    # expand_ref: (fold,  fold * G)  f32  -- constant one-hot "repeat each row G times"
    # offs_ref:   (1,     fold * G)  f32  -- gaussian centers tiled `fold` times
    # out_ref:    (tile_r, fold * G)
    d_exp = jnp.dot(
        dist_ref[...], expand_ref[...],
        precision=jax.lax.Precision.HIGHEST,       # exact one-hot gather on MXU
        preferred_element_type=jnp.float32,
    )
    diff = d_exp - offs_ref[...]                    # VPU
    out_ref[...] = jnp.exp(coeff * diff * diff).astype(out_ref.dtype)  # exp on EUP


def gaussian_smearing(dist, start=0.0, stop=5.0, num_gaussians=50,
                      tile_rows=None, out_dtype=jnp.float32):
    """Pallas TPU implementation of GaussianSmearing.forward.

    dist: any-shaped float array. Returns (dist.size, num_gaussians).
    """
    assert num_gaussians >= 2, "num_gaussians must be >= 2"
    G = int(num_gaussians)

    # Mirror the torch module exactly: float32 linspace buffer + python-float coeff.
    offset_np = np.linspace(start, stop, G, dtype=np.float32)
    delta = float(offset_np[1] - offset_np[0])
    coeff = -0.5 / delta ** 2

    d = jnp.asarray(dist, dtype=jnp.float32).reshape(-1)
    n = int(d.shape[0])
    if n == 0:
        return jnp.zeros((0, G), dtype=out_dtype)

    # Minimal fold factor so fold * G is a multiple of 128 lanes (64 for G=50).
    fold = 128 // math.gcd(G, 128)
    W = fold * G                                     # folded output width

    rows_f = -(-n // fold)                           # cdiv: folded rows needed

    # Tile sizing: target ~4 MB of output per grid step; single tile when small
    # (no forced multi-step split on 1-TC chips); equal-sized steps otherwise.
    if tile_rows is None:
        cap = max(8, min(512, ((4 << 20) // (W * 4)) // 8 * 8))
        if rows_f <= cap:
            tile_r = rows_f
            g_steps = 1
        else:
            g_steps = -(-rows_f // cap)
            tile_r = ((-(-rows_f // g_steps) + 7) // 8) * 8
    else:
        tile_r = max(8, ((int(tile_rows) + 7) // 8) * 8)
        g_steps = max(1, -(-rows_f // tile_r))

    rows_f_pad = g_steps * tile_r
    n_pad = rows_f_pad * fold
    if n_pad != n:
        d = jnp.pad(d, (0, n_pad - n))               # tail rows are junk, sliced off below
    d_fold = d.reshape(rows_f_pad, fold)             # lane-dense input layout

    # Trace-time constants (DMA'd once thanks to the constant index_map).
    expand = jnp.asarray(
        np.kron(np.eye(fold, dtype=np.float32), np.ones((1, G), dtype=np.float32)))
    offs_pat = jnp.asarray(np.tile(offset_np, fold).reshape(1, W))

    out_fold = pl.pallas_call(
        functools.partial(_smearing_kernel, coeff),
        out_shape=jax.ShapeDtypeStruct((rows_f_pad, W), out_dtype),
        grid_spec=pltpu.PrefetchScalarGridSpec(
            num_scalar_prefetch=0,
            grid=(g_steps,),
            in_specs=[
                pl.BlockSpec((tile_r, fold), lambda i: (i, 0)),   # dist (lane-dense)
                pl.BlockSpec((fold, W), lambda i: (0, 0)),        # one-hot expand (constant)
                pl.BlockSpec((1, W), lambda i: (0, 0)),           # offset pattern (constant)
            ],
            # Full folded width on the last dim -> unmasked full-vreg stores and
            # one contiguous HBM writeback per step.
            out_specs=pl.BlockSpec((tile_r, W), lambda i: (i, 0)),
        ),
        compiler_params=pltpu.CompilerParams(
            dimension_semantics=("parallel",),
            vmem_limit_bytes=32 * 1024 * 1024,
        ),
    )(d_fold, expand, offs_pat)

    # Free row-major reshape back to (N_pad, G); slice only when padding happened.
    out = out_fold.reshape(rows_f_pad * fold, G)
    if n_pad != n:
        # TODO(synk): callers that can consume the padded (n_pad, G) array inside the
        # same jit avoid this un-fused tail slice entirely.
        out = out[:n]
    return out


def _np_reference(dist_np, start=0.0, stop=5.0, num_gaussians=50):
    offset_np = np.linspace(start, stop, num_gaussians, dtype=np.float32)
    coeff = -0.5 / float(offset_np[1] - offset_np[0]) ** 2
    d = np.asarray(dist_np, dtype=np.float32).reshape(-1, 1)
    return np.exp(coeff * (d - offset_np[None, :]) ** 2)


if __name__ == "__main__":
    key = jax.random.PRNGKey(0)

    # Small case: 8x8 pairwise distances -> 64 rows, single grid step, no padding.
    dist = jax.random.uniform(key, (8, 8), minval=0.0, maxval=5.0, dtype=jnp.float32)
    result = jax.block_until_ready(gaussian_smearing(dist))
    ref = _np_reference(np.asarray(dist))
    assert result.shape == (64, 50)
    assert np.allclose(np.asarray(result), ref, rtol=1e-5, atol=1e-5)

    # Ragged case: exercises the fold padding + tail slice path.
    key2 = jax.random.PRNGKey(0)
    dist2 = jax.random.uniform(key2, (1000,), minval=0.0, maxval=5.0, dtype=jnp.float32)
    result2 = jax.block_until_ready(gaussian_smearing(dist2))
    ref2 = _np_reference(np.asarray(dist2))
    assert result2.shape == (1000, 50)
    assert np.allclose(np.asarray(result2), ref2, rtol=1e-5, atol=1e-5)

    print("KERNEL_OK")
</pallas_src>

<mosaic_0001>
module attributes {stable_mosaic.version = 11 : i64} {
  func.func @_smearing_kernel(%arg0: i32, %arg1: memref<1x64xf32, #tpu.memory_space<vmem>>, %arg2: memref<64x3200xf32, #tpu.memory_space<vmem>>, %arg3: memref<1x3200xf32, #tpu.memory_space<vmem>>, %arg4: memref<1x3200xf32, #tpu.memory_space<vmem>>) attributes {dimension_semantics = [#tpu.dimension_semantics<parallel>], iteration_bounds = array<i64: 1>, scalar_prefetch = 0 : i64, scratch_operands = 0 : i64, tpu.core_type = #tpu.core_type<tc>, window_params = [{transform_indices = @transform_0, window_bounds = array<i64: 1, 64>}, {pipeline_mode = #tpu.pipeline_mode<synchronous>, transform_indices = @transform_1, window_bounds = array<i64: 64, 3200>}, {pipeline_mode = #tpu.pipeline_mode<synchronous>, transform_indices = @transform_2, window_bounds = array<i64: 1, 3200>}, {transform_indices = @transform_3, window_bounds = array<i64: 1, 3200>}]} {
    %c0 = arith.constant 0 : index
    %c0_0 = arith.constant 0 : index
    %0 = vector.load %arg1[%c0, %c0_0] : memref<1x64xf32, #tpu.memory_space<vmem>>, vector<1x64xf32>
    %c0_1 = arith.constant 0 : index
    %c0_2 = arith.constant 0 : index
    %1 = vector.load %arg2[%c0_1, %c0_2] : memref<64x3200xf32, #tpu.memory_space<vmem>>, vector<64x3200xf32>
    %cst = arith.constant dense<0.000000e+00> : vector<1x3200xf32>
    %2 = tpu.matmul %0, %1, %cst {dimension_numbers = #tpu.dot_dimension_numbers<[1], [0], [0], [1], [0, 0, 1, 1], [], []>, precision = #tpu.contract_precision<fp32>} : vector<1x64xf32>, vector<64x3200xf32>, vector<1x3200xf32> -> vector<1x3200xf32>
    %c0_3 = arith.constant 0 : index
    %c0_4 = arith.constant 0 : index
    %3 = vector.load %arg3[%c0_3, %c0_4] : memref<1x3200xf32, #tpu.memory_space<vmem>>, vector<1x3200xf32>
    %4 = arith.subf %2, %3 : vector<1x3200xf32>
    %cst_5 = arith.constant -48.0199966 : f32
    %5 = vector.broadcast %cst_5 : f32 to vector<1x3200xf32>
    %6 = arith.mulf %5, %4 : vector<1x3200xf32>
    %7 = arith.mulf %6, %4 : vector<1x3200xf32>
    %8 = math.exp %7 : vector<1x3200xf32>
    %c0_6 = arith.constant 0 : index
    %c0_7 = arith.constant 0 : index
    %9 = vector.load %arg4[%c0_6, %c0_7] : memref<1x3200xf32, #tpu.memory_space<vmem>>, vector<1x3200xf32>
    tpu.vector_store %arg4[%c0_6, %c0_7], %8 {strides = array<i32>} : memref<1x3200xf32, #tpu.memory_space<vmem>>, vector<1x3200xf32>,
    return
  }
  func.func @transform_0(%arg0: i32) -> (i32, i32) {
    %c0_i32 = arith.constant 0 : i32
    %c0_i32_0 = arith.constant 0 : i32
    return %arg0, %c0_i32 : i32, i32
  }
  func.func @transform_1(%arg0: i32) -> (i32, i32) {
    %c0_i32 = arith.constant 0 : i32
    %c0_i32_0 = arith.constant 0 : i32
    %c0_i32_1 = arith.constant 0 : i32
    return %c0_i32, %c0_i32_0 : i32, i32
  }
  func.func @transform_2(%arg0: i32) -> (i32, i32) {
    %c0_i32 = arith.constant 0 : i32
    %c0_i32_0 = arith.constant 0 : i32
    %c0_i32_1 = arith.constant 0 : i32
    return %c0_i32, %c0_i32_0 : i32, i32
  }
  func.func @transform_3(%arg0: i32) -> (i32, i32) {
    %c0_i32 = arith.constant 0 : i32
    %c0_i32_0 = arith.constant 0 : i32
    return %arg0, %c0_i32 : i32, i32
  }
}

</mosaic_0001>

<bundles_post_ra>
// kernel: tpu_custom_call.1
= control target key start
LH: loop header
LB: loop body
LE: loop exit
PB: predicated region body
PF: predicated region fallthrough
CT: control target
= control target key end

     0   :  { %8 = vsyncpa [#allocation3], 0  ;;  %s12956_s0 = inlined_call_operand.hbm [shape: f32[1,64], index: 0, kind: input, shape index: {}]   ;;  %s12957_s1 = inlined_call_operand.hbm [shape: f32[64,3200], index: 1, kind: input, shape index: {}]   ;;  %s12958_s2 = inlined_call_operand.hbm [shape: f32[1,3200], index: 2, kind: input, shape index: {}]   ;;  %s12959_s3 = inlined_call_operand.hbm [shape: f32[1,3200], index: 3, kind: output, shape index: {}]  }
   0x1   :  { %9 = vsyncpa [#allocation6], 0 }
   0x2   :  { %10 = vsyncpa [#allocation4], 0  ;;  %s9344_s12 = smov [#allocation5]  }
   0x3   :  { %s26_s13 = sshll.u32 %s9344_s12, 4  ;;  %s27_s13 = int_to_ptr.vmem [resolvable:$true] %s26_s13 }
   0x4   :  { %s9266_s14 = scalar_lea.vmem %s27_s13, 25600  ;;  %p9271_p1 = scmp.lt.s32.totalorder %s27_s13, %s27_s13 }
   0x5   :  { %p9267_p0 = scmp.ne.s32.totalorder %s27_s13, %s9266_s14  ;;  %p9272_p2 = scmp.lt.s32.totalorder %s9266_s14, %s9266_s14 }
   0x7   :  { %p9273_p3 = por %p9272_p2, %p9271_p1 }
   0x9   :  { %p9274_p4 = pnand %p9273_p3, %p9267_p0 }
   0xb   :  { %9277 = shalt.err (!%p9274_p4)
}
   0xc   :  { %s9345_s15 = smov 3200   ;;  %s9346_s16 = smov 200  }
   0xd   :  { %32 = dma.hbm_to_vmem [thread:$0]  %s12957_s1, 25600, %s27_s13, [#allocation6], %s9345_s15, %s9345_s15, %s9346_s16  }
   0xe   :  { %s9347_s19 = smov [#allocation2]   ;;  %s9348_s21 = smov [#allocation7]  }
   0xf   :  { %s17_s20 = sshll.u32 %s9347_s19, 4  ;;  %s39_s22 = sshll.u32 %s9348_s21, 4  ;;  %s18_s20 = int_to_ptr.vmem [resolvable:$true] %s17_s20  ;;  %s40_s22 = int_to_ptr.vmem [resolvable:$true] %s39_s22 }
  0x10   :  { %s9286_s23 = scalar_lea.vmem %s18_s20, 16  ;;  %s9290_s24 = scalar_lea.vmem %s18_s20, 32 }
  0x11   :  { %p9287_p5 = scmp.ne.s32.totalorder %s18_s20, %s9286_s23  ;;  %p9291_p6 = scmp.lt.s32.totalorder %s18_s20, %s18_s20 }
  0x12   :  { %p9292_p7 = scmp.lt.s32.totalorder %s9290_s24, %s9286_s23 }
  0x14   :  { %p9293_p8 = por %p9292_p7, %p9291_p6 }
  0x16   :  { %p9294_p9 = pnand %p9293_p8, %p9287_p5 }
  0x18   :  { %9297 = shalt.err (!%p9294_p9)
}
  0x19   :  { %20 = dma.hbm_to_vmem [thread:$0]  %s12956_s0, 16, %s18_s20, [#allocation3]  }
  0x1a   :  { %s9306_s27 = scalar_lea.vmem %s40_s22, 400  ;;  %s9310_s1 = scalar_lea.vmem %s40_s22, 416 }
  0x1b   :  { %p9307_p10 = scmp.ne.s32.totalorder %s40_s22, %s9306_s27  ;;  %p9311_p11 = scmp.lt.s32.totalorder %s40_s22, %s40_s22 }
  0x1c   :  { %p9312_p12 = scmp.lt.s32.totalorder %s9310_s1, %s9306_s27 }
  0x1e   :  { %p9313_p13 = por %p9312_p12, %p9311_p11 }
  0x20   :  { %p9314_p0 = pnand %p9313_p13, %p9307_p10 }
  0x22   :  { %9317 = shalt.err (!%p9314_p0)
}
  0x23   :  { %42 = dma.hbm_to_vmem [thread:$0]  %s12958_s2, 400, %s40_s22, [#allocation6]  }
  0x24   :  { %9338 = dma.done.wait [#allocation3], 16  }
  0x25   :  { %9339 = vsyncadd [#allocation3], 4294967280 }
  0x26   :  { %9340 = dma.done.wait [#allocation6], 26000  }
  0x27   :  { %9341 = vsyncadd [#allocation6], 4294941296  ;;  %v12967_v0 = vmov 0.0   ;;  %v229_v1 = vld [vmem:[#allocation5 + $0x580] sm:$0xff]  ;;  %v228_v2 = vld [vmem:[#allocation5 + $0x578] sm:$0xff]  ;;  %vm253_vm0 = vcmask 523264  }
  0x28   :  { %337 = vmatprep.mubr.f32.mxu0 %v12967_v0  ;;  %493 = vmatprep.mubr.f32.mxu1 %v12967_v0  ;;  %v204_v3 = vld [vmem:[#allocation5 + $0x4b8] sm:$0xff]  ;;  %v9384_v4 = vand.u32 4294901760, %v229_v1  ;;  %v9386_v5 = vand.u32 4294901760, %v228_v2  ;;  %v203_v7 = vld [vmem:[#allocation5 + $0x4b0] sm:$0xff]  ;;  %v178_v9 = vld [vmem:[#allocation5 + $0x3e8] sm:$0xff]  ;;  %vm9351_vm1 = vmmov 0  }
  0x29   :  { %v9388_v6 = vand.u32 4294901760, %v204_v3  ;;  %v179_v8 = vld [vmem:[#allocation5 + $0x3f0] sm:$0xff]  ;;  %v9390_v10 = vand.u32 4294901760, %v203_v7  ;;  %v9394_v12 = vand.u32 4294901760, %v178_v9  ;;  %v154_v13 = vld [vmem:[#allocation5 + $0x328] sm:$0xff]  ;;  %v153_v14 = vld [vmem:[#allocation5 + $0x320] sm:$0xff] }
  0x2a   :  { %v9392_v11 = vand.u32 4294901760, %v179_v8  ;;  %v129_v15 = vld [vmem:[#allocation5 + $0x260] sm:$0xff]  ;;  %274 = vmatprep.subr.mxu0 %v9384_v4  ;;  %v9397_v16 = vand.u32 4294901760, %v154_v13  ;;  %v9399_v17 = vand.u32 4294901760, %v153_v14  ;;  %v9404_v19 = vsub.f32 %v229_v1, %v9384_v4  ;;  %v128_v20 = vld [vmem:[#allocation5 + $0x258] sm:$0xff]  ;;  %v9408_v22 = vld [vmem:[#allocation5 + $0x190] sm:$0xff] }
  0x2b   :  { %v9401_v18 = vand.u32 4294901760, %v129_v15  ;;  %v9406_v21 = vld [vmem:[#allocation5 + $0x198] sm:$0xff]  ;;  %276 = vmatpush1.msra.mxu0 %v9386_v5  ;;  %v9411_v23 = vand.u32 4294901760, %v128_v20  ;;  %v9414_v24 = vsub.f32 %v228_v2, %v9386_v5  ;;  %v9420_v26 = vsub.f32 %v204_v3, %v9388_v6  ;;  %v9422_v27 = vld [vmem:[#allocation5 + $0xd0] sm:$0xff]  ;;  %v9424_v28 = vld [vmem:[#allocation5 + $0xc8] sm:$0xff]  ;;  %s9352_s0 = smov [#allocation8]  }
  0x2c   :  { %v9417_v25 = vand.u32 4294901760, %v9406_v21  ;;  %v9426_v29 = vld [vmem:[#allocation5 + $0x8] sm:$0xff]  ;;  %278 = vmatprep.subr.mxu0 %v9388_v6  ;;  %v367_v30 = vand.u32 4294901760, %v9404_v19  ;;  %v9431_v31 = vand.u32 4294901760, %v9408_v22  ;;  %v9434_v32 = vsub.f32 %v203_v7, %v9390_v10  ;;  %v9448_v38 = vld [vmem:[#allocation5] sm:$0xff]  ;;  %s9020_s2 = sshll.u32 %s9352_s0, 4  ;;  %s9021_s2 = int_to_ptr.vmem [resolvable:$true] %s9020_s2 }
  0x2d   :  { %v9437_v33 = vand.u32 4294901760, %v9422_v27  ;;  %280 = vmatpush1.msra.mxu0 %v9390_v10  ;;  %v373_v34 = vand.u32 4294901760, %v9414_v24  ;;  %v379_v35 = vand.u32 4294901760, %v9420_v26  ;;  %v9443_v36 = vsub.f32 %v179_v8, %v9392_v11  ;;  %v52_v51 = vld [vmem:[#allocation2] sm:$0x1]  ;;  %s9318_s30 = scalar_lea.vmem %s9021_s2, 400  ;;  %p9323_p2 = scmp.lt.s32.totalorder %s9021_s2, %s9021_s2 }
  0x2e   :  { %v9446_v37 = vand.u32 4294901760, %v9424_v28  ;;  %282 = vmatprep.subr.mxu0 %v9392_v11  ;;  %v368_v39 = vsub.f32 %v9404_v19, %v367_v30  ;;  %v385_v40 = vand.u32 4294901760, %v9434_v32  ;;  %v9456_v41 = vsub.f32 %v178_v9, %v9394_v12  ;;  %p9319_p1 = scmp.ne.s32.totalorder %s9021_s2, %s9318_s30  ;;  %s9322_s4 = scalar_lea.vmem %s9021_s2, 416 }
  0x2f   :  { %v9459_v42 = vand.u32 4294901760, %v9426_v29  ;;  %284 = vmatpush1.msra.mxu0 %v9394_v12  ;;  %v374_v43 = vsub.f32 %v9414_v24, %v373_v34  ;;  %v380_v44 = vsub.f32 %v9420_v26, %v379_v35  ;;  %v391_v45 = vand.u32 4294901760, %v9443_v36  ;;  %p9324_p3 = scmp.lt.s32.totalorder %s9322_s4, %s9318_s30 }
  0x30   :  { %v9470_v46 = vsub.f32 %v154_v13, %v9397_v16  ;;  %286 = vmatprep.subr.mxu0 %v9397_v16  ;;  %v369_v47 = vand.u32 4294901760, %v368_v39  ;;  %v386_v48 = vsub.f32 %v9434_v32, %v385_v40  ;;  %v397_v49 = vand.u32 4294901760, %v9456_v41 }
  0x31   :  { %v9478_v50 = vand.u32 4294901760, %v9448_v38  ;;  %288 = vmatpush1.msra.mxu0 %v9399_v17  ;;  %v375_v52 = vand.u32 4294901760, %v374_v43  ;;  %v381_v53 = vand.u32 4294901760, %v380_v44  ;;  %v392_v54 = vsub.f32 %v9443_v36, %v391_v45  ;;  %p9325_p4 = por %p9324_p3, %p9323_p2 }
  0x32   :  { %v403_v55 = vand.u32 4294901760, %v9470_v46  ;;  %290 = vmatprep.subr.mxu0 %v9401_v18  ;;  %370 = vmatprep.subr.mxu1 %v369_v47  ;;  %v387_v56 = vand.u32 4294901760, %v386_v48  ;;  %v398_v57 = vsub.f32 %v9456_v41, %v397_v49  ;;  %v9490_v58 = vsub.f32 %v153_v14, %v9399_v17 }
  0x33   :  { %v9493_v59 = vsub.f32 %v129_v15, %v9401_v18  ;;  %292 = vmatpush1.msra.mxu0 %v9411_v23  ;;  %376 = vmatpush1.msra.mxu1 %v375_v52  ;;  %v393_v60 = vand.u32 4294901760, %v392_v54  ;;  %v255_v62 = vsel %vm253_vm0, %v52_v51, 0  ;;  %v9501_v63 = vsub.f32 %v128_v20, %v9411_v23  ;;  %p9326_p5 = pnand %p9325_p4, %p9319_p1 }
  0x34   :  { %v404_v61 = vsub.f32 %v9470_v46, %v403_v55  ;;  %294 = vmatprep.subr.mxu0 %v9417_v25  ;;  %382 = vmatprep.subr.mxu1 %v381_v53  ;;  %v399_v1 = vand.u32 4294901760, %v398_v57  ;;  %v409_v2 = vand.u32 4294901760, %v9490_v58  ;;  %v9506_v7 = vand.u32 4294901760, %v255_v62 }
  0x35   :  { %v415_v3 = vand.u32 4294901760, %v9493_v59  ;;  %296 = vmatpush1.msra.mxu0 %v9431_v31  ;;  %388 = vmatpush1.msra.mxu1 %v387_v56  ;;  %v421_v9 = vand.u32 4294901760, %v9501_v63  ;;  %v9512_v13 = vsub.f32 %v9406_v21, %v9417_v25  ;;  %v9516_v14 = vsub.f32 %v9408_v22, %v9431_v31 }
  0x36   :  { %13074 = vst [vmem:[#allocation12_spill] sm:$0xff] %v9506_v7  ;;  %v405_v8 = vand.u32 4294901760, %v404_v61  ;;  %298 = vmatprep.subr.mxu0 %v9437_v33  ;;  %394 = vmatprep.subr.mxu1 %v393_v60  ;;  %v410_v15 = vsub.f32 %v9490_v58, %v409_v2  ;;  %v9526_v39 = vsub.f32 %v255_v62, %v9506_v7 }
  0x37   :  { %v416_v20 = vsub.f32 %v9493_v59, %v415_v3  ;;  %300 = vmatpush1.msra.mxu0 %v9446_v37  ;;  %400 = vmatpush1.msra.mxu1 %v399_v1  ;;  %v422_v21 = vsub.f32 %v9501_v63, %v421_v9  ;;  %v427_v22 = vand.u32 4294901760, %v9512_v13  ;;  %v433_v43 = vand.u32 4294901760, %v9516_v14 }
  0x38   :  { %13075 = vst [vmem:[#allocation13_spill] sm:$0xff] %v9526_v39  ;;  %v9536_v44 = vsub.f32 %v9422_v27, %v9437_v33  ;;  %302 = vmatprep.subr.mxu0 %v9459_v42  ;;  %406 = vmatprep.subr.mxu1 %v405_v8  ;;  %v411_v47 = vand.u32 4294901760, %v410_v15  ;;  %v9540_v51 = vand.u32 4294901760, %v9526_v39  ;;  %v9544_v52 = vsub.f32 %v9424_v28, %v9446_v37 }
  0x39   :  { %v417_v48 = vand.u32 4294901760, %v416_v20  ;;  %304 = vmatpush1.msra.mxu0 %v9478_v50  ;;  %v423_v53 = vand.u32 4294901760, %v422_v21  ;;  %v428_v27 = vsub.f32 %v9512_v13, %v427_v22  ;;  %v434_v54 = vsub.f32 %v9516_v14, %v433_v43 }
  0x3a   :  { %13076 = vst [vmem:[#allocation14_spill] sm:$0xff] %v9540_v51  ;;  %v439_v56 = vand.u32 4294901760, %v9536_v44  ;;  %412 = vmatpush1.msra.mxu1 %v411_v47  ;;  %519 = vmatprep.subr.mxu0 %v9404_v19  ;;  %v341_v28 = vsub.f32 %v9526_v39, %v9540_v51  ;;  %v445_v57 = vand.u32 4294901760, %v9544_v52  ;;  %v9560_v60 = vsub.f32 %v9426_v29, %v9459_v42  ;;  %v231_v19 = vld [vmem:[#allocation5 + $0x590] sm:$0xff] }
  0x3b   :  { %v9564_v61 = vsub.f32 %v9448_v38, %v9478_v50  ;;  %418 = vmatprep.subr.mxu1 %v417_v48  ;;  %v429_v62 = vand.u32 4294901760, %v428_v27  ;;  %v435_v1 = vand.u32 4294901760, %v434_v54 }
  0x3c   :  { %v440_v8 = vsub.f32 %v9536_v44, %v439_v56  ;;  %v9569_v15 = vand.u32 4294901760, %v341_v28  ;;  %424 = vmatpush1.msra.mxu1 %v423_v53  ;;  %v446_v20 = vsub.f32 %v9544_v52, %v445_v57  ;;  %v451_v29 = vand.u32 4294901760, %v9560_v60 }
  0x3d   :  { %v457_v21 = vand.u32 4294901760, %v9564_v61  ;;  %430 = vmatprep.subr.mxu1 %v429_v62  ;;  %v56_v62 = vld [vmem:[#allocation5 + $0x18] sm:$0xff] }
  0x3e   :  { %v441_v38 = vand.u32 4294901760, %v440_v8  ;;  %343 = vmatmul.mubr.f32.vlgmr.msra.gmra.mxu0 %v9569_v15  ;;  %436 = vmatpush1.msra.mxu1 %v435_v1  ;;  %v447_v47 = vand.u32 4294901760, %v446_v20  ;;  %v452_v48 = vsub.f32 %v9560_v60, %v451_v29 }
  0x3f   :  { %v458_v53 = vsub.f32 %v9564_v61, %v457_v21  ;;  %522 = vmatpush1.msra.mxu0 %v9414_v24  ;;  %597 = vmatprep.mubr.f32.mxu0 %v12967_v0  ;;  %v230_v24 = vld [vmem:[#allocation5 + $0x588] sm:$0xff] }
  0x40   :  { %442 = vmatprep.subr.mxu1 %v441_v38  ;;  %525 = vmatprep.subr.mxu0 %v9420_v26  ;;  %v453_v27 = vand.u32 4294901760, %v452_v48  ;;  %v206_v26 = vld [vmem:[#allocation5 + $0x4c8] sm:$0xff] }
  0x41   :  { %448 = vmatpush1.msra.mxu1 %v447_v47  ;;  %v459_v54 = vand.u32 4294901760, %v458_v53  ;;  %528 = vmatpush1.msra.mxu0 %v9434_v32  ;;  %v205_v32 = vld [vmem:[#allocation5 + $0x4c0] sm:$0xff]  ;;  %v9751_v53 = vand.u32 4294901760, %v56_v62 }
  0x42   :  { %531 = vmatprep.subr.mxu0 %v9443_v36  ;;  %454 = vmatprep.subr.mxu1 %v453_v27  ;;  %v9642_v36 = vand.u32 4294901760, %v206_v26 }
  0x43   :  { %534 = vmatpush1.msra.mxu0 %v9456_v41  ;;  %460 = vmatpush1.msra.mxu1 %v459_v54  ;;  %v9647_v41 = vand.u32 4294901760, %v205_v32 }
  0x44   :  { %537 = vmatprep.subr.mxu0 %v9470_v46  ;;  %495 = vmatmul.mubr.f32.vlgmr.msra.gmra.mxu1 %v9506_v7 }
  0x45   :  { %540 = vmatpush1.msra.mxu0 %v9490_v58  ;;  %623 = vmatprep.subr.mxu1 %v9384_v4  ;;  %v131_v58 = vld [vmem:[#allocation5 + $0x270] sm:$0xff] }
  0x46   :  { %543 = vmatprep.subr.mxu0 %v9493_v59  ;;  %625 = vmatpush1.msra.mxu1 %v9386_v5  ;;  %v130_v59 = vld [vmem:[#allocation5 + $0x268] sm:$0xff] }
  0x47   :  { %546 = vmatpush1.msra.mxu0 %v9501_v63  ;;  %627 = vmatprep.subr.mxu1 %v9388_v6  ;;  %v9671_v63 = vsub.f32 %v206_v26, %v9642_v36 }
  0x48   :  { %549 = vmatprep.subr.mxu0 %v9512_v13  ;;  %629 = vmatpush1.msra.mxu1 %v9390_v10  ;;  %v106_v13 = vld [vmem:[#allocation5 + $0x1a8] sm:$0xff] }
  0x49   :  { %552 = vmatpush1.msra.mxu0 %v9516_v14  ;;  %631 = vmatprep.subr.mxu1 %v9392_v11 }
  0x4a   :  { %555 = vmatprep.subr.mxu0 %v9536_v44  ;;  %633 = vmatpush1.msra.mxu1 %v9394_v12 }
  0x4b   :  { %558 = vmatpush1.msra.mxu0 %v9544_v52  ;;  %635 = vmatprep.subr.mxu1 %v9397_v16  ;;  %v81_v52 = vld [vmem:[#allocation5 + $0xe0] sm:$0xff] }
  0x4c   :  { %561 = vmatprep.subr.mxu0 %v9560_v60  ;;  %637 = vmatpush1.msra.mxu1 %v9399_v17  ;;  %v80_v60 = vld [vmem:[#allocation5 + $0xd8] sm:$0xff]  ;;  %v9732_v20 = vand.u32 4294901760, %v81_v52 }
  0x4d   :  { %564 = vmatpush1.msra.mxu0 %v9564_v61  ;;  %639 = vmatprep.subr.mxu1 %v9401_v18  ;;  %v9743_v47 = vand.u32 4294901760, %v80_v60 }
  0x4e   :  { %600 = vmatmul.mubr.f32.vlgmr.msra.gmra.mxu0 %v9526_v39  ;;  %715 = vmatprep.subr.mxu0 %v367_v30  ;;  %v9632_v30 = vand.u32 4294901760, %v231_v19 }
  0x4f   :  { %641 = vmatpush1.msra.mxu1 %v9411_v23  ;;  %719 = vmatpush1.msra.mxu0 %v373_v34  ;;  %v9637_v34 = vand.u32 4294901760, %v230_v24 }
  0x50   :  { %643 = vmatprep.subr.mxu1 %v9417_v25  ;;  %723 = vmatprep.subr.mxu0 %v379_v35  ;;  %v181_v35 = vld [vmem:[#allocation5 + $0x400] sm:$0xff] }
  0x51   :  { %645 = vmatpush1.msra.mxu1 %v9431_v31  ;;  %727 = vmatpush1.msra.mxu0 %v385_v40  ;;  %v180_v40 = vld [vmem:[#allocation5 + $0x3f8] sm:$0xff]  ;;  %v9652_v46 = vand.u32 4294901760, %v181_v35 }
  0x52   :  { %647 = vmatprep.subr.mxu1 %v9437_v33  ;;  %731 = vmatprep.subr.mxu0 %v391_v45  ;;  %v156_v45 = vld [vmem:[#allocation5 + $0x338] sm:$0xff] }
  0x53   :  { %649 = vmatpush1.msra.mxu1 %v9446_v37  ;;  %735 = vmatpush1.msra.mxu0 %v397_v49  ;;  %v155_v49 = vld [vmem:[#allocation5 + $0x330] sm:$0xff]  ;;  %v9688_v14 = vsub.f32 %v181_v35, %v9652_v46  ;;  %v9771_v35 = vsub.f32 %v81_v52, %v9732_v20 }
  0x54   :  { %651 = vmatprep.subr.mxu1 %v9459_v42  ;;  %739 = vmatprep.subr.mxu0 %v403_v55  ;;  %v9663_v55 = vand.u32 4294901760, %v180_v40 }
  0x55   :  { %653 = vmatpush1.msra.mxu1 %v9478_v50  ;;  %686 = vmatprep.mubr.f32.mxu1 %v12967_v0 }
  0x56   :  { %743 = vmatpush1.msra.mxu0 %v409_v2  ;;  %690 = vmatmul.mubr.f32.vlgmr.msra.gmra.mxu1 %v9540_v51  ;;  %v9679_v2 = vand.u32 4294901760, %v155_v49 }
  0x57   :  { %747 = vmatprep.subr.mxu0 %v415_v3  ;;  %833 = vmatprep.subr.mxu1 %v9384_v4  ;;  %v9655_v4 = vsub.f32 %v231_v19, %v9632_v30  ;;  %v105_v3 = vld [vmem:[#allocation5 + $0x1a0] sm:$0xff] }
  0x58   :  { %751 = vmatpush1.msra.mxu0 %v421_v9  ;;  %835 = vmatpush1.msra.mxu1 %v9386_v5  ;;  %v9661_v5 = vsub.f32 %v230_v24, %v9637_v34  ;;  %v9702_v44 = vand.u32 4294901760, %v105_v3  ;;  %v9710_v28 = vsub.f32 %v155_v49, %v9679_v2 }
  0x59   :  { %755 = vmatprep.subr.mxu0 %v427_v22  ;;  %837 = vmatprep.subr.mxu1 %v9388_v6  ;;  %v9668_v6 = vand.u32 4294901760, %v156_v45  ;;  %v1014_v9 = vand.u32 4294901760, %v9655_v4  ;;  %v9696_v22 = vand.u32 4294901760, %v130_v59 }
  0x5a   :  { %759 = vmatpush1.msra.mxu0 %v433_v43  ;;  %839 = vmatpush1.msra.mxu1 %v9390_v10  ;;  %v9677_v10 = vsub.f32 %v205_v32, %v9647_v41  ;;  %v1026_v43 = vand.u32 4294901760, %v9671_v63  ;;  %v9741_v38 = vsub.f32 %v105_v3, %v9702_v44  ;;  %v1056_v27 = vand.u32 4294901760, %v9710_v28 }
  0x5b   :  { %763 = vmatprep.subr.mxu0 %v439_v56  ;;  %841 = vmatprep.subr.mxu1 %v9392_v11  ;;  %v9684_v11 = vand.u32 4294901760, %v131_v58  ;;  %v9705_v56 = vsub.f32 %v156_v45, %v9668_v6  ;;  %v1015_v61 = vsub.f32 %v9655_v4, %v1014_v9  ;;  %v9727_v8 = vsub.f32 %v130_v59, %v9696_v22 }
  0x5c   :  { %767 = vmatpush1.msra.mxu0 %v445_v57  ;;  %843 = vmatpush1.msra.mxu1 %v9394_v12  ;;  %v9694_v12 = vsub.f32 %v180_v40, %v9663_v55  ;;  %v9712_v57 = vand.u32 4294901760, %v106_v13  ;;  %v9776_v45 = vsub.f32 %v80_v60, %v9743_v47  ;;  %v9789_v3 = vsub.f32 %v56_v62, %v9751_v53 }
  0x5d   :  { %771 = vmatprep.subr.mxu0 %v451_v29  ;;  %845 = vmatprep.subr.mxu1 %v9397_v16  ;;  %v1020_v16 = vand.u32 4294901760, %v9661_v5  ;;  %v9722_v1 = vsub.f32 %v131_v58, %v9684_v11  ;;  %v1050_v48 = vand.u32 4294901760, %v9705_v56  ;;  %v1016_v19 = vand.u32 4294901760, %v1015_v61 }
  0x5e   :  { %775 = vmatpush1.msra.mxu0 %v457_v21  ;;  %808 = vmatprep.mubr.f32.mxu0 %v12967_v0  ;;  %v1044_v29 = vand.u32 4294901760, %v9694_v12  ;;  %v55_v21 = vld [vmem:[#allocation5 + $0x10] sm:$0xff]  ;;  %v9755_v54 = vsub.f32 %v106_v13, %v9712_v57  ;;  %v1068_v49 = vand.u32 4294901760, %v9727_v8  ;;  %v1080_v61 = vand.u32 4294901760, %v9741_v38 }
  0x5f   :  { %847 = vmatpush1.msra.mxu1 %v9399_v17  ;;  %810 = vmatmul.mubr.f32.vlgmr.msra.gmra.mxu0 %v9506_v7  ;;  %v1032_v17 = vand.u32 4294901760, %v9677_v10  ;;  %v9762_v24 = vand.u32 4294901760, %v55_v21  ;;  %v1062_v26 = vand.u32 4294901760, %v9722_v1  ;;  %v12960_v62 = vand.u32 4294901760, %v9771_v35 }
  0x60   :  { %849 = vmatprep.subr.mxu1 %v9401_v18  ;;  %921 = vmatprep.subr.mxu0 %v9632_v30  ;;  %v1038_v18 = vand.u32 4294901760, %v9688_v14  ;;  %v1074_v59 = vand.u32 4294901760, %v9755_v54 }
  0x61   :  { %851 = vmatpush1.msra.mxu1 %v9411_v23  ;;  %923 = vmatpush1.msra.mxu0 %v9637_v34  ;;  %v1021_v23 = vsub.f32 %v9661_v5, %v1020_v16  ;;  %v9793_v52 = vsub.f32 %v55_v21, %v9762_v24  ;;  %v1063_v60 = vsub.f32 %v9722_v1, %v1062_v26 }
  0x62   :  { %853 = vmatprep.subr.mxu1 %v9417_v25  ;;  %925 = vmatprep.subr.mxu0 %v9642_v36  ;;  %v1027_v25 = vsub.f32 %v9671_v63, %v1026_v43  ;;  %v1069_v21 = vsub.f32 %v9727_v8, %v1068_v49 }
  0x63   :  { %855 = vmatpush1.msra.mxu1 %v9431_v31  ;;  %927 = vmatpush1.msra.mxu0 %v9647_v41  ;;  %v1033_v31 = vsub.f32 %v9677_v10, %v1032_v17  ;;  %v1022_v32 = vand.u32 4294901760, %v1021_v23 }
  0x64   :  { %857 = vmatprep.subr.mxu1 %v9437_v33  ;;  %929 = vmatprep.subr.mxu0 %v9652_v46  ;;  %v1039_v33 = vsub.f32 %v9688_v14, %v1038_v18  ;;  %v1028_v40 = vand.u32 4294901760, %v1027_v25 }
  0x65   :  { %859 = vmatpush1.msra.mxu1 %v9446_v37  ;;  %931 = vmatpush1.msra.mxu0 %v9663_v55  ;;  %v1045_v37 = vsub.f32 %v9694_v12, %v1044_v29  ;;  %v1034_v58 = vand.u32 4294901760, %v1033_v31  ;;  %v1092_v31 = vand.u32 4294901760, %v9776_v45 }
  0x66   :  { %861 = vmatprep.subr.mxu1 %v9459_v42  ;;  %933 = vmatprep.subr.mxu0 %v9668_v6  ;;  %v1051_v42 = vsub.f32 %v9705_v56, %v1050_v48  ;;  %v1040_v13 = vand.u32 4294901760, %v1039_v33  ;;  %v1075_v33 = vsub.f32 %v9755_v54, %v1074_v59 }
  0x67   :  { %863 = vmatpush1.msra.mxu1 %v9478_v50  ;;  %896 = vmatprep.mubr.f32.mxu1 %v12967_v0  ;;  %v1057_v50 = vsub.f32 %v9710_v28, %v1056_v27  ;;  %v1046_v23 = vand.u32 4294901760, %v1045_v37  ;;  %v1064_v37 = vand.u32 4294901760, %v1063_v60 }
  0x68   :  { %935 = vmatpush1.msra.mxu0 %v9679_v2  ;;  %898 = vmatmul.mubr.f32.vlgmr.msra.gmra.mxu1 %v9506_v7  ;;  %v1052_v25 = vand.u32 4294901760, %v1051_v42  ;;  %v1104_v42 = vand.u32 4294901760, %v9793_v52  ;;  %v1076_v60 = vand.u32 4294901760, %v1075_v33 }
  0x69   :  { %937 = vmatprep.subr.mxu0 %v9684_v11  ;;  %1017 = vmatprep.subr.mxu1 %v1016_v19  ;;  %v1058_v19 = vand.u32 4294901760, %v1057_v50  ;;  %v1070_v50 = vand.u32 4294901760, %v1069_v21 }
  0x6a   :  { %939 = vmatpush1.msra.mxu0 %v9696_v22  ;;  %1023 = vmatpush1.msra.mxu1 %v1022_v32  ;;  %v1098_v32 = vand.u32 4294901760, %v9789_v3 }
  0x6b   :  { %941 = vmatprep.subr.mxu0 %v9712_v57  ;;  %1029 = vmatprep.subr.mxu1 %v1028_v40  ;;  %v1081_v40 = vsub.f32 %v9741_v38, %v1080_v61 }
  0x6c   :  { %943 = vmatpush1.msra.mxu0 %v9702_v44  ;;  %1035 = vmatpush1.msra.mxu1 %v1034_v58  ;;  %v1087_v58 = vsub.f32 %v9771_v35, %v12960_v62 }
  0x6d   :  { %945 = vmatprep.subr.mxu0 %v9732_v20  ;;  %1041 = vmatprep.subr.mxu1 %v1040_v13  ;;  %v1093_v13 = vsub.f32 %v9776_v45, %v1092_v31  ;;  %v1082_v62 = vand.u32 4294901760, %v1081_v40 }
  0x6e   :  { %947 = vmatpush1.msra.mxu0 %v9743_v47  ;;  %1047 = vmatpush1.msra.mxu1 %v1046_v23  ;;  %v1099_v23 = vsub.f32 %v9789_v3, %v1098_v32  ;;  %v1088_v21 = vand.u32 4294901760, %v1087_v58 }
  0x6f   :  { %949 = vmatprep.subr.mxu0 %v9751_v53  ;;  %1053 = vmatprep.subr.mxu1 %v1052_v25  ;;  %v1105_v25 = vsub.f32 %v9793_v52, %v1104_v42 }
  0x70   :  { %951 = vmatpush1.msra.mxu0 %v9762_v24  ;;  %1059 = vmatpush1.msra.mxu1 %v1058_v19  ;;  %v1094_v19 = vand.u32 4294901760, %v1093_v13  ;;  %v1100_v33 = vand.u32 4294901760, %v1099_v23  ;;  %v57_v23 = vld [vmem:[#allocation5 + $0x20] sm:$0xff] }
  0x71   :  { %984 = vmatprep.mubr.f32.mxu0 %v12967_v0  ;;  %1065 = vmatprep.subr.mxu1 %v1064_v37  ;;  %v1106_v37 = vand.u32 4294901760, %v1105_v25 }
  0x72   :  { %1166 = vmatprep.subr.mxu0 %v9655_v4  ;;  %990 = vmatmul.mubr.f32.vlgmr.msra.gmra.mxu0 %v9569_v15  ;;  %v233_v4 = vld [vmem:[#allocation5 + $0x5a0] sm:$0xff] }
  0x73   :  { %1071 = vmatpush1.msra.mxu1 %v1070_v50  ;;  %1169 = vmatpush1.msra.mxu0 %v9661_v5  ;;  %v232_v5 = vld [vmem:[#allocation5 + $0x598] sm:$0xff] }
  0x74   :  { %1077 = vmatprep.subr.mxu1 %v1076_v60  ;;  %1172 = vmatprep.subr.mxu0 %v9671_v63  ;;  %v208_v63 = vld [vmem:[#allocation5 + $0x4d8] sm:$0xff] }
  0x75   :  { %1083 = vmatpush1.msra.mxu1 %v1082_v62  ;;  %1175 = vmatpush1.msra.mxu0 %v9677_v10  ;;  %v9884_v10 = vand.u32 4294901760, %v233_v4 }
  0x76   :  { %1089 = vmatprep.subr.mxu1 %v1088_v21  ;;  %1178 = vmatprep.subr.mxu0 %v9688_v14  ;;  %v9889_v14 = vand.u32 4294901760, %v232_v5 }
  0x77   :  { %1095 = vmatpush1.msra.mxu1 %v1094_v19  ;;  %1181 = vmatpush1.msra.mxu0 %v9694_v12  ;;  %v183_v12 = vld [vmem:[#allocation5 + $0x410] sm:$0xff] }
  0x78   :  { %1101 = vmatprep.subr.mxu1 %v1100_v33  ;;  %1184 = vmatprep.subr.mxu0 %v9705_v56 }
  0x79   :  { %1107 = vmatpush1.msra.mxu1 %v1106_v37  ;;  %1140 = vmatprep.mubr.f32.mxu1 %v12967_v0 }
  0x7a   :  { %1187 = vmatpush1.msra.mxu0 %v9710_v28  ;;  %1142 = vmatmul.mubr.f32.vlgmr.msra.gmra.mxu1 %v9506_v7  ;;  %v158_v28 = vld [vmem:[#allocation5 + $0x348] sm:$0xff] }
  0x7b   :  { %1190 = vmatprep.subr.mxu0 %v9722_v1  ;;  %1270 = vmatprep.subr.mxu1 %v9632_v30 }
  0x7c   :  { %1193 = vmatpush1.msra.mxu0 %v9727_v8  ;;  %1272 = vmatpush1.msra.mxu1 %v9637_v34  ;;  %v133_v8 = vld [vmem:[#allocation5 + $0x280] sm:$0xff] }
  0x7d   :  { %1196 = vmatprep.subr.mxu0 %v9755_v54  ;;  %1274 = vmatprep.subr.mxu1 %v9642_v36  ;;  %v107_v54 = vld [vmem:[#allocation5 + $0x1b0] sm:$0xff] }
  0x7e   :  { %1199 = vmatpush1.msra.mxu0 %v9741_v38  ;;  %1276 = vmatpush1.msra.mxu1 %v9647_v41 }
  0x7f   :  { %1202 = vmatprep.subr.mxu0 %v9771_v35  ;;  %1278 = vmatprep.subr.mxu1 %v9652_v46 }
  0x80   :  { %1205 = vmatpush1.msra.mxu0 %v9776_v45  ;;  %1280 = vmatpush1.msra.mxu1 %v9663_v55 }
  0x81   :  { %1208 = vmatprep.subr.mxu0 %v9789_v3  ;;  %1282 = vmatprep.subr.mxu1 %v9668_v6  ;;  %v9954_v3 = vand.u32 4294901760, %v107_v54 }
  0x82   :  { %1211 = vmatpush1.msra.mxu0 %v9793_v52  ;;  %1244 = vmatprep.mubr.f32.mxu0 %v12967_v0 }
  0x83   :  { %1284 = vmatpush1.msra.mxu1 %v9679_v2  ;;  %1247 = vmatmul.mubr.f32.vlgmr.msra.gmra.mxu0 %v9526_v39  ;;  %v9993_v25 = vsub.f32 %v107_v54, %v9954_v3 }
  0x84   :  { %1286 = vmatprep.subr.mxu1 %v9684_v11  ;;  %1362 = vmatprep.subr.mxu0 %v1014_v9  ;;  %v207_v9 = vld [vmem:[#allocation5 + $0x4d0] sm:$0xff] }
  0x85   :  { %1288 = vmatpush1.msra.mxu1 %v9696_v22  ;;  %1366 = vmatpush1.msra.mxu0 %v1020_v16  ;;  %v9894_v16 = vand.u32 4294901760, %v208_v63  ;;  %v9899_v56 = vand.u32 4294901760, %v207_v9 }
  0x86   :  { %1290 = vmatprep.subr.mxu1 %v9712_v57  ;;  %1370 = vmatprep.subr.mxu0 %v1026_v43  ;;  %v182_v43 = vld [vmem:[#allocation5 + $0x408] sm:$0xff] }
  0x87   :  { %1292 = vmatpush1.msra.mxu1 %v9702_v44  ;;  %1374 = vmatpush1.msra.mxu0 %v1032_v17  ;;  %v9904_v17 = vand.u32 4294901760, %v183_v12  ;;  %v9915_v1 = vand.u32 4294901760, %v182_v43 }
  0x88   :  { %1294 = vmatprep.subr.mxu1 %v9732_v20  ;;  %1378 = vmatprep.subr.mxu0 %v1038_v18  ;;  %v157_v18 = vld [vmem:[#allocation5 + $0x340] sm:$0xff] }
  0x89   :  { %1296 = vmatpush1.msra.mxu1 %v9743_v47  ;;  %1382 = vmatpush1.msra.mxu0 %v1044_v29  ;;  %v13077_v29 = vand.u32 4294901760, %v9771_v35  ;;  %v9931_v38 = vand.u32 4294901760, %v157_v18  ;;  %v108_v35 = vld [vmem:[#allocation5 + $0x1b8] sm:$0xff]  ;;  %v9940_v45 = vsub.f32 %v183_v12, %v9904_v17 }
  0x8a   :  { %1298 = vmatprep.subr.mxu1 %v9751_v53  ;;  %1386 = vmatprep.subr.mxu0 %v1050_v48  ;;  %v132_v48 = vld [vmem:[#allocation5 + $0x278] sm:$0xff] }
  0x8b   :  { %1300 = vmatpush1.msra.mxu1 %v9762_v24  ;;  %1333 = vmatprep.mubr.f32.mxu1 %v12967_v0  ;;  %v9962_v62 = vsub.f32 %v157_v18, %v9931_v38 }
  0x8c   :  { %1390 = vmatpush1.msra.mxu0 %v1056_v27  ;;  %1337 = vmatmul.mubr.f32.vlgmr.msra.gmra.mxu1 %v9540_v51  ;;  %v9923_v27 = vsub.f32 %v208_v63, %v9894_v16  ;;  %v10014_v63 = vand.u32 4294901760, %v57_v23 }
  0x8d   :  { %1394 = vmatprep.subr.mxu0 %v1062_v26  ;;  %1480 = vmatprep.subr.mxu1 %v9632_v30  ;;  %v9907_v30 = vsub.f32 %v233_v4, %v9884_v10  ;;  %v1703_v37 = vand.u32 4294901760, %v9962_v62 }
  0x8e   :  { %1398 = vmatpush1.msra.mxu0 %v1068_v49  ;;  %1482 = vmatpush1.msra.mxu1 %v9637_v34  ;;  %v9913_v34 = vsub.f32 %v232_v5, %v9889_v14  ;;  %v9948_v49 = vand.u32 4294901760, %v132_v48 }
  0x8f   :  { %1402 = vmatprep.subr.mxu0 %v1074_v59  ;;  %1484 = vmatprep.subr.mxu1 %v9642_v36  ;;  %v9920_v36 = vand.u32 4294901760, %v158_v28  ;;  %v1661_v26 = vand.u32 4294901760, %v9907_v30  ;;  %v1673_v59 = vand.u32 4294901760, %v9923_v27 }
  0x90   :  { %1406 = vmatpush1.msra.mxu0 %v1080_v61  ;;  %1486 = vmatpush1.msra.mxu1 %v9647_v41  ;;  %v9929_v41 = vsub.f32 %v207_v9, %v9899_v56  ;;  %v83_v61 = vld [vmem:[#allocation5 + $0xf0] sm:$0xff]  ;;  %v9979_v50 = vsub.f32 %v132_v48, %v9948_v49 }
  0x91   :  { %1410 = vmatprep.subr.mxu0 %v13077_v29  ;;  %1488 = vmatprep.subr.mxu1 %v9652_v46  ;;  %v9936_v46 = vand.u32 4294901760, %v133_v8  ;;  %v9957_v52 = vsub.f32 %v158_v28, %v9920_v36  ;;  %v1662_v40 = vsub.f32 %v9907_v30, %v1661_v26  ;;  %v9984_v13 = vand.u32 4294901760, %v83_v61 }
  0x92   :  { %1414 = vmatpush1.msra.mxu0 %v1092_v31  ;;  %1490 = vmatpush1.msra.mxu1 %v9663_v55  ;;  %v9946_v55 = vsub.f32 %v182_v43, %v9915_v1  ;;  %v9964_v31 = vand.u32 4294901760, %v108_v35 }
  0x93   :  { %1418 = vmatprep.subr.mxu0 %v1098_v32  ;;  %1492 = vmatprep.subr.mxu1 %v9668_v6  ;;  %v1667_v6 = vand.u32 4294901760, %v9913_v34  ;;  %v82_v32 = vld [vmem:[#allocation5 + $0xe8] sm:$0xff]  ;;  %v9974_v58 = vsub.f32 %v133_v8, %v9936_v46  ;;  %v1697_v19 = vand.u32 4294901760, %v9957_v52  ;;  %v1663_v5 = vand.u32 4294901760, %v1662_v40 }
  0x94   :  { %1422 = vmatpush1.msra.mxu0 %v1104_v42  ;;  %1455 = vmatprep.mubr.f32.mxu0 %v12967_v0  ;;  %v58_v42 = vld [vmem:[#allocation5 + $0x28] sm:$0xff]  ;;  %v1691_v60 = vand.u32 4294901760, %v9946_v55  ;;  %v9995_v21 = vand.u32 4294901760, %v82_v32  ;;  %v10007_v4 = vsub.f32 %v108_v35, %v9964_v31  ;;  %v10023_v43 = vsub.f32 %v83_v61, %v9984_v13 }
  0x95   :  { %1494 = vmatpush1.msra.mxu1 %v9679_v2  ;;  %1457 = vmatmul.mubr.f32.vlgmr.msra.gmra.mxu0 %v9506_v7  ;;  %v1679_v2 = vand.u32 4294901760, %v9929_v41  ;;  %v10003_v33 = vand.u32 4294901760, %v58_v42  ;;  %v1709_v9 = vand.u32 4294901760, %v9974_v58  ;;  %v1715_v8 = vand.u32 4294901760, %v9979_v50 }
  0x96   :  { %1496 = vmatprep.subr.mxu1 %v9684_v11  ;;  %1568 = vmatprep.subr.mxu0 %v9884_v10  ;;  %v1685_v11 = vand.u32 4294901760, %v9940_v45  ;;  %v10028_v18 = vsub.f32 %v82_v32, %v9995_v21  ;;  %v1721_v48 = vand.u32 4294901760, %v10007_v4  ;;  %v10045_v61 = vsub.f32 %v57_v23, %v10014_v63 }
  0x97   :  { %1498 = vmatpush1.msra.mxu1 %v9696_v22  ;;  %1570 = vmatpush1.msra.mxu0 %v9889_v14  ;;  %v1668_v22 = vsub.f32 %v9913_v34, %v1667_v6  ;;  %v10041_v54 = vsub.f32 %v58_v42, %v10003_v33  ;;  %v1710_v32 = vsub.f32 %v9974_v58, %v1709_v9  ;;  %v1727_v40 = vand.u32 4294901760, %v9993_v25 }
  0x98   :  { %1500 = vmatprep.subr.mxu1 %v9712_v57  ;;  %1572 = vmatprep.subr.mxu0 %v9894_v16  ;;  %v1674_v57 = vsub.f32 %v9923_v27, %v1673_v59  ;;  %v12961_v42 = vand.u32 4294901760, %v10023_v43  ;;  %v1716_v23 = vsub.f32 %v9979_v50, %v1715_v8 }
  0x99   :  { %1502 = vmatpush1.msra.mxu1 %v9702_v44  ;;  %1574 = vmatpush1.msra.mxu0 %v9899_v56  ;;  %v1680_v44 = vsub.f32 %v9929_v41, %v1679_v2  ;;  %v1669_v12 = vand.u32 4294901760, %v1668_v22 }
  0x9a   :  { %1504 = vmatprep.subr.mxu1 %v9732_v20  ;;  %1576 = vmatprep.subr.mxu0 %v9904_v17  ;;  %v1686_v20 = vsub.f32 %v9940_v45, %v1685_v11  ;;  %v1675_v28 = vand.u32 4294901760, %v1674_v57 }
  0x9b   :  { %1506 = vmatpush1.msra.mxu1 %v9743_v47  ;;  %1578 = vmatpush1.msra.mxu0 %v9915_v1  ;;  %v1692_v47 = vsub.f32 %v9946_v55, %v1691_v60  ;;  %v1681_v29 = vand.u32 4294901760, %v1680_v44  ;;  %v1739_v44 = vand.u32 4294901760, %v10028_v18 }
  0x9c   :  { %1508 = vmatprep.subr.mxu1 %v9751_v53  ;;  %1580 = vmatprep.subr.mxu0 %v9920_v36  ;;  %v1698_v53 = vsub.f32 %v9957_v52, %v1697_v19  ;;  %v1687_v35 = vand.u32 4294901760, %v1686_v20  ;;  %v1722_v20 = vsub.f32 %v10007_v4, %v1721_v48 }
  0x9d   :  { %1510 = vmatpush1.msra.mxu1 %v9762_v24  ;;  %1543 = vmatprep.mubr.f32.mxu1 %v12967_v0  ;;  %v1704_v24 = vsub.f32 %v9962_v62, %v1703_v37  ;;  %v1693_v22 = vand.u32 4294901760, %v1692_v47  ;;  %v1711_v47 = vand.u32 4294901760, %v1710_v32 }
  0x9e   :  { %1582 = vmatpush1.msra.mxu0 %v9931_v38  ;;  %1545 = vmatmul.mubr.f32.vlgmr.msra.gmra.mxu1 %v9506_v7  ;;  %v1699_v57 = vand.u32 4294901760, %v1698_v53  ;;  %v1751_v53 = vand.u32 4294901760, %v10045_v61  ;;  %v1723_v32 = vand.u32 4294901760, %v1722_v20 }
  0x9f   :  { %1584 = vmatprep.subr.mxu0 %v9936_v46  ;;  %1664 = vmatprep.subr.mxu1 %v1663_v5  ;;  %v1705_v5 = vand.u32 4294901760, %v1704_v24  ;;  %v1717_v24 = vand.u32 4294901760, %v1716_v23 }
  0xa0   :  { %1586 = vmatpush1.msra.mxu0 %v9948_v49  ;;  %1670 = vmatpush1.msra.mxu1 %v1669_v12  ;;  %v1745_v12 = vand.u32 4294901760, %v10041_v54 }
  0xa1   :  { %1588 = vmatprep.subr.mxu0 %v9964_v31  ;;  %1676 = vmatprep.subr.mxu1 %v1675_v28  ;;  %v1728_v28 = vsub.f32 %v9993_v25, %v1727_v40 }
  0xa2   :  { %1590 = vmatpush1.msra.mxu0 %v9954_v3  ;;  %1682 = vmatpush1.msra.mxu1 %v1681_v29  ;;  %v1734_v29 = vsub.f32 %v10023_v43, %v12961_v42 }
  0xa3   :  { %1592 = vmatprep.subr.mxu0 %v9984_v13  ;;  %1688 = vmatprep.subr.mxu1 %v1687_v35  ;;  %v1740_v35 = vsub.f32 %v10028_v18, %v1739_v44  ;;  %v1729_v42 = vand.u32 4294901760, %v1728_v28 }
  0xa4   :  { %1594 = vmatpush1.msra.mxu0 %v9995_v21  ;;  %1694 = vmatpush1.msra.mxu1 %v1693_v22  ;;  %v1746_v22 = vsub.f32 %v10041_v54, %v1745_v12  ;;  %v1735_v23 = vand.u32 4294901760, %v1734_v29 }
  0xa5   :  { %1596 = vmatprep.subr.mxu0 %v10003_v33  ;;  %1700 = vmatprep.subr.mxu1 %v1699_v57  ;;  %v1752_v57 = vsub.f32 %v10045_v61, %v1751_v53 }
  0xa6   :  { %1598 = vmatpush1.msra.mxu0 %v10014_v63  ;;  %1706 = vmatpush1.msra.mxu1 %v1705_v5  ;;  %v1741_v5 = vand.u32 4294901760, %v1740_v35  ;;  %v1747_v20 = vand.u32 4294901760, %v1746_v22  ;;  %v59_v22 = vld [vmem:[#allocation5 + $0x30] sm:$0xff] }
  0xa7   :  { %1631 = vmatprep.mubr.f32.mxu0 %v12967_v0  ;;  %1712 = vmatprep.subr.mxu1 %v1711_v47  ;;  %v1753_v47 = vand.u32 4294901760, %v1752_v57 }
  0xa8   :  { %1813 = vmatprep.subr.mxu0 %v9907_v30  ;;  %1637 = vmatmul.mubr.f32.vlgmr.msra.gmra.mxu0 %v9569_v15  ;;  %v235_v30 = vld [vmem:[#allocation5 + $0x5b0] sm:$0xff] }
  0xa9   :  { %1718 = vmatpush1.msra.mxu1 %v1717_v24  ;;  %1816 = vmatpush1.msra.mxu0 %v9913_v34  ;;  %v234_v34 = vld [vmem:[#allocation5 + $0x5a8] sm:$0xff] }
  0xaa   :  { %1724 = vmatprep.subr.mxu1 %v1723_v32  ;;  %1819 = vmatprep.subr.mxu0 %v9923_v27  ;;  %v210_v27 = vld [vmem:[#allocation5 + $0x4e8] sm:$0xff] }
  0xab   :  { %1730 = vmatpush1.msra.mxu1 %v1729_v42  ;;  %1822 = vmatpush1.msra.mxu0 %v9929_v41  ;;  %v10136_v41 = vand.u32 4294901760, %v235_v30 }
  0xac   :  { %1736 = vmatprep.subr.mxu1 %v1735_v23  ;;  %1825 = vmatprep.subr.mxu0 %v9940_v45  ;;  %v10141_v45 = vand.u32 4294901760, %v234_v34 }
  0xad   :  { %1742 = vmatpush1.msra.mxu1 %v1741_v5  ;;  %1828 = vmatpush1.msra.mxu0 %v9946_v55  ;;  %v185_v55 = vld [vmem:[#allocation5 + $0x420] sm:$0xff] }
  0xae   :  { %1748 = vmatprep.subr.mxu1 %v1747_v20  ;;  %1831 = vmatprep.subr.mxu0 %v9957_v52 }
  0xaf   :  { %1754 = vmatpush1.msra.mxu1 %v1753_v47  ;;  %1787 = vmatprep.mubr.f32.mxu1 %v12967_v0 }
  0xb0   :  { %1834 = vmatpush1.msra.mxu0 %v9962_v62  ;;  %1789 = vmatmul.mubr.f32.vlgmr.msra.gmra.mxu1 %v9506_v7  ;;  %v160_v62 = vld [vmem:[#allocation5 + $0x358] sm:$0xff] }
  0xb1   :  { %1837 = vmatprep.subr.mxu0 %v9974_v58  ;;  %1917 = vmatprep.subr.mxu1 %v9884_v10 }
  0xb2   :  { %1840 = vmatpush1.msra.mxu0 %v9979_v50  ;;  %1919 = vmatpush1.msra.mxu1 %v9889_v14  ;;  %v135_v50 = vld [vmem:[#allocation5 + $0x290] sm:$0xff] }
  0xb3   :  { %1843 = vmatprep.subr.mxu0 %v10007_v4  ;;  %1921 = vmatprep.subr.mxu1 %v9894_v16  ;;  %v109_v4 = vld [vmem:[#allocation5 + $0x1c0] sm:$0xff] }
  0xb4   :  { %1846 = vmatpush1.msra.mxu0 %v9993_v25  ;;  %1923 = vmatpush1.msra.mxu1 %v9899_v56 }
  0xb5   :  { %1849 = vmatprep.subr.mxu0 %v10023_v43  ;;  %1925 = vmatprep.subr.mxu1 %v9904_v17 }
  0xb6   :  { %1852 = vmatpush1.msra.mxu0 %v10028_v18  ;;  %1927 = vmatpush1.msra.mxu1 %v9915_v1 }
  0xb7   :  { %1855 = vmatprep.subr.mxu0 %v10041_v54  ;;  %1929 = vmatprep.subr.mxu1 %v9920_v36  ;;  %v10206_v54 = vand.u32 4294901760, %v109_v4 }
  0xb8   :  { %1858 = vmatpush1.msra.mxu0 %v10045_v61  ;;  %1891 = vmatprep.mubr.f32.mxu0 %v12967_v0 }
  0xb9   :  { %1931 = vmatpush1.msra.mxu1 %v9931_v38  ;;  %1894 = vmatmul.mubr.f32.vlgmr.msra.gmra.mxu0 %v9526_v39  ;;  %v10245_v57 = vsub.f32 %v109_v4, %v10206_v54 }
  0xba   :  { %1933 = vmatprep.subr.mxu1 %v9936_v46  ;;  %2009 = vmatprep.subr.mxu0 %v1661_v26  ;;  %v209_v26 = vld [vmem:[#allocation5 + $0x4e0] sm:$0xff] }
  0xbb   :  { %1935 = vmatpush1.msra.mxu1 %v9948_v49  ;;  %2013 = vmatpush1.msra.mxu0 %v1667_v6  ;;  %v10146_v6 = vand.u32 4294901760, %v210_v27  ;;  %v10151_v52 = vand.u32 4294901760, %v209_v26 }
  0xbc   :  { %1937 = vmatprep.subr.mxu1 %v9964_v31  ;;  %2017 = vmatprep.subr.mxu0 %v1673_v59  ;;  %v184_v59 = vld [vmem:[#allocation5 + $0x418] sm:$0xff] }
  0xbd   :  { %1939 = vmatpush1.msra.mxu1 %v9954_v3  ;;  %2021 = vmatpush1.msra.mxu0 %v1679_v2  ;;  %v10156_v2 = vand.u32 4294901760, %v185_v55  ;;  %v10167_v58 = vand.u32 4294901760, %v184_v59 }
  0xbe   :  { %1941 = vmatprep.subr.mxu1 %v9984_v13  ;;  %2025 = vmatprep.subr.mxu0 %v1685_v11  ;;  %v159_v11 = vld [vmem:[#allocation5 + $0x350] sm:$0xff] }
  0xbf   :  { %1943 = vmatpush1.msra.mxu1 %v9995_v21  ;;  %2029 = vmatpush1.msra.mxu0 %v1691_v60  ;;  %v13078_v60 = vand.u32 4294901760, %v10023_v43  ;;  %v10183_v25 = vand.u32 4294901760, %v159_v11  ;;  %v110_v43 = vld [vmem:[#allocation5 + $0x1c8] sm:$0xff]  ;;  %v10192_v18 = vsub.f32 %v185_v55, %v10156_v2 }
  0xc0   :  { %1945 = vmatprep.subr.mxu1 %v10003_v33  ;;  %2033 = vmatprep.subr.mxu0 %v1697_v19  ;;  %v134_v19 = vld [vmem:[#allocation5 + $0x288] sm:$0xff] }
  0xc1   :  { %1947 = vmatpush1.msra.mxu1 %v10014_v63  ;;  %1980 = vmatprep.mubr.f32.mxu1 %v12967_v0  ;;  %v10214_v42 = vsub.f32 %v159_v11, %v10183_v25 }
  0xc2   :  { %2037 = vmatpush1.msra.mxu0 %v1703_v37  ;;  %1984 = vmatmul.mubr.f32.vlgmr.msra.gmra.mxu1 %v9540_v51  ;;  %v10175_v37 = vsub.f32 %v210_v27, %v10146_v6  ;;  %v10266_v27 = vand.u32 4294901760, %v59_v22 }
  0xc3   :  { %2041 = vmatprep.subr.mxu0 %v1709_v9  ;;  %2127 = vmatprep.subr.mxu1 %v9884_v10  ;;  %v10159_v10 = vsub.f32 %v235_v30, %v10136_v41  ;;  %v2350_v47 = vand.u32 4294901760, %v10214_v42 }
  0xc4   :  { %2045 = vmatpush1.msra.mxu0 %v1715_v8  ;;  %2129 = vmatpush1.msra.mxu1 %v9889_v14  ;;  %v10165_v14 = vsub.f32 %v234_v34, %v10141_v45  ;;  %v10200_v8 = vand.u32 4294901760, %v134_v19 }
  0xc5   :  { %2049 = vmatprep.subr.mxu0 %v1721_v48  ;;  %2131 = vmatprep.subr.mxu1 %v9894_v16  ;;  %v10172_v16 = vand.u32 4294901760, %v160_v62  ;;  %v2308_v9 = vand.u32 4294901760, %v10159_v10  ;;  %v2320_v48 = vand.u32 4294901760, %v10175_v37 }
  0xc6   :  { %2053 = vmatpush1.msra.mxu0 %v1727_v40  ;;  %2133 = vmatpush1.msra.mxu1 %v9899_v56  ;;  %v10181_v56 = vsub.f32 %v209_v26, %v10151_v52  ;;  %v85_v40 = vld [vmem:[#allocation5 + $0x100] sm:$0xff]  ;;  %v10231_v24 = vsub.f32 %v134_v19, %v10200_v8 }
  0xc7   :  { %2057 = vmatprep.subr.mxu0 %v13078_v60  ;;  %2135 = vmatprep.subr.mxu1 %v9904_v17  ;;  %v10188_v17 = vand.u32 4294901760, %v135_v50  ;;  %v10209_v61 = vsub.f32 %v160_v62, %v10172_v16  ;;  %v2309_v28 = vsub.f32 %v10159_v10, %v2308_v9  ;;  %v10236_v35 = vand.u32 4294901760, %v85_v40 }
  0xc8   :  { %2061 = vmatpush1.msra.mxu0 %v1739_v44  ;;  %2137 = vmatpush1.msra.mxu1 %v9915_v1  ;;  %v10198_v1 = vsub.f32 %v184_v59, %v10167_v58  ;;  %v10216_v44 = vand.u32 4294901760, %v110_v43 }
  0xc9   :  { %2065 = vmatprep.subr.mxu0 %v1745_v12  ;;  %2139 = vmatprep.subr.mxu1 %v9920_v36  ;;  %v2314_v36 = vand.u32 4294901760, %v10165_v14  ;;  %v84_v12 = vld [vmem:[#allocation5 + $0xf8] sm:$0xff]  ;;  %v10226_v29 = vsub.f32 %v135_v50, %v10188_v17  ;;  %v2344_v5 = vand.u32 4294901760, %v10209_v61  ;;  %v2310_v34 = vand.u32 4294901760, %v2309_v28 }
  0xca   :  { %2069 = vmatpush1.msra.mxu0 %v1751_v53  ;;  %2102 = vmatprep.mubr.f32.mxu0 %v12967_v0  ;;  %v60_v53 = vld [vmem:[#allocation5 + $0x38] sm:$0xff]  ;;  %v2338_v32 = vand.u32 4294901760, %v10198_v1  ;;  %v10247_v23 = vand.u32 4294901760, %v84_v12  ;;  %v10259_v30 = vsub.f32 %v110_v43, %v10216_v44  ;;  %v10275_v59 = vsub.f32 %v85_v40, %v10236_v35 }
  0xcb   :  { %2141 = vmatpush1.msra.mxu1 %v9931_v38  ;;  %2104 = vmatmul.mubr.f32.vlgmr.msra.gmra.mxu0 %v9506_v7  ;;  %v2326_v38 = vand.u32 4294901760, %v10181_v56  ;;  %v10255_v20 = vand.u32 4294901760, %v60_v53  ;;  %v2356_v26 = vand.u32 4294901760, %v10226_v29  ;;  %v2362_v50 = vand.u32 4294901760, %v10231_v24 }
  0xcc   :  { %2143 = vmatprep.subr.mxu1 %v9936_v46  ;;  %2215 = vmatprep.subr.mxu0 %v10136_v41  ;;  %v2332_v46 = vand.u32 4294901760, %v10192_v18  ;;  %v10280_v11 = vsub.f32 %v84_v12, %v10247_v23  ;;  %v2368_v19 = vand.u32 4294901760, %v10259_v30  ;;  %v10297_v40 = vsub.f32 %v59_v22, %v10266_v27 }
  0xcd   :  { %2145 = vmatpush1.msra.mxu1 %v9948_v49  ;;  %2217 = vmatpush1.msra.mxu0 %v10141_v45  ;;  %v2315_v49 = vsub.f32 %v10165_v14, %v2314_v36  ;;  %v10293_v4 = vsub.f32 %v60_v53, %v10255_v20  ;;  %v2357_v12 = vsub.f32 %v10226_v29, %v2356_v26  ;;  %v2374_v28 = vand.u32 4294901760, %v10245_v57 }
  0xce   :  { %2147 = vmatprep.subr.mxu1 %v9964_v31  ;;  %2219 = vmatprep.subr.mxu0 %v10146_v6  ;;  %v2321_v31 = vsub.f32 %v10175_v37, %v2320_v48  ;;  %v12962_v53 = vand.u32 4294901760, %v10275_v59  ;;  %v2363_v22 = vsub.f32 %v10231_v24, %v2362_v50 }
  0xcf   :  { %2149 = vmatpush1.msra.mxu1 %v9954_v3  ;;  %2221 = vmatpush1.msra.mxu0 %v10151_v52  ;;  %v2327_v3 = vsub.f32 %v10181_v56, %v2326_v38  ;;  %v2316_v55 = vand.u32 4294901760, %v2315_v49 }
  0xd0   :  { %2151 = vmatprep.subr.mxu1 %v9984_v13  ;;  %2223 = vmatprep.subr.mxu0 %v10156_v2  ;;  %v2333_v13 = vsub.f32 %v10192_v18, %v2332_v46  ;;  %v2322_v62 = vand.u32 4294901760, %v2321_v31 }
  0xd1   :  { %2153 = vmatpush1.msra.mxu1 %v9995_v21  ;;  %2225 = vmatpush1.msra.mxu0 %v10167_v58  ;;  %v2339_v21 = vsub.f32 %v10198_v1, %v2338_v32  ;;  %v2328_v60 = vand.u32 4294901760, %v2327_v3  ;;  %v2386_v3 = vand.u32 4294901760, %v10280_v11 }
  0xd2   :  { %2155 = vmatprep.subr.mxu1 %v10003_v33  ;;  %2227 = vmatprep.subr.mxu0 %v10172_v16  ;;  %v2345_v33 = vsub.f32 %v10209_v61, %v2344_v5  ;;  %v2334_v43 = vand.u32 4294901760, %v2333_v13  ;;  %v2369_v13 = vsub.f32 %v10259_v30, %v2368_v19 }
  0xd3   :  { %2157 = vmatpush1.msra.mxu1 %v10014_v63  ;;  %2190 = vmatprep.mubr.f32.mxu1 %v12967_v0  ;;  %v2351_v63 = vsub.f32 %v10214_v42, %v2350_v47  ;;  %v2340_v49 = vand.u32 4294901760, %v2339_v21  ;;  %v2358_v21 = vand.u32 4294901760, %v2357_v12 }
  0xd4   :  { %2229 = vmatpush1.msra.mxu0 %v10183_v25  ;;  %2192 = vmatmul.mubr.f32.vlgmr.msra.gmra.mxu1 %v9506_v7  ;;  %v2346_v31 = vand.u32 4294901760, %v2345_v33  ;;  %v2398_v33 = vand.u32 4294901760, %v10297_v40  ;;  %v2370_v12 = vand.u32 4294901760, %v2369_v13 }
  0xd5   :  { %2231 = vmatprep.subr.mxu0 %v10188_v17  ;;  %2311 = vmatprep.subr.mxu1 %v2310_v34  ;;  %v2352_v34 = vand.u32 4294901760, %v2351_v63  ;;  %v2364_v63 = vand.u32 4294901760, %v2363_v22 }
  0xd6   :  { %2233 = vmatpush1.msra.mxu0 %v10200_v8  ;;  %2317 = vmatpush1.msra.mxu1 %v2316_v55  ;;  %v2392_v55 = vand.u32 4294901760, %v10293_v4 }
  0xd7   :  { %2235 = vmatprep.subr.mxu0 %v10216_v44  ;;  %2323 = vmatprep.subr.mxu1 %v2322_v62  ;;  %v2375_v62 = vsub.f32 %v10245_v57, %v2374_v28 }
  0xd8   :  { %2237 = vmatpush1.msra.mxu0 %v10206_v54  ;;  %2329 = vmatpush1.msra.mxu1 %v2328_v60  ;;  %v2381_v60 = vsub.f32 %v10275_v59, %v12962_v53 }
  0xd9   :  { %2239 = vmatprep.subr.mxu0 %v10236_v35  ;;  %2335 = vmatprep.subr.mxu1 %v2334_v43  ;;  %v2387_v43 = vsub.f32 %v10280_v11, %v2386_v3  ;;  %v2376_v53 = vand.u32 4294901760, %v2375_v62 }
  0xda   :  { %2241 = vmatpush1.msra.mxu0 %v10247_v23  ;;  %2341 = vmatpush1.msra.mxu1 %v2340_v49  ;;  %v2393_v49 = vsub.f32 %v10293_v4, %v2392_v55  ;;  %v2382_v22 = vand.u32 4294901760, %v2381_v60  ;;  %v62_v60 = vld [vmem:[#allocation5 + $0x48] sm:$0xff] }
  0xdb   :  { %2243 = vmatprep.subr.mxu0 %v10255_v20  ;;  %2347 = vmatprep.subr.mxu1 %v2346_v31  ;;  %v2399_v31 = vsub.f32 %v10297_v40, %v2398_v33 }
  0xdc   :  { %2245 = vmatpush1.msra.mxu0 %v10266_v27  ;;  %2353 = vmatpush1.msra.mxu1 %v2352_v34  ;;  %v2388_v34 = vand.u32 4294901760, %v2387_v43  ;;  %v2394_v13 = vand.u32 4294901760, %v2393_v49  ;;  %v61_v49 = vld [vmem:[#allocation5 + $0x40] sm:$0xff] }
  0xdd   :  { %2278 = vmatprep.mubr.f32.mxu0 %v12967_v0  ;;  %2359 = vmatprep.subr.mxu1 %v2358_v21  ;;  %v2400_v21 = vand.u32 4294901760, %v2399_v31 }
  0xde   :  { %2460 = vmatprep.subr.mxu0 %v10159_v10  ;;  %2284 = vmatmul.mubr.f32.vlgmr.msra.gmra.mxu0 %v9569_v15 }
  0xdf   :  { %2365 = vmatpush1.msra.mxu1 %v2364_v63  ;;  %2463 = vmatpush1.msra.mxu0 %v10165_v14  ;;  %v236_v14 = vld [vmem:[#allocation5 + $0x5b8] sm:$0xff] }
  0xe0   :  { %2371 = vmatprep.subr.mxu1 %v2370_v12  ;;  %2466 = vmatprep.subr.mxu0 %v10175_v37  ;;  %v212_v37 = vld [vmem:[#allocation5 + $0x4f8] sm:$0xff] }
  0xe1   :  { %2377 = vmatpush1.msra.mxu1 %v2376_v53  ;;  %2469 = vmatpush1.msra.mxu0 %v10181_v56  ;;  %v237_v53 = vld [vmem:[#allocation5 + $0x5c0] sm:$0xff]  ;;  %v211_v56 = vld [vmem:[#allocation5 + $0x4f0] sm:$0xff] }
  0xe2   :  { %2383 = vmatprep.subr.mxu1 %v2382_v22  ;;  %2472 = vmatprep.subr.mxu0 %v10192_v18  ;;  %v10380_v10 = vand.u32 4294901760, %v237_v53  ;;  %v187_v18 = vld [vmem:[#allocation5 + $0x430] sm:$0xff] }
  0xe3   :  { %2389 = vmatpush1.msra.mxu1 %v2388_v34  ;;  %2475 = vmatpush1.msra.mxu0 %v10198_v1 }
  0xe4   :  { %2395 = vmatprep.subr.mxu1 %v2394_v13  ;;  %2478 = vmatprep.subr.mxu0 %v10209_v61  ;;  %v10396_v1 = vsub.f32 %v237_v53, %v10380_v10  ;;  %v10406_v61 = vand.u32 4294901760, %v211_v56  ;;  %v10507_v13 = vand.u32 4294901760, %v62_v60 }
  0xe5   :  { %2401 = vmatpush1.msra.mxu1 %v2400_v21  ;;  %2434 = vmatprep.mubr.f32.mxu1 %v12967_v0 }
  0xe6   :  { %2481 = vmatpush1.msra.mxu0 %v10214_v42  ;;  %2436 = vmatmul.mubr.f32.vlgmr.msra.gmra.mxu1 %v9506_v7  ;;  %v162_v42 = vld [vmem:[#allocation5 + $0x368] sm:$0xff] }
  0xe7   :  { %2484 = vmatprep.subr.mxu0 %v10226_v29  ;;  %2564 = vmatprep.subr.mxu1 %v10136_v41  ;;  %v137_v29 = vld [vmem:[#allocation5 + $0x2a0] sm:$0xff] }
  0xe8   :  { %2487 = vmatpush1.msra.mxu0 %v10231_v24  ;;  %2566 = vmatpush1.msra.mxu1 %v10141_v45  ;;  %v2955_v24 = vand.u32 4294901760, %v10396_v1 }
  0xe9   :  { %2490 = vmatprep.subr.mxu0 %v10259_v30  ;;  %2568 = vmatprep.subr.mxu1 %v10146_v6  ;;  %v112_v30 = vld [vmem:[#allocation5 + $0x1d8] sm:$0xff] }
  0xea   :  { %2493 = vmatpush1.msra.mxu0 %v10245_v57  ;;  %2570 = vmatpush1.msra.mxu1 %v10151_v52 }
  0xeb   :  { %2496 = vmatprep.subr.mxu0 %v10275_v59  ;;  %2572 = vmatprep.subr.mxu1 %v10156_v2 }
  0xec   :  { %2499 = vmatpush1.msra.mxu0 %v10280_v11  ;;  %2574 = vmatpush1.msra.mxu1 %v10167_v58  ;;  %v111_v11 = vld [vmem:[#allocation5 + $0x1d0] sm:$0xff] }
  0xed   :  { %2502 = vmatprep.subr.mxu0 %v10293_v4  ;;  %2576 = vmatprep.subr.mxu1 %v10172_v16  ;;  %v87_v4 = vld [vmem:[#allocation5 + $0x110] sm:$0xff]  ;;  %v10476_v62 = vand.u32 4294901760, %v111_v11 }
  0xee   :  { %2505 = vmatpush1.msra.mxu0 %v10297_v40  ;;  %2538 = vmatprep.mubr.f32.mxu0 %v12967_v0  ;;  %v10488_v43 = vand.u32 4294901760, %v87_v4 }
  0xef   :  { %2578 = vmatpush1.msra.mxu1 %v10183_v25  ;;  %2541 = vmatmul.mubr.f32.vlgmr.msra.gmra.mxu0 %v9526_v39 }
  0xf0   :  { %2580 = vmatprep.subr.mxu1 %v10188_v17  ;;  %2656 = vmatprep.subr.mxu0 %v2308_v9  ;;  %v10393_v9 = vand.u32 4294901760, %v236_v14 }
  0xf1   :  { %2582 = vmatpush1.msra.mxu1 %v10200_v8  ;;  %2660 = vmatpush1.msra.mxu0 %v2314_v36  ;;  %v10401_v36 = vand.u32 4294901760, %v212_v37 }
  0xf2   :  { %2584 = vmatprep.subr.mxu1 %v10216_v44  ;;  %2664 = vmatprep.subr.mxu0 %v2320_v48  ;;  %v186_v48 = vld [vmem:[#allocation5 + $0x428] sm:$0xff] }
  0xf3   :  { %2586 = vmatpush1.msra.mxu1 %v10206_v54  ;;  %2668 = vmatpush1.msra.mxu0 %v2326_v38  ;;  %v10411_v38 = vand.u32 4294901760, %v187_v18  ;;  %v10428_v57 = vsub.f32 %v212_v37, %v10401_v36  ;;  %v10521_v37 = vand.u32 4294901760, %v61_v49 }
  0xf4   :  { %2588 = vmatprep.subr.mxu1 %v10236_v35  ;;  %2672 = vmatprep.subr.mxu0 %v2332_v46  ;;  %v161_v46 = vld [vmem:[#allocation5 + $0x360] sm:$0xff] }
  0xf5   :  { %2590 = vmatpush1.msra.mxu1 %v10247_v23  ;;  %2676 = vmatpush1.msra.mxu0 %v2338_v32  ;;  %v13079_v32 = vand.u32 4294901760, %v10275_v59  ;;  %v10455_v59 = vsub.f32 %v10396_v1, %v2955_v24 }
  0xf6   :  { %2592 = vmatprep.subr.mxu1 %v10255_v20  ;;  %2680 = vmatprep.subr.mxu0 %v2344_v5  ;;  %v10436_v5 = vand.u32 4294901760, %v161_v46 }
  0xf7   :  { %2594 = vmatpush1.msra.mxu1 %v10266_v27  ;;  %2627 = vmatprep.mubr.f32.mxu1 %v12967_v0  ;;  %v2957_v63 = vand.u32 4294901760, %v10455_v59 }
  0xf8   :  { %2684 = vmatpush1.msra.mxu0 %v2350_v47  ;;  %2631 = vmatmul.mubr.f32.vlgmr.msra.gmra.mxu1 %v9540_v51  ;;  %v136_v47 = vld [vmem:[#allocation5 + $0x298] sm:$0xff] }
  0xf9   :  { %2688 = vmatprep.subr.mxu0 %v2356_v26  ;;  %2774 = vmatprep.subr.mxu1 %v10136_v41  ;;  %v10417_v41 = vsub.f32 %v236_v14, %v10393_v9  ;;  %v10444_v26 = vsub.f32 %v187_v18, %v10411_v38  ;;  %v10516_v14 = vsub.f32 %v111_v11, %v10476_v62 }
  0xfa   :  { %2692 = vmatpush1.msra.mxu0 %v2362_v50  ;;  %2776 = vmatpush1.msra.mxu1 %v10141_v45  ;;  %v10419_v45 = vand.u32 4294901760, %v186_v48  ;;  %v10460_v50 = vand.u32 4294901760, %v136_v47  ;;  %v10552_v11 = vsub.f32 %v61_v49, %v10521_v37 }
  0xfb   :  { %2696 = vmatprep.subr.mxu0 %v2368_v19  ;;  %2778 = vmatprep.subr.mxu1 %v10146_v6  ;;  %v10425_v6 = vand.u32 4294901760, %v162_v42  ;;  %v2967_v19 = vand.u32 4294901760, %v10428_v57 }
  0xfc   :  { %2700 = vmatpush1.msra.mxu0 %v2374_v28  ;;  %2780 = vmatpush1.msra.mxu1 %v10151_v52  ;;  %v10434_v52 = vsub.f32 %v211_v56, %v10406_v61  ;;  %v10469_v28 = vsub.f32 %v161_v46, %v10436_v5  ;;  %v10494_v31 = vsub.f32 %v136_v47, %v10460_v50 }
  0xfd   :  { %2704 = vmatprep.subr.mxu0 %v13079_v32  ;;  %2782 = vmatprep.subr.mxu1 %v10156_v2  ;;  %v10441_v2 = vand.u32 4294901760, %v137_v29  ;;  %v10464_v40 = vsub.f32 %v162_v42, %v10425_v6 }
  0xfe   :  { %2708 = vmatpush1.msra.mxu0 %v2386_v3  ;;  %2784 = vmatpush1.msra.mxu1 %v10167_v58  ;;  %v10450_v58 = vsub.f32 %v186_v48, %v10419_v45  ;;  %v10471_v3 = vand.u32 4294901760, %v112_v30  ;;  %v2997_v21 = vand.u32 4294901760, %v10469_v28  ;;  %v10530_v48 = vsub.f32 %v87_v4, %v10488_v43 }
  0xff   :  { %2712 = vmatprep.subr.mxu0 %v2392_v55  ;;  %2786 = vmatprep.subr.mxu1 %v10172_v16  ;;  %v2961_v16 = vand.u32 4294901760, %v10417_v41  ;;  %v86_v55 = vld [vmem:[#allocation5 + $0x108] sm:$0xff]  ;;  %v2991_v34 = vand.u32 4294901760, %v10464_v40 }
 0x100   :  { %2716 = vmatpush1.msra.mxu0 %v2398_v33  ;;  %2749 = vmatprep.mubr.f32.mxu0 %v12967_v0  ;;  %v2979_v33 = vand.u32 4294901760, %v10444_v26  ;;  %v2985_v12 = vand.u32 4294901760, %v10450_v58  ;;  %v10499_v22 = vand.u32 4294901760, %v86_v55  ;;  %v10511_v53 = vsub.f32 %v112_v30, %v10471_v3 }
 0x101   :  { %2788 = vmatpush1.msra.mxu1 %v10183_v25  ;;  %2751 = vmatmul.mubr.f32.vlgmr.msra.gmra.mxu0 %v9506_v7  ;;  %v2973_v25 = vand.u32 4294901760, %v10434_v52  ;;  %v10548_v30 = vsub.f32 %v62_v60, %v10507_v13  ;;  %v12963_v60 = vand.u32 4294901760, %v10530_v48 }
 0x102   :  { %2790 = vmatprep.subr.mxu1 %v10188_v17  ;;  %2862 = vmatprep.subr.mxu0 %v10380_v10  ;;  %v10480_v17 = vsub.f32 %v137_v29, %v10441_v2  ;;  %v10535_v46 = vsub.f32 %v86_v55, %v10499_v22  ;;  %v3009_v29 = vand.u32 4294901760, %v10494_v31  ;;  %v3015_v47 = vand.u32 4294901760, %v10511_v53 }
 0x103   :  { %2792 = vmatpush1.msra.mxu1 %v10200_v8  ;;  %2864 = vmatpush1.msra.mxu0 %v10393_v9  ;;  %v2962_v8 = vsub.f32 %v10417_v41, %v2961_v16  ;;  %v3021_v55 = vand.u32 4294901760, %v10516_v14 }
 0x104   :  { %2794 = vmatprep.subr.mxu1 %v10216_v44  ;;  %2866 = vmatprep.subr.mxu0 %v10401_v36  ;;  %v2968_v44 = vsub.f32 %v10428_v57, %v2967_v19  ;;  %v3003_v56 = vand.u32 4294901760, %v10480_v17  ;;  %v3010_v49 = vsub.f32 %v10494_v31, %v3009_v29 }
 0x105   :  { %2796 = vmatpush1.msra.mxu1 %v10206_v54  ;;  %2868 = vmatpush1.msra.mxu0 %v10406_v61  ;;  %v2974_v54 = vsub.f32 %v10434_v52, %v2973_v25  ;;  %v2963_v18 = vand.u32 4294901760, %v2962_v8 }
 0x106   :  { %2798 = vmatprep.subr.mxu1 %v10236_v35  ;;  %2870 = vmatprep.subr.mxu0 %v10411_v38  ;;  %v2980_v35 = vsub.f32 %v10444_v26, %v2979_v33  ;;  %v2969_v42 = vand.u32 4294901760, %v2968_v44  ;;  %v3004_v4 = vsub.f32 %v10480_v17, %v3003_v56  ;;  %v3033_v44 = vand.u32 4294901760, %v10535_v46 }
 0x107   :  { %2800 = vmatpush1.msra.mxu1 %v10247_v23  ;;  %2872 = vmatpush1.msra.mxu0 %v10419_v45  ;;  %v2986_v23 = vsub.f32 %v10450_v58, %v2985_v12  ;;  %v2975_v32 = vand.u32 4294901760, %v2974_v54 }
 0x108   :  { %2802 = vmatprep.subr.mxu1 %v10255_v20  ;;  %2874 = vmatprep.subr.mxu0 %v10425_v6  ;;  %v2992_v20 = vsub.f32 %v10464_v40, %v2991_v34  ;;  %v2981_v59 = vand.u32 4294901760, %v2980_v35  ;;  %v3016_v35 = vsub.f32 %v10511_v53, %v3015_v47 }
 0x109   :  { %2804 = vmatpush1.msra.mxu1 %v10266_v27  ;;  %2837 = vmatprep.mubr.f32.mxu1 %v12967_v0  ;;  %v2998_v27 = vsub.f32 %v10469_v28, %v2997_v21  ;;  %v2987_v8 = vand.u32 4294901760, %v2986_v23  ;;  %v3005_v23 = vand.u32 4294901760, %v3004_v4 }
 0x10a   :  { %2876 = vmatpush1.msra.mxu0 %v10436_v5  ;;  %2839 = vmatmul.mubr.f32.vlgmr.msra.gmra.mxu1 %v9506_v7  ;;  %v3017_v4 = vand.u32 4294901760, %v3016_v35 }
 0x10b   :  { %2878 = vmatprep.subr.mxu0 %v10441_v2  ;;  %2958 = vmatprep.subr.mxu1 %v2957_v63  ;;  %v2993_v63 = vand.u32 4294901760, %v2992_v20  ;;  %v2999_v54 = vand.u32 4294901760, %v2998_v27  ;;  %v3045_v20 = vand.u32 4294901760, %v10552_v11  ;;  %v3011_v27 = vand.u32 4294901760, %v3010_v49 }
 0x10c   :  { %2880 = vmatpush1.msra.mxu0 %v10460_v50  ;;  %2964 = vmatpush1.msra.mxu1 %v2963_v18  ;;  %v3039_v18 = vand.u32 4294901760, %v10548_v30 }
 0x10d   :  { %2882 = vmatprep.subr.mxu0 %v10471_v3  ;;  %2970 = vmatprep.subr.mxu1 %v2969_v42  ;;  %v3022_v42 = vsub.f32 %v10516_v14, %v3021_v55 }
 0x10e   :  { %2884 = vmatpush1.msra.mxu0 %v10476_v62  ;;  %2976 = vmatpush1.msra.mxu1 %v2975_v32  ;;  %v3028_v32 = vsub.f32 %v10530_v48, %v12963_v60 }
 0x10f   :  { %2886 = vmatprep.subr.mxu0 %v10488_v43  ;;  %2982 = vmatprep.subr.mxu1 %v2981_v59  ;;  %v3034_v59 = vsub.f32 %v10535_v46, %v3033_v44  ;;  %v3023_v60 = vand.u32 4294901760, %v3022_v42 }
 0x110   :  { %2888 = vmatpush1.msra.mxu0 %v10499_v22  ;;  %2988 = vmatpush1.msra.mxu1 %v2987_v8  ;;  %v3040_v8 = vsub.f32 %v10548_v30, %v3039_v18  ;;  %v3029_v49 = vand.u32 4294901760, %v3028_v32  ;;  %v64_v32 = vld [vmem:[#allocation5 + $0x58] sm:$0xff] }
 0x111   :  { %2890 = vmatprep.subr.mxu0 %v10507_v13  ;;  %2994 = vmatprep.subr.mxu1 %v2993_v63  ;;  %v3046_v63 = vsub.f32 %v10552_v11, %v3045_v20 }
 0x112   :  { %2892 = vmatpush1.msra.mxu0 %v10521_v37  ;;  %3000 = vmatpush1.msra.mxu1 %v2999_v54  ;;  %v3035_v54 = vand.u32 4294901760, %v3034_v59  ;;  %v3041_v35 = vand.u32 4294901760, %v3040_v8  ;;  %v63_v8 = vld [vmem:[#allocation5 + $0x50] sm:$0xff] }
 0x113   :  { %2925 = vmatprep.mubr.f32.mxu0 %v12967_v0  ;;  %3006 = vmatprep.subr.mxu1 %v3005_v23  ;;  %v3047_v23 = vand.u32 4294901760, %v3046_v63 }
 0x114   :  { %3107 = vmatprep.subr.mxu0 %v10396_v1  ;;  %2931 = vmatmul.mubr.f32.vlgmr.msra.gmra.mxu0 %v9569_v15 }
 0x115   :  { %3012 = vmatpush1.msra.mxu1 %v3011_v27  ;;  %3110 = vmatpush1.msra.mxu0 %v10417_v41  ;;  %v238_v41 = vld [vmem:[#allocation5 + $0x5c8] sm:$0xff] }
 0x116   :  { %3018 = vmatprep.subr.mxu1 %v3017_v4  ;;  %3113 = vmatprep.subr.mxu0 %v10428_v57  ;;  %v213_v57 = vld [vmem:[#allocation5 + $0x500] sm:$0xff] }
 0x117   :  { %3024 = vmatpush1.msra.mxu1 %v3023_v60  ;;  %3116 = vmatpush1.msra.mxu0 %v10434_v52  ;;  %v239_v60 = vld [vmem:[#allocation5 + $0x5d0] sm:$0xff]  ;;  %v10648_v52 = vand.u32 4294901760, %v238_v41 }
 0x118   :  { %3030 = vmatprep.subr.mxu1 %v3029_v49  ;;  %3119 = vmatprep.subr.mxu0 %v10444_v26  ;;  %v10635_v1 = vand.u32 4294901760, %v239_v60  ;;  %v189_v26 = vld [vmem:[#allocation5 + $0x440] sm:$0xff] }
 0x119   :  { %3036 = vmatpush1.msra.mxu1 %v3035_v54  ;;  %3122 = vmatpush1.msra.mxu0 %v10450_v58 }
 0x11a   :  { %3042 = vmatprep.subr.mxu1 %v3041_v35  ;;  %3125 = vmatprep.subr.mxu0 %v10464_v40  ;;  %v10651_v58 = vsub.f32 %v239_v60, %v10635_v1  ;;  %v10661_v40 = vand.u32 4294901760, %v213_v57  ;;  %v10762_v35 = vand.u32 4294901760, %v64_v32 }
 0x11b   :  { %3048 = vmatpush1.msra.mxu1 %v3047_v23  ;;  %3081 = vmatprep.mubr.f32.mxu1 %v12967_v0 }
 0x11c   :  { %3128 = vmatpush1.msra.mxu0 %v10469_v28  ;;  %3083 = vmatmul.mubr.f32.vlgmr.msra.gmra.mxu1 %v9506_v7  ;;  %v164_v28 = vld [vmem:[#allocation5 + $0x378] sm:$0xff] }
 0x11d   :  { %3131 = vmatprep.subr.mxu0 %v10480_v17  ;;  %3211 = vmatprep.subr.mxu1 %v10380_v10  ;;  %v139_v17 = vld [vmem:[#allocation5 + $0x2b0] sm:$0xff] }
 0x11e   :  { %3134 = vmatpush1.msra.mxu0 %v10494_v31  ;;  %3213 = vmatpush1.msra.mxu1 %v10393_v9  ;;  %v13080_v31 = vand.u32 4294901760, %v10530_v48 }
 0x11f   :  { %3137 = vmatprep.subr.mxu0 %v10511_v53  ;;  %3215 = vmatprep.subr.mxu1 %v10401_v36  ;;  %v138_v53 = vld [vmem:[#allocation5 + $0x2a8] sm:$0xff] }
 0x120   :  { %3140 = vmatpush1.msra.mxu0 %v10516_v14  ;;  %3217 = vmatpush1.msra.mxu1 %v10406_v61  ;;  %v114_v14 = vld [vmem:[#allocation5 + $0x1e8] sm:$0xff] }
 0x121   :  { %3143 = vmatprep.subr.mxu0 %v10530_v48  ;;  %3219 = vmatprep.subr.mxu1 %v10411_v38 }
 0x122   :  { %3146 = vmatpush1.msra.mxu0 %v10535_v46  ;;  %3221 = vmatpush1.msra.mxu1 %v10419_v45  ;;  %v113_v46 = vld [vmem:[#allocation5 + $0x1e0] sm:$0xff] }
 0x123   :  { %3149 = vmatprep.subr.mxu0 %v10548_v30  ;;  %3223 = vmatprep.subr.mxu1 %v10425_v6  ;;  %v89_v30 = vld [vmem:[#allocation5 + $0x120] sm:$0xff]  ;;  %v10731_v42 = vand.u32 4294901760, %v113_v46 }
 0x124   :  { %3152 = vmatpush1.msra.mxu0 %v10552_v11  ;;  %3185 = vmatprep.mubr.f32.mxu0 %v12967_v0  ;;  %v10743_v59 = vand.u32 4294901760, %v89_v30 }
 0x125   :  { %3225 = vmatpush1.msra.mxu1 %v10436_v5  ;;  %3188 = vmatmul.mubr.f32.vlgmr.msra.gmra.mxu0 %v9526_v39 }
 0x126   :  { %3227 = vmatprep.subr.mxu1 %v10441_v2  ;;  %3303 = vmatprep.subr.mxu0 %v2955_v24  ;;  %v214_v24 = vld [vmem:[#allocation5 + $0x508] sm:$0xff] }
 0x127   :  { %3229 = vmatpush1.msra.mxu1 %v10460_v50  ;;  %3307 = vmatpush1.msra.mxu0 %v2961_v16  ;;  %v10656_v16 = vand.u32 4294901760, %v214_v24 }
 0x128   :  { %3231 = vmatprep.subr.mxu1 %v10471_v3  ;;  %3311 = vmatprep.subr.mxu0 %v2967_v19  ;;  %v188_v19 = vld [vmem:[#allocation5 + $0x438] sm:$0xff] }
 0x129   :  { %3233 = vmatpush1.msra.mxu1 %v10476_v62  ;;  %3315 = vmatpush1.msra.mxu0 %v2973_v25  ;;  %v10666_v25 = vand.u32 4294901760, %v189_v26 }
 0x12a   :  { %3235 = vmatprep.subr.mxu1 %v10488_v43  ;;  %3319 = vmatprep.subr.mxu0 %v2979_v33  ;;  %v163_v33 = vld [vmem:[#allocation5 + $0x370] sm:$0xff] }
 0x12b   :  { %3237 = vmatpush1.msra.mxu1 %v10499_v22  ;;  %3323 = vmatpush1.msra.mxu0 %v2985_v12  ;;  %v3602_v12 = vand.u32 4294901760, %v10651_v58 }
 0x12c   :  { %3239 = vmatprep.subr.mxu1 %v10507_v13  ;;  %3327 = vmatprep.subr.mxu0 %v2991_v34  ;;  %v10683_v34 = vsub.f32 %v214_v24, %v10656_v16  ;;  %v10776_v24 = vand.u32 4294901760, %v63_v8 }
 0x12d   :  { %3241 = vmatpush1.msra.mxu1 %v10521_v37  ;;  %3274 = vmatprep.mubr.f32.mxu1 %v12967_v0  ;;  %v10710_v48 = vsub.f32 %v10651_v58, %v3602_v12 }
 0x12e   :  { %3331 = vmatpush1.msra.mxu0 %v2997_v21  ;;  %3278 = vmatmul.mubr.f32.vlgmr.msra.gmra.mxu1 %v9540_v51  ;;  %v10691_v21 = vand.u32 4294901760, %v163_v33 }
 0x12f   :  { %3335 = vmatprep.subr.mxu0 %v3003_v56  ;;  %3421 = vmatprep.subr.mxu1 %v10380_v10  ;;  %v10672_v10 = vsub.f32 %v238_v41, %v10648_v52  ;;  %v10699_v56 = vsub.f32 %v189_v26, %v10666_v25  ;;  %v3604_v27 = vand.u32 4294901760, %v10710_v48  ;;  %v10771_v41 = vsub.f32 %v113_v46, %v10731_v42 }
 0x130   :  { %3339 = vmatpush1.msra.mxu0 %v3009_v29  ;;  %3423 = vmatpush1.msra.mxu1 %v10393_v9  ;;  %v10674_v9 = vand.u32 4294901760, %v188_v19  ;;  %v10715_v29 = vand.u32 4294901760, %v138_v53  ;;  %v10807_v46 = vsub.f32 %v63_v8, %v10776_v24 }
 0x131   :  { %3343 = vmatprep.subr.mxu0 %v3015_v47  ;;  %3425 = vmatprep.subr.mxu1 %v10401_v36  ;;  %v10680_v36 = vand.u32 4294901760, %v164_v28  ;;  %v3614_v47 = vand.u32 4294901760, %v10683_v34 }
 0x132   :  { %3347 = vmatpush1.msra.mxu0 %v3021_v55  ;;  %3427 = vmatpush1.msra.mxu1 %v10406_v61  ;;  %v10689_v61 = vsub.f32 %v213_v57, %v10661_v40  ;;  %v10724_v55 = vsub.f32 %v163_v33, %v10691_v21  ;;  %v10749_v63 = vsub.f32 %v138_v53, %v10715_v29 }
 0x133   :  { %3351 = vmatprep.subr.mxu0 %v13080_v31  ;;  %3429 = vmatprep.subr.mxu1 %v10411_v38  ;;  %v10696_v38 = vand.u32 4294901760, %v139_v17  ;;  %v10719_v11 = vsub.f32 %v164_v28, %v10680_v36 }
 0x134   :  { %3355 = vmatpush1.msra.mxu0 %v3033_v44  ;;  %3431 = vmatpush1.msra.mxu1 %v10419_v45  ;;  %v10705_v45 = vsub.f32 %v188_v19, %v10674_v9  ;;  %v10726_v44 = vand.u32 4294901760, %v114_v14  ;;  %v3644_v23 = vand.u32 4294901760, %v10724_v55  ;;  %v10785_v19 = vsub.f32 %v89_v30, %v10743_v59 }
 0x135   :  { %3359 = vmatprep.subr.mxu0 %v3039_v18  ;;  %3433 = vmatprep.subr.mxu1 %v10425_v6  ;;  %v3608_v6 = vand.u32 4294901760, %v10672_v10  ;;  %v88_v18 = vld [vmem:[#allocation5 + $0x118] sm:$0xff]  ;;  %v3638_v54 = vand.u32 4294901760, %v10719_v11 }
 0x136   :  { %3363 = vmatpush1.msra.mxu0 %v3045_v20  ;;  %3396 = vmatprep.mubr.f32.mxu0 %v12967_v0  ;;  %v3626_v20 = vand.u32 4294901760, %v10699_v56  ;;  %v3632_v4 = vand.u32 4294901760, %v10705_v45  ;;  %v10754_v49 = vand.u32 4294901760, %v88_v18  ;;  %v10766_v60 = vsub.f32 %v114_v14, %v10726_v44 }
 0x137   :  { %3435 = vmatpush1.msra.mxu1 %v10436_v5  ;;  %3398 = vmatmul.mubr.f32.vlgmr.msra.gmra.mxu0 %v9506_v7  ;;  %v3620_v5 = vand.u32 4294901760, %v10689_v61  ;;  %v10803_v14 = vsub.f32 %v64_v32, %v10762_v35  ;;  %v12964_v32 = vand.u32 4294901760, %v10785_v19 }
 0x138   :  { %3437 = vmatprep.subr.mxu1 %v10441_v2  ;;  %3509 = vmatprep.subr.mxu0 %v10635_v1  ;;  %v10735_v2 = vsub.f32 %v139_v17, %v10696_v38  ;;  %v10790_v33 = vsub.f32 %v88_v18, %v10754_v49  ;;  %v3656_v17 = vand.u32 4294901760, %v10749_v63  ;;  %v3662_v53 = vand.u32 4294901760, %v10766_v60 }
 0x139   :  { %3439 = vmatpush1.msra.mxu1 %v10460_v50  ;;  %3511 = vmatpush1.msra.mxu0 %v10648_v52  ;;  %v3609_v50 = vsub.f32 %v10672_v10, %v3608_v6  ;;  %v3668_v18 = vand.u32 4294901760, %v10771_v41 }
 0x13a   :  { %3441 = vmatprep.subr.mxu1 %v10471_v3  ;;  %3513 = vmatprep.subr.mxu0 %v10656_v16  ;;  %v3615_v3 = vsub.f32 %v10683_v34, %v3614_v47  ;;  %v3650_v57 = vand.u32 4294901760, %v10735_v2  ;;  %v3657_v8 = vsub.f32 %v10749_v63, %v3656_v17 }
 0x13b   :  { %3443 = vmatpush1.msra.mxu1 %v10476_v62  ;;  %3515 = vmatpush1.msra.mxu0 %v10661_v40  ;;  %v3621_v62 = vsub.f32 %v10689_v61, %v3620_v5  ;;  %v3610_v26 = vand.u32 4294901760, %v3609_v50 }
 0x13c   :  { %3445 = vmatprep.subr.mxu1 %v10488_v43  ;;  %3517 = vmatprep.subr.mxu0 %v10666_v25  ;;  %v3627_v43 = vsub.f32 %v10699_v56, %v3626_v20  ;;  %v3616_v28 = vand.u32 4294901760, %v3615_v3  ;;  %v3651_v30 = vsub.f32 %v10735_v2, %v3650_v57  ;;  %v3680_v3 = vand.u32 4294901760, %v10790_v33 }
 0x13d   :  { %3447 = vmatpush1.msra.mxu1 %v10499_v22  ;;  %3519 = vmatpush1.msra.mxu0 %v10674_v9  ;;  %v3633_v22 = vsub.f32 %v10705_v45, %v3632_v4  ;;  %v3622_v31 = vand.u32 4294901760, %v3621_v62 }
 0x13e   :  { %3449 = vmatprep.subr.mxu1 %v10507_v13  ;;  %3521 = vmatprep.subr.mxu0 %v10680_v36  ;;  %v3639_v13 = vsub.f32 %v10719_v11, %v3638_v54  ;;  %v3628_v48 = vand.u32 4294901760, %v3627_v43  ;;  %v3663_v43 = vsub.f32 %v10766_v60, %v3662_v53 }
 0x13f   :  { %3451 = vmatpush1.msra.mxu1 %v10521_v37  ;;  %3484 = vmatprep.mubr.f32.mxu1 %v12967_v0  ;;  %v3645_v37 = vsub.f32 %v10724_v55, %v3644_v23  ;;  %v3634_v50 = vand.u32 4294901760, %v3633_v22  ;;  %v3652_v22 = vand.u32 4294901760, %v3651_v30 }
 0x140   :  { %3523 = vmatpush1.msra.mxu0 %v10691_v21  ;;  %3486 = vmatmul.mubr.f32.vlgmr.msra.gmra.mxu1 %v9506_v7  ;;  %v3664_v30 = vand.u32 4294901760, %v3663_v43 }
 0x141   :  { %3525 = vmatprep.subr.mxu0 %v10696_v38  ;;  %3605 = vmatprep.subr.mxu1 %v3604_v27  ;;  %v3640_v27 = vand.u32 4294901760, %v3639_v13  ;;  %v3646_v62 = vand.u32 4294901760, %v3645_v37  ;;  %v3692_v13 = vand.u32 4294901760, %v10807_v46  ;;  %v3658_v37 = vand.u32 4294901760, %v3657_v8 }
 0x142   :  { %3527 = vmatpush1.msra.mxu0 %v10715_v29  ;;  %3611 = vmatpush1.msra.mxu1 %v3610_v26  ;;  %v3686_v26 = vand.u32 4294901760, %v10803_v14 }
 0x143   :  { %3529 = vmatprep.subr.mxu0 %v10726_v44  ;;  %3617 = vmatprep.subr.mxu1 %v3616_v28  ;;  %v3669_v28 = vsub.f32 %v10771_v41, %v3668_v18 }
 0x144   :  { %3531 = vmatpush1.msra.mxu0 %v10731_v42  ;;  %3623 = vmatpush1.msra.mxu1 %v3622_v31  ;;  %v3675_v31 = vsub.f32 %v10785_v19, %v12964_v32 }
 0x145   :  { %3533 = vmatprep.subr.mxu0 %v10743_v59  ;;  %3629 = vmatprep.subr.mxu1 %v3628_v48  ;;  %v3681_v48 = vsub.f32 %v10790_v33, %v3680_v3  ;;  %v3670_v32 = vand.u32 4294901760, %v3669_v28 }
 0x146   :  { %3535 = vmatpush1.msra.mxu0 %v10754_v49  ;;  %3635 = vmatpush1.msra.mxu1 %v3634_v50  ;;  %v3687_v50 = vsub.f32 %v10803_v14, %v3686_v26  ;;  %v3676_v8 = vand.u32 4294901760, %v3675_v31  ;;  %v66_v31 = vld [vmem:[#allocation5 + $0x68] sm:$0xff] }
 0x147   :  { %3537 = vmatprep.subr.mxu0 %v10762_v35  ;;  %3641 = vmatprep.subr.mxu1 %v3640_v27  ;;  %v3693_v27 = vsub.f32 %v10807_v46, %v3692_v13 }
 0x148   :  { %3539 = vmatpush1.msra.mxu0 %v10776_v24  ;;  %3647 = vmatpush1.msra.mxu1 %v3646_v62  ;;  %v3682_v62 = vand.u32 4294901760, %v3681_v48  ;;  %v3688_v43 = vand.u32 4294901760, %v3687_v50  ;;  %v65_v50 = vld [vmem:[#allocation5 + $0x60] sm:$0xff] }
 0x149   :  { %3572 = vmatprep.mubr.f32.mxu0 %v12967_v0  ;;  %3653 = vmatprep.subr.mxu1 %v3652_v22  ;;  %v3694_v22 = vand.u32 4294901760, %v3693_v27 }
 0x14a   :  { %3754 = vmatprep.subr.mxu0 %v10651_v58  ;;  %3578 = vmatmul.mubr.f32.vlgmr.msra.gmra.mxu0 %v9569_v15 }
 0x14b   :  { %3659 = vmatpush1.msra.mxu1 %v3658_v37  ;;  %3757 = vmatpush1.msra.mxu0 %v10672_v10  ;;  %v240_v10 = vld [vmem:[#allocation5 + $0x5d8] sm:$0xff] }
 0x14c   :  { %3665 = vmatprep.subr.mxu1 %v3664_v30  ;;  %3760 = vmatprep.subr.mxu0 %v10683_v34  ;;  %v215_v34 = vld [vmem:[#allocation5 + $0x510] sm:$0xff] }
 0x14d   :  { %3671 = vmatpush1.msra.mxu1 %v3670_v32  ;;  %3763 = vmatpush1.msra.mxu0 %v10689_v61  ;;  %v241_v32 = vld [vmem:[#allocation5 + $0x5e0] sm:$0xff]  ;;  %v10903_v61 = vand.u32 4294901760, %v240_v10 }
 0x14e   :  { %3677 = vmatprep.subr.mxu1 %v3676_v8  ;;  %3766 = vmatprep.subr.mxu0 %v10699_v56  ;;  %v10890_v58 = vand.u32 4294901760, %v241_v32  ;;  %v191_v56 = vld [vmem:[#allocation5 + $0x450] sm:$0xff] }
 0x14f   :  { %3683 = vmatpush1.msra.mxu1 %v3682_v62  ;;  %3769 = vmatpush1.msra.mxu0 %v10705_v45 }
 0x150   :  { %3689 = vmatprep.subr.mxu1 %v3688_v43  ;;  %3772 = vmatprep.subr.mxu0 %v10719_v11  ;;  %v10906_v45 = vsub.f32 %v241_v32, %v10890_v58  ;;  %v10916_v11 = vand.u32 4294901760, %v215_v34  ;;  %v11017_v43 = vand.u32 4294901760, %v66_v31 }
 0x151   :  { %3695 = vmatpush1.msra.mxu1 %v3694_v22  ;;  %3728 = vmatprep.mubr.f32.mxu1 %v12967_v0 }
 0x152   :  { %3775 = vmatpush1.msra.mxu0 %v10724_v55  ;;  %3730 = vmatmul.mubr.f32.vlgmr.msra.gmra.mxu1 %v9506_v7  ;;  %v166_v55 = vld [vmem:[#allocation5 + $0x388] sm:$0xff] }
 0x153   :  { %3778 = vmatprep.subr.mxu0 %v10735_v2  ;;  %3858 = vmatprep.subr.mxu1 %v10635_v1  ;;  %v141_v2 = vld [vmem:[#allocation5 + $0x2c0] sm:$0xff] }
 0x154   :  { %3781 = vmatpush1.msra.mxu0 %v10749_v63  ;;  %3860 = vmatpush1.msra.mxu1 %v10648_v52  ;;  %v13081_v63 = vand.u32 4294901760, %v10785_v19 }
 0x155   :  { %3784 = vmatprep.subr.mxu0 %v10766_v60  ;;  %3862 = vmatprep.subr.mxu1 %v10656_v16  ;;  %v140_v60 = vld [vmem:[#allocation5 + $0x2b8] sm:$0xff] }
 0x156   :  { %3787 = vmatpush1.msra.mxu0 %v10771_v41  ;;  %3864 = vmatpush1.msra.mxu1 %v10661_v40  ;;  %v116_v41 = vld [vmem:[#allocation5 + $0x1f8] sm:$0xff] }
 0x157   :  { %3790 = vmatprep.subr.mxu0 %v10785_v19  ;;  %3866 = vmatprep.subr.mxu1 %v10666_v25 }
 0x158   :  { %3793 = vmatpush1.msra.mxu0 %v10790_v33  ;;  %3868 = vmatpush1.msra.mxu1 %v10674_v9  ;;  %v115_v33 = vld [vmem:[#allocation5 + $0x1f0] sm:$0xff] }
 0x159   :  { %3796 = vmatprep.subr.mxu0 %v10803_v14  ;;  %3870 = vmatprep.subr.mxu1 %v10680_v36  ;;  %v91_v14 = vld [vmem:[#allocation5 + $0x130] sm:$0xff]  ;;  %v10986_v28 = vand.u32 4294901760, %v115_v33 }
 0x15a   :  { %3799 = vmatpush1.msra.mxu0 %v10807_v46  ;;  %3832 = vmatprep.mubr.f32.mxu0 %v12967_v0  ;;  %v10998_v48 = vand.u32 4294901760, %v91_v14 }
 0x15b   :  { %3872 = vmatpush1.msra.mxu1 %v10691_v21  ;;  %3835 = vmatmul.mubr.f32.vlgmr.msra.gmra.mxu0 %v9526_v39 }
 0x15c   :  { %3874 = vmatprep.subr.mxu1 %v10696_v38  ;;  %3950 = vmatprep.subr.mxu0 %v3602_v12  ;;  %v216_v12 = vld [vmem:[#allocation5 + $0x518] sm:$0xff] }
 0x15d   :  { %3876 = vmatpush1.msra.mxu1 %v10715_v29  ;;  %3954 = vmatpush1.msra.mxu0 %v3608_v6  ;;  %v10911_v6 = vand.u32 4294901760, %v216_v12 }
 0x15e   :  { %3878 = vmatprep.subr.mxu1 %v10726_v44  ;;  %3958 = vmatprep.subr.mxu0 %v3614_v47  ;;  %v190_v47 = vld [vmem:[#allocation5 + $0x448] sm:$0xff] }
 0x15f   :  { %3880 = vmatpush1.msra.mxu1 %v10731_v42  ;;  %3962 = vmatpush1.msra.mxu0 %v3620_v5  ;;  %v10921_v5 = vand.u32 4294901760, %v191_v56 }
 0x160   :  { %3882 = vmatprep.subr.mxu1 %v10743_v59  ;;  %3966 = vmatprep.subr.mxu0 %v3626_v20  ;;  %v165_v20 = vld [vmem:[#allocation5 + $0x380] sm:$0xff] }
 0x161   :  { %3884 = vmatpush1.msra.mxu1 %v10754_v49  ;;  %3970 = vmatpush1.msra.mxu0 %v3632_v4  ;;  %v4249_v4 = vand.u32 4294901760, %v10906_v45 }
 0x162   :  { %3886 = vmatprep.subr.mxu1 %v10762_v35  ;;  %3974 = vmatprep.subr.mxu0 %v3638_v54  ;;  %v10938_v54 = vsub.f32 %v216_v12, %v10911_v6  ;;  %v11031_v12 = vand.u32 4294901760, %v65_v50 }
 0x163   :  { %3888 = vmatpush1.msra.mxu1 %v10776_v24  ;;  %3921 = vmatprep.mubr.f32.mxu1 %v12967_v0  ;;  %v10965_v19 = vsub.f32 %v10906_v45, %v4249_v4 }
 0x164   :  { %3978 = vmatpush1.msra.mxu0 %v3644_v23  ;;  %3925 = vmatmul.mubr.f32.vlgmr.msra.gmra.mxu1 %v9540_v51  ;;  %v10946_v23 = vand.u32 4294901760, %v165_v20 }
 0x165   :  { %3982 = vmatprep.subr.mxu0 %v3650_v57  ;;  %4068 = vmatprep.subr.mxu1 %v10635_v1  ;;  %v10927_v1 = vsub.f32 %v240_v10, %v10903_v61  ;;  %v10954_v57 = vsub.f32 %v191_v56, %v10921_v5  ;;  %v4251_v37 = vand.u32 4294901760, %v10965_v19  ;;  %v11026_v10 = vsub.f32 %v115_v33, %v10986_v28 }
 0x166   :  { %3986 = vmatpush1.msra.mxu0 %v3656_v17  ;;  %4070 = vmatpush1.msra.mxu1 %v10648_v52  ;;  %v10929_v52 = vand.u32 4294901760, %v190_v47  ;;  %v10970_v17 = vand.u32 4294901760, %v140_v60  ;;  %v11062_v33 = vsub.f32 %v65_v50, %v11031_v12 }
 0x167   :  { %3990 = vmatprep.subr.mxu0 %v3662_v53  ;;  %4072 = vmatprep.subr.mxu1 %v10656_v16  ;;  %v10935_v16 = vand.u32 4294901760, %v166_v55  ;;  %v4261_v53 = vand.u32 4294901760, %v10938_v54 }
 0x168   :  { %3994 = vmatpush1.msra.mxu0 %v3668_v18  ;;  %4074 = vmatpush1.msra.mxu1 %v10661_v40  ;;  %v10944_v40 = vsub.f32 %v215_v34, %v10916_v11  ;;  %v10979_v18 = vsub.f32 %v165_v20, %v10946_v23  ;;  %v11004_v27 = vsub.f32 %v140_v60, %v10970_v17 }
 0x169   :  { %3998 = vmatprep.subr.mxu0 %v13081_v63  ;;  %4076 = vmatprep.subr.mxu1 %v10666_v25  ;;  %v10951_v25 = vand.u32 4294901760, %v141_v2  ;;  %v10974_v46 = vsub.f32 %v166_v55, %v10935_v16 }
 0x16a   :  { %4002 = vmatpush1.msra.mxu0 %v3680_v3  ;;  %4078 = vmatpush1.msra.mxu1 %v10674_v9  ;;  %v10960_v9 = vsub.f32 %v190_v47, %v10929_v52  ;;  %v10981_v3 = vand.u32 4294901760, %v116_v41  ;;  %v4291_v22 = vand.u32 4294901760, %v10979_v18  ;;  %v11040_v47 = vsub.f32 %v91_v14, %v10998_v48 }
 0x16b   :  { %4006 = vmatprep.subr.mxu0 %v3686_v26  ;;  %4080 = vmatprep.subr.mxu1 %v10680_v36  ;;  %v4255_v36 = vand.u32 4294901760, %v10927_v1  ;;  %v90_v26 = vld [vmem:[#allocation5 + $0x128] sm:$0xff]  ;;  %v4285_v62 = vand.u32 4294901760, %v10974_v46 }
 0x16c   :  { %4010 = vmatpush1.msra.mxu0 %v3692_v13  ;;  %4043 = vmatprep.mubr.f32.mxu0 %v12967_v0  ;;  %v4273_v13 = vand.u32 4294901760, %v10954_v57  ;;  %v4279_v30 = vand.u32 4294901760, %v10960_v9  ;;  %v11009_v8 = vand.u32 4294901760, %v90_v26  ;;  %v11021_v32 = vsub.f32 %v116_v41, %v10981_v3 }
 0x16d   :  { %4082 = vmatpush1.msra.mxu1 %v10691_v21  ;;  %4045 = vmatmul.mubr.f32.vlgmr.msra.gmra.mxu0 %v9506_v7  ;;  %v4267_v21 = vand.u32 4294901760, %v10944_v40  ;;  %v11058_v41 = vsub.f32 %v66_v31, %v11017_v43  ;;  %v12965_v31 = vand.u32 4294901760, %v11040_v47 }
 0x16e   :  { %4084 = vmatprep.subr.mxu1 %v10696_v38  ;;  %4156 = vmatprep.subr.mxu0 %v10890_v58  ;;  %v10990_v38 = vsub.f32 %v141_v2, %v10951_v25  ;;  %v11045_v20 = vsub.f32 %v90_v26, %v11009_v8  ;;  %v4303_v2 = vand.u32 4294901760, %v11004_v27  ;;  %v4309_v60 = vand.u32 4294901760, %v11021_v32 }
 0x16f   :  { %4086 = vmatpush1.msra.mxu1 %v10715_v29  ;;  %4158 = vmatpush1.msra.mxu0 %v10903_v61  ;;  %v4256_v29 = vsub.f32 %v10927_v1, %v4255_v36  ;;  %v4315_v26 = vand.u32 4294901760, %v11026_v10 }
 0x170   :  { %4088 = vmatprep.subr.mxu1 %v10726_v44  ;;  %4160 = vmatprep.subr.mxu0 %v10911_v6  ;;  %v4262_v44 = vsub.f32 %v10938_v54, %v4261_v53  ;;  %v4297_v34 = vand.u32 4294901760, %v10990_v38  ;;  %v4304_v50 = vsub.f32 %v11004_v27, %v4303_v2 }
 0x171   :  { %4090 = vmatpush1.msra.mxu1 %v10731_v42  ;;  %4162 = vmatpush1.msra.mxu0 %v10916_v11  ;;  %v4268_v42 = vsub.f32 %v10944_v40, %v4267_v21  ;;  %v4257_v56 = vand.u32 4294901760, %v4256_v29 }
 0x172   :  { %4092 = vmatprep.subr.mxu1 %v10743_v59  ;;  %4164 = vmatprep.subr.mxu0 %v10921_v5  ;;  %v4274_v59 = vsub.f32 %v10954_v57, %v4273_v13  ;;  %v4263_v55 = vand.u32 4294901760, %v4262_v44  ;;  %v4298_v14 = vsub.f32 %v10990_v38, %v4297_v34  ;;  %v4327_v44 = vand.u32 4294901760, %v11045_v20 }
 0x173   :  { %4094 = vmatpush1.msra.mxu1 %v10754_v49  ;;  %4166 = vmatpush1.msra.mxu0 %v10929_v52  ;;  %v4280_v49 = vsub.f32 %v10960_v9, %v4279_v30  ;;  %v4269_v63 = vand.u32 4294901760, %v4268_v42 }
 0x174   :  { %4096 = vmatprep.subr.mxu1 %v10762_v35  ;;  %4168 = vmatprep.subr.mxu0 %v10935_v16  ;;  %v4286_v35 = vsub.f32 %v10974_v46, %v4285_v62  ;;  %v4275_v19 = vand.u32 4294901760, %v4274_v59  ;;  %v4310_v59 = vsub.f32 %v11021_v32, %v4309_v60 }
 0x175   :  { %4098 = vmatpush1.msra.mxu1 %v10776_v24  ;;  %4131 = vmatprep.mubr.f32.mxu1 %v12967_v0  ;;  %v4292_v24 = vsub.f32 %v10979_v18, %v4291_v22  ;;  %v4281_v29 = vand.u32 4294901760, %v4280_v49  ;;  %v4299_v49 = vand.u32 4294901760, %v4298_v14 }
 0x176   :  { %4170 = vmatpush1.msra.mxu0 %v10946_v23  ;;  %4133 = vmatmul.mubr.f32.vlgmr.msra.gmra.mxu1 %v9506_v7  ;;  %v4311_v14 = vand.u32 4294901760, %v4310_v59  ;;  %v11104_v59 = vpop.f32.mrf.mxu0 }
 0x177   :  { %4172 = vmatprep.subr.mxu0 %v10951_v25  ;;  %4252 = vmatprep.subr.mxu1 %v4251_v37  ;;  %v4287_v37 = vand.u32 4294901760, %v4286_v35  ;;  %v4293_v42 = vand.u32 4294901760, %v4292_v24  ;;  %v12966_v35 = vand.u32 4294901760, %v11062_v33  ;;  %v4305_v24 = vand.u32 4294901760, %v4304_v50 }
 0x178   :  { %4174 = vmatpush1.msra.mxu0 %v10970_v17  ;;  %4258 = vmatpush1.msra.mxu1 %v4257_v56  ;;  %v4333_v56 = vand.u32 4294901760, %v11058_v41 }
 0x179   :  { %4176 = vmatprep.subr.mxu0 %v10981_v3  ;;  %4264 = vmatprep.subr.mxu1 %v4263_v55  ;;  %v4316_v55 = vsub.f32 %v11026_v10, %v4315_v26 }
 0x17a   :  { %4178 = vmatpush1.msra.mxu0 %v10986_v28  ;;  %4270 = vmatpush1.msra.mxu1 %v4269_v63  ;;  %v4322_v63 = vsub.f32 %v11040_v47, %v12965_v31 }
 0x17b   :  { %4180 = vmatprep.subr.mxu0 %v10998_v48  ;;  %4276 = vmatprep.subr.mxu1 %v4275_v19  ;;  %v4328_v19 = vsub.f32 %v11045_v20, %v4327_v44  ;;  %v4317_v31 = vand.u32 4294901760, %v4316_v55 }
 0x17c   :  { %4182 = vmatpush1.msra.mxu0 %v11009_v8  ;;  %4282 = vmatpush1.msra.mxu1 %v4281_v29  ;;  %v4334_v29 = vsub.f32 %v11058_v41, %v4333_v56  ;;  %v4323_v50 = vand.u32 4294901760, %v4322_v63  ;;  %v11110_v63 = vpop.f32.mrf.mxu0 }
 0x17d   :  { %4184 = vmatprep.subr.mxu0 %v11017_v43  ;;  %4288 = vmatprep.subr.mxu1 %v4287_v37  ;;  %v4340_v37 = vsub.f32 %v11062_v33, %v12966_v35 }
 0x17e   :  { %4186 = vmatpush1.msra.mxu0 %v11031_v12  ;;  %4294 = vmatpush1.msra.mxu1 %v4293_v42  ;;  %v4329_v42 = vand.u32 4294901760, %v4328_v19 }
 0x17f   :  { %4219 = vmatprep.mubr.f32.mxu0 %v12967_v0  ;;  %4300 = vmatprep.subr.mxu1 %v4299_v49  ;;  %v4335_v49 = vand.u32 4294901760, %v4334_v29  ;;  %v4341_v55 = vand.u32 4294901760, %v4340_v37 }
 0x180   :  { %4401 = vmatprep.subr.mxu0 %v10906_v45  ;;  %4225 = vmatmul.mubr.f32.vlgmr.msra.gmra.mxu0 %v9569_v15 }
 0x181   :  { %4306 = vmatpush1.msra.mxu1 %v4305_v24  ;;  %4404 = vmatpush1.msra.mxu0 %v10927_v1  ;;  %v11112_v24 = vpop.f32.mrf.mxu1 }
 0x182   :  { %4312 = vmatprep.subr.mxu1 %v4311_v14  ;;  %4407 = vmatprep.subr.mxu0 %v10938_v54 }
 0x183   :  { %4318 = vmatpush1.msra.mxu1 %v4317_v31  ;;  %4410 = vmatpush1.msra.mxu0 %v10944_v40  ;;  %v11116_v31 = vpop.f32.mrf.mxu0  ;;  %v11122_v19 = vpop.f32.mrf.mxu1  ;;  %v218_v40 = vld [vmem:[#allocation5 + $0x528] sm:$0xff] }
 0x184   :  { %4324 = vmatprep.subr.mxu1 %v4323_v50  ;;  %4413 = vmatprep.subr.mxu0 %v10954_v57  ;;  %v217_v57 = vld [vmem:[#allocation5 + $0x520] sm:$0xff] }
 0x185   :  { %4330 = vmatpush1.msra.mxu1 %v4329_v42  ;;  %4416 = vmatpush1.msra.mxu0 %v10960_v9  ;;  %v11128_v14 = vpop.f32.mrf.mxu0  ;;  %v11130_v29 = vpop.f32.mrf.mxu1 }
 0x186   :  { %4336 = vmatprep.subr.mxu1 %v4335_v49  ;;  %4419 = vmatprep.subr.mxu0 %v10974_v46  ;;  %v11198_v46 = vand.u32 4294901760, %v218_v40 }
 0x187   :  { %4342 = vmatpush1.msra.mxu1 %v4341_v55  ;;  %4375 = vmatprep.mubr.f32.mxu1 %v12967_v0  ;;  %v11136_v37 = vpop.f32.mrf.mxu0  ;;  %v11142_v50 = vpop.f32.mrf.mxu1  ;;  %v243_v55 = vld [vmem:[#allocation5 + $0x5f0] sm:$0xff] }
 0x188   :  { %4422 = vmatpush1.msra.mxu0 %v10979_v18  ;;  %4377 = vmatmul.mubr.f32.vlgmr.msra.gmra.mxu1 %v9506_v7  ;;  %v11171_v1 = vand.u32 4294901760, %v243_v55  ;;  %13084 = vst [vmem:[#allocation17_spill] sm:$0xff] %v11198_v46  ;;  %v11205_v18 = vand.u32 4294901760, %v217_v57 }
 0x189   :  { %4425 = vmatprep.subr.mxu0 %v10990_v38  ;;  %4505 = vmatprep.subr.mxu1 %v10890_v58  ;;  %v11148_v42 = vpop.f32.mrf.mxu0  ;;  %v11150_v49 = vpop.f32.mrf.mxu1 }
 0x18a   :  { %4428 = vmatpush1.msra.mxu0 %v11004_v27  ;;  %4507 = vmatpush1.msra.mxu1 %v10903_v61  ;;  %13082 = vst [vmem:[#allocation15_spill] sm:$0xff] %v11171_v1  ;;  %13085 = vst [vmem:[#allocation18_spill] sm:$0xff] %v11205_v18 }
 0x18b   :  { %4431 = vmatprep.subr.mxu0 %v11021_v32  ;;  %4509 = vmatprep.subr.mxu1 %v10911_v6  ;;  %v11158_v35 = vpop.f32.mrf.mxu0  ;;  %v11166_v45 = vpop.f32.mrf.mxu1  ;;  %v143_v32 = vld [vmem:[#allocation5 + $0x2d0] sm:$0xff] }
 0x18c   :  { %4434 = vmatpush1.msra.mxu0 %v11026_v10  ;;  %4511 = vmatpush1.msra.mxu1 %v10916_v11  ;;  %v11231_v10 = vsub.f32 %v218_v40, %v11198_v46  ;;  %v118_v40 = vld [vmem:[#allocation5 + $0x208] sm:$0xff] }
 0x18d   :  { %4437 = vmatprep.subr.mxu0 %v11040_v47  ;;  %4513 = vmatprep.subr.mxu1 %v10921_v5  ;;  %v11176_v54 = vpop.f32.mrf.mxu0 }
 0x18e   :  { %4440 = vmatpush1.msra.mxu0 %v11045_v20  ;;  %4515 = vmatpush1.msra.mxu1 %v10929_v52 }
 0x18f   :  { %4443 = vmatprep.subr.mxu0 %v11058_v41  ;;  %4517 = vmatprep.subr.mxu1 %v10935_v16 }
 0x190   :  { %4446 = vmatpush1.msra.mxu0 %v11062_v33  ;;  %4479 = vmatprep.mubr.f32.mxu0 %v12967_v0 }
 0x191   :  { %4519 = vmatpush1.msra.mxu1 %v10946_v23  ;;  %4482 = vmatmul.mubr.f32.vlgmr.msra.gmra.mxu0 %v9526_v39 }
 0x192   :  { %4521 = vmatprep.subr.mxu1 %v10951_v25  ;;  %4597 = vmatprep.subr.mxu0 %v4249_v4  ;;  %v242_v4 = vld [vmem:[#allocation5 + $0x5e8] sm:$0xff] }
 0x193   :  { %4523 = vmatpush1.msra.mxu1 %v10970_v17  ;;  %4601 = vmatpush1.msra.mxu0 %v4255_v36  ;;  %v11178_v36 = vpop.f32.mrf.mxu1  ;;  %v11190_v9 = vand.u32 4294901760, %v242_v4 }
 0x194   :  { %4525 = vmatprep.subr.mxu1 %v10981_v3  ;;  %4605 = vmatprep.subr.mxu0 %v4261_v53  ;;  %v11185_v53 = vpop.f32.mrf.mxu0 }
 0x195   :  { %4527 = vmatpush1.msra.mxu1 %v10986_v28  ;;  %4609 = vmatpush1.msra.mxu0 %v4267_v21  ;;  %13083 = vst [vmem:[#allocation16_spill] sm:$0xff] %v11190_v9  ;;  %v193_v21 = vld [vmem:[#allocation5 + $0x460] sm:$0xff] }
 0x196   :  { %4529 = vmatprep.subr.mxu1 %v10998_v48  ;;  %4613 = vmatprep.subr.mxu0 %v4273_v13  ;;  %v11193_v13 = vsub.f32 %v243_v55, %v11171_v1  ;;  %v11210_v38 = vand.u32 4294901760, %v193_v21 }
 0x197   :  { %4531 = vmatpush1.msra.mxu1 %v11009_v8  ;;  %4617 = vmatpush1.msra.mxu0 %v4279_v30  ;;  %v192_v30 = vld [vmem:[#allocation5 + $0x458] sm:$0xff] }
 0x198   :  { %4533 = vmatprep.subr.mxu1 %v11017_v43  ;;  %4621 = vmatprep.subr.mxu0 %v4285_v62  ;;  %v11200_v62 = vpop.f32.mrf.mxu1  ;;  %13086 = vst [vmem:[#allocation19_spill] sm:$0xff] %v11210_v38  ;;  %v11222_v27 = vand.u32 4294901760, %v192_v30 }
 0x199   :  { %4535 = vmatpush1.msra.mxu1 %v11031_v12  ;;  %4568 = vmatprep.mubr.f32.mxu1 %v12967_v0 }
 0x19a   :  { %4625 = vmatpush1.msra.mxu0 %v4291_v22  ;;  %4572 = vmatmul.mubr.f32.vlgmr.msra.gmra.mxu1 %v9540_v51  ;;  %v168_v22 = vld [vmem:[#allocation5 + $0x398] sm:$0xff]  ;;  %v11214_v55 = vpop.f32.mrf.mxu1  ;;  %13087 = vst [vmem:[#allocation20_spill] sm:$0xff] %v11222_v27 }
 0x19b   :  { %4629 = vmatprep.subr.mxu0 %v4297_v34  ;;  %4715 = vmatprep.subr.mxu1 %v10890_v58  ;;  %v167_v58 = vld [vmem:[#allocation5 + $0x390] sm:$0xff]  ;;  %v11212_v34 = vpop.f32.mrf.mxu0 }
 0x19c   :  { %4633 = vmatpush1.msra.mxu0 %v4303_v2  ;;  %4717 = vmatpush1.msra.mxu1 %v10903_v61  ;;  %v11220_v61 = vsub.f32 %v242_v4, %v11190_v9  ;;  %v13088_v2 = vand.u32 4294901760, %v11040_v47  ;;  %v11241_v4 = vand.u32 4294901760, %v167_v58  ;;  %v142_v47 = vld [vmem:[#allocation5 + $0x2c8] sm:$0xff]  ;;  %v11251_v20 = vpop.f32.mrf.mxu1 }
 0x19d   :  { %4637 = vmatprep.subr.mxu0 %v4309_v60  ;;  %4719 = vmatprep.subr.mxu1 %v10911_v6  ;;  %v12969_v6 = vand.u32 4294901760, %v11193_v13  ;;  %v11228_v60 = vand.u32 4294901760, %v168_v22 }
 0x19e   :  { %4641 = vmatpush1.msra.mxu0 %v4315_v26  ;;  %4721 = vmatpush1.msra.mxu1 %v10916_v11  ;;  %v11233_v26 = vpop.f32.mrf.mxu0  ;;  %v11239_v11 = vsub.f32 %v217_v57, %v11205_v18  ;;  %13092 = vst [vmem:[#allocation24_spill] sm:$0xff] %v11241_v4  ;;  %v11267_v57 = vand.u32 4294901760, %v142_v47 }
 0x19f   :  { %4645 = vmatprep.subr.mxu0 %v13088_v2  ;;  %4723 = vmatprep.subr.mxu1 %v10921_v5  ;;  %13089 = vst [vmem:[#allocation21_spill] sm:$0xff] %v11228_v60  ;;  %13090 = vst [vmem:[#allocation22_spill] sm:$0xff] %v11233_v26  ;;  %v11246_v5 = vand.u32 4294901760, %v143_v32  ;;  %v11249_v2 = vsub.f32 %v193_v21, %v11210_v38  ;;  %v93_v21 = vld [vmem:[#allocation5 + $0x140] sm:$0xff] }
 0x1a0   :  { %4649 = vmatpush1.msra.mxu0 %v4327_v44  ;;  %4725 = vmatpush1.msra.mxu1 %v10929_v52  ;;  %13091 = vst [vmem:[#allocation23_spill] sm:$0xff] %v11239_v11  ;;  %v13095_v52 = vand.u32 4294901760, %v11062_v33  ;;  %v11257_v44 = vsub.f32 %v192_v30, %v11222_v27  ;;  %13096 = vst [vmem:[#allocation27_spill] sm:$0xff] %v11267_v57  ;;  %v11271_v30 = vsub.f32 %v168_v22, %v11228_v60  ;;  %v92_v33 = vld [vmem:[#allocation5 + $0x138] sm:$0xff] }
 0x1a1   :  { %4653 = vmatprep.subr.mxu0 %v4333_v56  ;;  %4727 = vmatprep.subr.mxu1 %v10935_v16  ;;  %13093 = vst [vmem:[#allocation25_spill] sm:$0xff] %v11246_v5  ;;  %13094 = vst [vmem:[#allocation26_spill] sm:$0xff] %v11249_v2  ;;  %v11262_v16 = vsub.f32 %v11193_v13, %v12969_v6  ;;  %v117_v56 = vld [vmem:[#allocation5 + $0x200] sm:$0xff]  ;;  %v11282_v6 = vand.u32 4294901760, %v118_v40 }
 0x1a2   :  { %4657 = vmatpush1.msra.mxu0 %v13095_v52  ;;  %4690 = vmatprep.mubr.f32.mxu0 %v12967_v0  ;;  %v11273_v52 = vpop.f32.mrf.mxu0  ;;  %v11275_v0 = vpop.f32.mrf.mxu1  ;;  %v11287_v22 = vand.u32 4294901760, %v117_v56 }
 0x1a3   :  { %4729 = vmatpush1.msra.mxu1 %v10946_v23  ;;  %4692 = vmatmul.mubr.f32.vlgmr.msra.gmra.mxu0 %v9506_v7  ;;  %13097 = vst [vmem:[#allocation28_spill] sm:$0xff] %v11275_v0  ;;  %v11280_v23 = vsub.f32 %v167_v58, %v11241_v4  ;;  %v4898_v51 = vand.u32 4294901760, %v11262_v16  ;;  %v67_v0 = vld [vmem:[#allocation5 + $0x70] sm:$0xff] }
 0x1a4   :  { %4731 = vmatprep.subr.mxu1 %v10951_v25  ;;  %4803 = vmatprep.subr.mxu0 %v11171_v1  ;;  %v68_v25 = vld [vmem:[#allocation5 + $0x78] sm:$0xff]  ;;  %v11291_v1 = vsub.f32 %v143_v32, %v11246_v5  ;;  %v11293_v58 = vpop.f32.mrf.mxu0  ;;  %v11307_v32 = vsub.f32 %v142_v47, %v11267_v57  ;;  %v11315_v26 = vpop.f32.mrf.mxu1 }
 0x1a5   :  { %4733 = vmatpush1.msra.mxu1 %v10970_v17  ;;  %4805 = vmatpush1.msra.mxu0 %v11190_v9  ;;  %13098 = vst [vmem:[#allocation29_spill] sm:$0xff] %v11293_v58  ;;  %v13099_v17 = vand.u32 4294901760, %v11220_v61  ;;  %v11301_v9 = vand.u32 4294901760, %v93_v21  ;;  %13101 = vst [vmem:[#allocation30_spill] sm:$0xff] %v11315_v26  ;;  %v11322_v47 = vand.u32 4294901760, %v68_v25  ;;  %v11336_v26 = vand.u32 4294901760, %v67_v0 }
 0x1a6   :  { %4735 = vmatprep.subr.mxu1 %v10981_v3  ;;  %4807 = vmatprep.subr.mxu0 %v11198_v46  ;;  %v13100_v3 = vand.u32 4294901760, %v11231_v10  ;;  %v11312_v46 = vand.u32 4294901760, %v92_v33  ;;  %v11344_v58 = vpop.f32.mrf.mxu1 }
 0x1a7   :  { %v4903_v41 = vsub.f32 %v11220_v61, %v13099_v17  ;;  %4737 = vmatpush1.msra.mxu1 %v10986_v28  ;;  %4809 = vmatpush1.msra.mxu0 %v11205_v18  ;;  %v13102_v28 = vand.u32 4294901760, %v11239_v11  ;;  %v11331_v17 = vsub.f32 %v117_v56, %v11287_v22  ;;  %13105 = vst [vmem:[#allocation31_spill] sm:$0xff] %v11344_v58  ;;  %v13106_v56 = vand.u32 4294901760, %v11257_v44 }
 0x1a8   :  { %v4909_v16 = vsub.f32 %v11231_v10, %v13100_v3  ;;  %4739 = vmatprep.subr.mxu1 %v10998_v48  ;;  %4811 = vmatprep.subr.mxu0 %v11210_v38  ;;  %v11326_v3 = vsub.f32 %v118_v40, %v11282_v6  ;;  %v13103_v48 = vand.u32 4294901760, %v11249_v2  ;;  %v11342_v40 = vpop.f32.mrf.mxu0 }
 0x1a9   :  { %v4915_v39 = vsub.f32 %v11239_v11, %v13102_v28  ;;  %4741 = vmatpush1.msra.mxu1 %v11009_v8  ;;  %4813 = vmatpush1.msra.mxu0 %v11222_v27  ;;  %v13104_v11 = vlaneseq  ;;  %v4904_v8 = vand.u32 4294901760, %v4903_v41  ;;  %v11352_v27 = vsub.f32 %v93_v21, %v11301_v9 }
 0x1aa   :  { %v4921_v38 = vsub.f32 %v11249_v2, %v13103_v48  ;;  %4743 = vmatprep.subr.mxu1 %v11017_v43  ;;  %4815 = vmatprep.subr.mxu0 %v11228_v60  ;;  %v4927_v48 = vsub.f32 %v11257_v44, %v13106_v56  ;;  %v13107_v28 = vmov 0.0   ;;  %v11357_v2 = vsub.f32 %v92_v33, %v11312_v46  ;;  %v11363_v58 = vpop.f32.mrf.mxu0 }
 0x1ab   :  { %v11340_v18 = vshrl.u32 %v13104_v11, 7  ;;  %4745 = vmatpush1.msra.mxu1 %v11031_v12  ;;  %4778 = vmatprep.mubr.f32.mxu1 %v13107_v28  ;;  %v4910_v11 = vand.u32 4294901760, %v4909_v16  ;;  %v13108_v43 = vand.u32 4294901760, %v11271_v30  ;;  %v4916_v21 = vand.u32 4294901760, %v4915_v39 }
 0x1ac   :  { %4817 = vmatpush1.msra.mxu0 %v11241_v4  ;;  %4780 = vmatmul.mubr.f32.vlgmr.msra.gmra.mxu1 %v9506_v7  ;;  %v13109_v12 = vand.u32 4294901760, %v11280_v23  ;;  %v11372_v56 = vsub.f32 %v68_v25, %v11322_v47  ;;  %v11376_v41 = vsub.f32 %v67_v0, %v11336_v26  ;;  %v13110_v4 = vand.u32 4294901760, %v11291_v1  ;;  %v1792_v25 = vpop.f32.mrf.mxu1 }
 0x1ad   :  { %v4933_v60 = vsub.f32 %v11271_v30, %v13108_v43  ;;  %4819 = vmatprep.subr.mxu0 %v11246_v5  ;;  %4899 = vmatprep.subr.mxu1 %v4898_v51  ;;  %v4922_v43 = vand.u32 4294901760, %v4921_v38  ;;  %v11385_v33 = vsub.s32 1, %v11340_v18  ;;  %v4928_v51 = vand.u32 4294901760, %v4927_v48  ;;  %v11407_v48 = vld [vmem:[#allocation7] sm:$0xff] }
 0x1ae   :  { %v4939_v16 = vsub.f32 %v11280_v23, %v13109_v12  ;;  %v4945_v39 = vsub.f32 %v11291_v1, %v13110_v4  ;;  %v499_v12 = vadd.f32 %v11122_v19, %v11110_v63  ;;  %4821 = vmatpush1.msra.mxu0 %v11267_v57  ;;  %4905 = vmatpush1.msra.mxu1 %v4904_v8  ;;  %v13003_v0 = vand.u32 4294901760, %v11352_v27  ;;  %v11397_v57 = vpop.f32.mrf.mxu0  ;;  %v11399_v8 = vpop.f32.mrf.mxu1 }
 0x1af   :  { %13111 = vst [vmem:[#allocation32_spill] sm:$0xff] %v11385_v33  ;;  %v497_v38 = vadd.f32 %v11112_v24, %v11104_v59  ;;  %4823 = vmatprep.subr.mxu0 %v11282_v6  ;;  %4911 = vmatprep.subr.mxu1 %v4910_v11  ;;  %v4934_v4 = vand.u32 4294901760, %v4933_v60  ;;  %v13112_v7 = vand.u32 4294901760, %v11307_v32  ;;  %v13113_v24 = vand.u32 4294901760, %v11326_v3 }
 0x1b0   :  { %v604_v5 = vadd.f32 %v11128_v14, %v499_v12  ;;  %4825 = vmatpush1.msra.mxu0 %v11287_v22  ;;  %4917 = vmatpush1.msra.mxu1 %v4916_v21  ;;  %v4940_v59 = vand.u32 4294901760, %v4939_v16  ;;  %v4946_v14 = vand.u32 4294901760, %v4945_v39  ;;  %v13114_v12 = vand.u32 4294901760, %v11331_v17 }
 0x1b1   :  { %v4951_v63 = vsub.f32 %v11307_v32, %v13112_v7  ;;  %v4957_v60 = vsub.f32 %v11326_v3, %v13113_v24  ;;  %v602_v7 = vadd.f32 %v11116_v31, %v497_v38  ;;  %4827 = vmatprep.subr.mxu0 %v11301_v9  ;;  %4923 = vmatprep.subr.mxu1 %v4922_v43  ;;  %v11416_v24 = vsub.s32 0, %v11340_v18  ;;  %v11420_v38 = vpop.f32.mrf.mxu0 }
 0x1b2   :  { %v4963_v19 = vsub.f32 %v11331_v17, %v13114_v12  ;;  %v694_v16 = vadd.f32 %v11142_v50, %v604_v5  ;;  %v8573_v31 = vrot.slane %v11407_v48, %v11385_v33  ;;  %4829 = vmatpush1.msra.mxu0 %v11312_v46  ;;  %4929 = vmatpush1.msra.mxu1 %v4928_v51  ;;  %v13116_v12 = vand.u32 4294901760, %v11357_v2  ;;  %v1987_v33 = vpop.f32.mrf.mxu1 }
 0x1b3   :  { %13115 = vst [vmem:[#allocation33_spill] sm:$0xff] %v11416_v24  ;;  %v4969_v43 = vsub.f32 %v11352_v27, %v13003_v0  ;;  %v692_v39 = vadd.f32 %v11130_v29, %v602_v7  ;;  %v1146_v50 = vadd.f32 %v11200_v62, %v11176_v54  ;;  %4831 = vmatprep.subr.mxu0 %v11322_v47  ;;  %v4952_v5 = vand.u32 4294901760, %v4951_v63 }
 0x1b4   :  { %4935 = vmatprep.subr.mxu1 %v4934_v4  ;;  %v4975_v21 = vsub.f32 %v11357_v2, %v13116_v12  ;;  %v814_v11 = vadd.f32 %v11148_v42, %v694_v16  ;;  %v1144_v51 = vadd.f32 %v11178_v36, %v11158_v35  ;;  %4833 = vmatpush1.msra.mxu0 %v11336_v26  ;;  %v4958_v29 = vand.u32 4294901760, %v4957_v60  ;;  %v2107_v16 = vpop.f32.mrf.mxu0  ;;  %v2193_v12 = vpop.f32.mrf.mxu1 }
 0x1b5   :  { %4941 = vmatpush1.msra.mxu1 %v4940_v59  ;;  %v13117_v54 = vand.u32 4294901760, %v11372_v56  ;;  %v1251_v4 = vadd.f32 %v11212_v34, %v1146_v50  ;;  %v11442_v63 = vsub.s32 3, %v11340_v18  ;;  %4866 = vmatprep.mubr.f32.mxu0 %v13107_v28  ;;  %v4964_v42 = vand.u32 4294901760, %v4963_v19 }
 0x1b6   :  { %4947 = vmatprep.subr.mxu1 %v4946_v14  ;;  %v13119_v35 = vand.u32 4294901760, %v11376_v41  ;;  %v812_v59 = vadd.f32 %v11136_v37, %v692_v39  ;;  %v902_v60 = vadd.f32 %v11166_v45, %v814_v11  ;;  %v1249_v7 = vadd.f32 %v11185_v53, %v1144_v51  ;;  %5048 = vmatprep.subr.mxu0 %v11193_v13  ;;  %v13121_v51 = vld [vmem:[#allocation29_spill] sm:$0xff] }
 0x1b7   :  { %v4981_v62 = vsub.f32 %v11372_v56, %v13117_v54  ;;  %13118 = vst [vmem:[#allocation34_spill] sm:$0xff] %v11442_v63  ;;  %4872 = vmatmul.mubr.f32.vlgmr.msra.gmra.mxu0 %v9569_v15  ;;  %v4970_v34 = vand.u32 4294901760, %v4969_v43  ;;  %v8569_v19 = vrot.slane %v11407_v48, %v11416_v24  ;;  %v1341_v14 = vadd.f32 %v11251_v20, %v1251_v4  ;;  %v2285_v43 = vpop.f32.mrf.mxu0  ;;  %v13124_v54 = vld [vmem:[#allocation22_spill] sm:$0xff] }
 0x1b8   :  { %v4987_v36 = vsub.f32 %v11376_v41, %v13119_v35  ;;  %v1793_v50 = vadd.f32 %v1792_v25, %v11342_v40  ;;  %4953 = vmatpush1.msra.mxu1 %v4952_v5  ;;  %5051 = vmatpush1.msra.mxu0 %v11220_v61  ;;  %v4976_v37 = vand.u32 4294901760, %v4975_v21  ;;  %v900_v45 = vadd.f32 %v11150_v49, %v812_v59  ;;  %v13122_v40 = vld [vmem:[#allocation31_spill] sm:$0xff]  ;;  %v2195_v35 = vpop.f32.mrf.mxu1  ;;  %v13127_v59 = vld [vmem:[#allocation30_spill] sm:$0xff] }
 0x1b9   :  { %v1339_v53 = vadd.f32 %v11214_v55, %v1249_v7  ;;  %v11461_v11 = vsub.s32 2, %v11340_v18  ;;  %4959 = vmatprep.subr.mxu1 %v4958_v29  ;;  %5054 = vmatprep.subr.mxu0 %v11231_v10  ;;  %v4982_v39 = vand.u32 4294901760, %v4981_v62  ;;  %v1461_v20 = vadd.f32 %v11273_v52, %v1341_v14  ;;  %v13123_v21 = vld [vmem:[#allocation23_spill] sm:$0xff]  ;;  %v13126_v52 = vld [vmem:[#allocation26_spill] sm:$0xff] }
 0x1ba   :  { %v1791_v25 = vadd.f32 %v13122_v40, %v13121_v51  ;;  %v1898_v5 = vadd.f32 %v11397_v57, %v1793_v50  ;;  %4965 = vmatpush1.msra.mxu1 %v4964_v42  ;;  %5057 = vmatpush1.msra.mxu0 %v13123_v21  ;;  %v4988_v49 = vand.u32 4294901760, %v4987_v36  ;;  %v8692_v55 = vsub.f32 %v902_v60, %v8573_v31  ;;  %v2287_v60 = vpop.f32.mrf.mxu0  ;;  %v2437_v14 = vpop.f32.mrf.mxu1 }
 0x1bb   :  { %13120 = vst [vmem:[#allocation35_spill] sm:$0xff] %v11461_v11  ;;  %v1459_v4 = vadd.f32 %v13124_v54, %v1339_v53  ;;  %v8581_v29 = vrot.slane %v11407_v48, %v11442_v63  ;;  %v11473_v62 = vsub.s32 5, %v11340_v18  ;;  %4971 = vmatprep.subr.mxu1 %v4970_v34  ;;  %5060 = vmatprep.subr.mxu0 %v13126_v52  ;;  %v13128_v34 = vld [vmem:[#allocation28_spill] sm:$0xff]  ;;  %v13145_v63 = vand.u32 4294901760, %v11220_v61 }
 0x1bc   :  { %v1549_v7 = vadd.f32 %v13127_v59, %v1461_v20  ;;  %v1896_v57 = vadd.f32 %v11363_v58, %v1791_v25  ;;  %v1988_v42 = vadd.f32 %v1987_v33, %v1898_v5  ;;  %4977 = vmatpush1.msra.mxu1 %v4976_v37  ;;  %5063 = vmatpush1.msra.mxu0 %v11257_v44  ;;  %v11485_v58 = vsub.s32 4, %v11340_v18  ;;  %v13130_v37 = vld [vmem:[#allocation12_spill] sm:$0xff]  ;;  %v2439_v5 = vpop.f32.mrf.mxu1 }
 0x1bd   :  { %13125 = vst [vmem:[#allocation29_spill] sm:$0xff] %v11473_v62  ;;  %v8691_v31 = vsub.f32 %v900_v45, %v8569_v19  ;;  %v8577_v36 = vrot.slane %v11407_v48, %v11461_v11  ;;  %4983 = vmatprep.subr.mxu1 %v4982_v39  ;;  %5066 = vmatprep.subr.mxu0 %v11271_v30  ;;  %v8717_v33 = vmul.f32 -48.019997, %v8692_v55  ;;  %v2542_v45 = vpop.f32.mrf.mxu0  ;;  %v13132_v25 = vld [vmem:[#allocation16_spill] sm:$0xff]  ;;  %v13147_v61 = vand.u32 4294901760, %v13123_v21 }
 0x1be   :  { %v1547_v50 = vadd.f32 %v13128_v34, %v1459_v4  ;;  %v1986_v53 = vadd.f32 %v11399_v8, %v1896_v57  ;;  %v2108_v20 = vadd.f32 %v2107_v16, %v1988_v42  ;;  %13129 = vst [vmem:[#allocation31_spill] sm:$0xff] %v11485_v58  ;;  %4989 = vmatpush1.msra.mxu1 %v4988_v49  ;;  %v13131_v16 = vld [vmem:[#allocation15_spill] sm:$0xff] }
 0x1bf   :  { %5022 = vmatprep.mubr.f32.mxu1 %v13107_v28  ;;  %v8589_v19 = vrot.slane %v11407_v48, %v11473_v62  ;;  %5069 = vmatpush1.msra.mxu0 %v11280_v23  ;;  %v8694_v39 = vsub.f32 %v1549_v7, %v8581_v29  ;;  %v8716_v40 = vmul.f32 -48.019997, %v8691_v31  ;;  %v8585_v4 = vrot.slane %v11407_v48, %v11485_v58  ;;  %v13133_v29 = vld [vmem:[#allocation17_spill] sm:$0xff]  ;;  %v2544_v59 = vpop.f32.mrf.mxu0  ;;  %v2632_v7 = vpop.f32.mrf.mxu1  ;;  %v13140_v58 = vld [vmem:[#allocation24_spill] sm:$0xff] }
 0x1c0   :  { %5024 = vmatmul.mubr.f32.vlgmr.msra.gmra.mxu1 %v13130_v37  ;;  %v2106_v51 = vadd.f32 %v11420_v38, %v1986_v53  ;;  %v2196_v8 = vadd.f32 %v2195_v35, %v2108_v20  ;;  %5072 = vmatprep.subr.mxu0 %v11291_v1  ;;  %v8693_v49 = vsub.f32 %v1547_v50, %v8577_v36  ;;  %v13134_v35 = vld [vmem:[#allocation18_spill] sm:$0xff]  ;;  %v13136_v50 = vld [vmem:[#allocation20_spill] sm:$0xff] }
 0x1c1   :  { %5152 = vmatprep.subr.mxu1 %v13131_v16  ;;  %5075 = vmatpush1.msra.mxu0 %v11307_v32  ;;  %v8742_v38 = vmul.f32 %v8717_v33, %v8692_v55  ;;  %v8719_v57 = vmul.f32 -48.019997, %v8694_v39  ;;  %v2438_v34 = vadd.f32 %v2437_v14, %v2285_v43  ;;  %v8741_v36 = vmul.f32 %v8716_v40, %v8691_v31  ;;  %v2752_v53 = vpop.f32.mrf.mxu0  ;;  %v2634_v31 = vpop.f32.mrf.mxu1  ;;  %v219_v21 = vld [vmem:[#allocation5 + $0x530] sm:$0xff] }
 0x1c2   :  { %5154 = vmatpush1.msra.mxu1 %v13132_v25  ;;  %v2194_v54 = vadd.f32 %v2193_v12, %v2106_v51  ;;  %5078 = vmatprep.subr.mxu0 %v11326_v3  ;;  %v8696_v42 = vsub.f32 %v2196_v8, %v8589_v19  ;;  %v13135_v12 = vld [vmem:[#allocation19_spill] sm:$0xff]  ;;  %v11508_v55 = vsub.s32 6, %v11340_v18  ;;  %v8718_v20 = vmul.f32 -48.019997, %v8693_v49  ;;  %v13138_v19 = vld [vmem:[#allocation21_spill] sm:$0xff] }
 0x1c3   :  { %5156 = vmatprep.subr.mxu1 %v13133_v29  ;;  %5081 = vmatpush1.msra.mxu0 %v11331_v17  ;;  %v2440_v51 = vadd.f32 %v2439_v5, %v2287_v60  ;;  %v2543_v43 = vadd.f32 %v2542_v45, %v2438_v34  ;;  %v8768_v14 = vmul.f32 1.442695, %v8742_v38  ;;  %v11515_v8 = vsub.s32 7, %v11340_v18  ;;  %v13142_v45 = vld [vmem:[#allocation25_spill] sm:$0xff]  ;;  %v2754_v34 = vpop.f32.mrf.mxu0 }
 0x1c4   :  { %5158 = vmatpush1.msra.mxu1 %v13134_v35  ;;  %5084 = vmatprep.subr.mxu0 %v11352_v27  ;;  %13137 = vst [vmem:[#allocation23_spill] sm:$0xff] %v11508_v55  ;;  %v8695_v33 = vsub.f32 %v2194_v54, %v8585_v4  ;;  %v8744_v40 = vmul.f32 %v8719_v57, %v8694_v39  ;;  %v8721_v0 = vmul.f32 -48.019997, %v8696_v42  ;;  %v13141_v54 = vld [vmem:[#allocation13_spill] sm:$0xff]  ;;  %v8766_v62 = vmul.f32 1.442695, %v8741_v36 }
 0x1c5   :  { %5160 = vmatprep.subr.mxu1 %v13135_v12  ;;  %5087 = vmatpush1.msra.mxu0 %v11357_v2  ;;  %13139 = vst [vmem:[#allocation22_spill] sm:$0xff] %v11515_v8  ;;  %v2545_v60 = vadd.f32 %v2544_v59, %v2440_v51  ;;  %v2633_v5 = vadd.f32 %v2632_v7, %v2543_v43  ;;  %v245_v4 = vld [vmem:[#allocation5 + $0x600] sm:$0xff]  ;;  %v13143_v38 = vand.u32 4294901760, %v11193_v13  ;;  %v13144_v57 = vld [vmem:[#allocation27_spill] sm:$0xff]  ;;  %9208 = vpow2.f32 %v8768_v14 }
 0x1c6   :  { %5162 = vmatpush1.msra.mxu1 %v13136_v50  ;;  %5090 = vmatprep.subr.mxu0 %v11372_v56  ;;  %v8593_v24 = vrot.slane %v11407_v48, %v11508_v55  ;;  %v8743_v11 = vmul.f32 %v8718_v20, %v8693_v49  ;;  %v8720_v39 = vmul.f32 -48.019997, %v8695_v33  ;;  %v13146_v36 = vand.u32 4294901760, %v11231_v10 }
 0x1c7   :  { %5164 = vmatprep.subr.mxu1 %v13138_v19  ;;  %5093 = vmatpush1.msra.mxu0 %v11376_v41  ;;  %v2635_v59 = vadd.f32 %v2634_v31, %v2545_v60  ;;  %v2753_v7 = vadd.f32 %v2752_v53, %v2633_v5  ;;  %v11530_v13 = vand.u32 4294901760, %v245_v4  ;;  %v8597_v49 = vrot.slane %v11407_v48, %v11515_v8  ;;  %v220_v48 = vld [vmem:[#allocation5 + $0x538] sm:$0xff] }
 0x1c8   :  { %5126 = vmatprep.mubr.f32.mxu0 %v13107_v28  ;;  %5166 = vmatpush1.msra.mxu1 %v13140_v58  ;;  %v8772_v20 = vmul.f32 1.442695, %v8744_v40  ;;  %v8746_v43 = vmul.f32 %v8721_v0, %v8696_v42  ;;  %9210 = vpow2.f32 %v8766_v62  ;;  %v13148_v10 = vand.u32 4294901760, %v13126_v52 }
 0x1c9   :  { %5129 = vmatmul.mubr.f32.vlgmr.msra.gmra.mxu0 %v13141_v54  ;;  %5168 = vmatprep.subr.mxu1 %v13142_v45  ;;  %v2755_v53 = vadd.f32 %v2754_v34, %v2635_v59  ;;  %v8770_v60 = vmul.f32 1.442695, %v8743_v11  ;;  %v8745_v5 = vmul.f32 %v8720_v39, %v8695_v33  ;;  %v13149_v0 = vand.u32 4294901760, %v11257_v44  ;;  %v195_v44 = vld [vmem:[#allocation5 + $0x470] sm:$0xff]  ;;  %v13152_v39 = vld [vmem:[#allocation14_spill] sm:$0xff] }
 0x1ca   :  { %5244 = vmatprep.subr.mxu0 %v13143_v38  ;;  %5170 = vmatpush1.msra.mxu1 %v13144_v57  ;;  %v2840_v51 = vpop.f32.mrf.mxu1  ;;  %v13150_v62 = vand.u32 4294901760, %v11271_v30  ;;  %v11549_v52 = vsub.f32 %v245_v4, %v11530_v13  ;;  %9212 = vpow2.f32 %v8772_v20  ;;  %v8776_v11 = vmul.f32 1.442695, %v8746_v43 }
 0x1cb   :  { %5248 = vmatpush1.msra.mxu0 %v13145_v63  ;;  %5172 = vmatprep.subr.mxu1 %v11282_v6  ;;  %v244_v63 = vld [vmem:[#allocation5 + $0x5f8] sm:$0xff]  ;;  %v2841_v14 = vadd.f32 %v2840_v51, %v2753_v7  ;;  %v13151_v34 = vand.u32 4294901760, %v11280_v23  ;;  %v11556_v30 = vand.u32 4294901760, %v220_v48  ;;  %v11558_v59 = vand.u32 4294901760, %v219_v21 }
 0x1cc   :  { %5252 = vmatprep.subr.mxu0 %v13146_v36  ;;  %5174 = vmatpush1.msra.mxu1 %v11287_v22  ;;  %v2842_v31 = vpop.f32.mrf.mxu1  ;;  %v11546_v38 = vand.u32 4294901760, %v244_v63  ;;  %9214 = vpow2.f32 %v8770_v60  ;;  %v8774_v4 = vmul.f32 1.442695, %v8745_v5  ;;  %v13153_v7 = vand.u32 4294901760, %v11291_v1  ;;  %v194_v36 = vld [vmem:[#allocation5 + $0x468] sm:$0xff]  ;;  %v145_v5 = vld [vmem:[#allocation5 + $0x2e0] sm:$0xff] }
 0x1cd   :  { %5256 = vmatpush1.msra.mxu0 %v13147_v61  ;;  %5176 = vmatprep.subr.mxu1 %v11301_v9  ;;  %v8697_v42 = vsub.f32 %v2841_v14, %v8593_v24  ;;  %v2843_v40 = vadd.f32 %v2842_v31, %v2755_v53  ;;  %v11569_v43 = vand.u32 4294901760, %v195_v44  ;;  %v170_v61 = vld [vmem:[#allocation5 + $0x3a8] sm:$0xff]  ;;  %v169_v53 = vld [vmem:[#allocation5 + $0x3a0] sm:$0xff]  ;;  %v9350_v14 = vmov 1966171168  }
 0x1ce   :  { %5260 = vmatprep.subr.mxu0 %v13148_v10  ;;  %5178 = vmatpush1.msra.mxu1 %v11312_v46  ;;  %v11567_v23 = vsub.f32 %v244_v63, %v11546_v38  ;;  %v8846_v1 = vunpack.c.l.s4 %v9350_v14  ;;  %9216 = vpow2.f32 %v8776_v11  ;;  %v11579_v63 = vsub.f32 %v219_v21, %v11558_v59  ;;  %v119_v11 = vld [vmem:[#allocation5 + $0x210] sm:$0xff] }
 0x1cf   :  { %5264 = vmatpush1.msra.mxu0 %v13149_v0  ;;  %5180 = vmatprep.subr.mxu1 %v11322_v47  ;;  %v8722_v33 = vmul.f32 -48.019997, %v8697_v42  ;;  %v8698_v24 = vsub.f32 %v2843_v40, %v8597_v49  ;;  %v13154_v49 = vand.u32 4294901760, %v11307_v32  ;;  %v13021_v32 = vand.u32 4294901760, %v11549_v52 }
 0x1d0   :  { %5268 = vmatprep.subr.mxu0 %v13150_v62  ;;  %5182 = vmatpush1.msra.mxu1 %v11336_v26  ;;  %v11581_v60 = vand.u32 4294901760, %v194_v36  ;;  %9218 = vpow2.f32 %v8774_v4  ;;  %v11589_v0 = vand.u32 4294901760, %v170_v61  ;;  %v13158_v21 = vand.u32 4294901760, %v11357_v2 }
 0x1d1   :  { %5215 = vmatprep.mubr.f32.mxu1 %v13107_v28  ;;  %5272 = vmatpush1.msra.mxu0 %v13151_v34  ;;  %v8747_v51 = vmul.f32 %v8722_v33, %v8697_v42  ;;  %v8723_v20 = vmul.f32 -48.019997, %v8698_v24  ;;  %v8847_v40 = vunpack.c.0.s8 %v8846_v1  ;;  %v11607_v2 = vsub.f32 %v11549_v52, %v13021_v32  ;;  %v70_v1 = vld [vmem:[#allocation5 + $0x88] sm:$0xff] }
 0x1d2   :  { %5219 = vmatmul.mubr.f32.vlgmr.msra.gmra.mxu1 %v13152_v39  ;;  %5276 = vmatprep.subr.mxu0 %v13153_v7  ;;  %v11597_v62 = vpop.eup %9208  ;;  %v11610_v33 = vsub.f32 %v195_v44, %v11569_v43  ;;  %v95_v7 = vld [vmem:[#allocation5 + $0x150] sm:$0xff] }
 0x1d3   :  { %5362 = vmatprep.subr.mxu1 %v13131_v16  ;;  %5280 = vmatpush1.msra.mxu0 %v13154_v49  ;;  %v13155_v16 = vand.u32 4294901760, %v11326_v3  ;;  %v8778_v10 = vmul.f32 1.442695, %v8747_v51  ;;  %v8748_v31 = vmul.f32 %v8723_v20, %v8698_v24  ;;  %v11584_v3 = vsub.f32 %v220_v48, %v11556_v30 }
 0x1d4   :  { %5364 = vmatpush1.msra.mxu1 %v13132_v25  ;;  %v13156_v25 = vand.u32 4294901760, %v11331_v17  ;;  %v11591_v17 = vand.u32 4294901760, %v169_v53  ;;  %v13016_v48 = vand.u32 4294901760, %v11567_v23  ;;  %v13160_v24 = vand.u32 4294901760, %v11376_v41  ;;  %5337 = vmatprep.mubr.f32.mxu0 %v13107_v28 }
 0x1d5   :  { %5284 = vmatprep.subr.mxu0 %v13155_v16  ;;  %5366 = vmatprep.subr.mxu1 %v13133_v29  ;;  %v13157_v29 = vand.u32 4294901760, %v11352_v27  ;;  %v8780_v42 = vmul.f32 1.442695, %v8748_v31  ;;  %9220 = vpow2.f32 %v8778_v10  ;;  %v13159_v27 = vand.u32 4294901760, %v11372_v56  ;;  %v11621_v4 = vpop.eup %9210  ;;  %v69_v16 = vld [vmem:[#allocation5 + $0x80] sm:$0xff] }
 0x1d6   :  { %5288 = vmatpush1.msra.mxu0 %v13156_v25  ;;  %5368 = vmatpush1.msra.mxu1 %v13134_v35  ;;  %v144_v35 = vld [vmem:[#allocation5 + $0x2d8] sm:$0xff]  ;;  %v11616_v56 = vsub.f32 %v194_v36, %v11581_v60  ;;  %v13015_v34 = vand.u32 4294901760, %v11584_v3  ;;  %v11626_v44 = vsub.f32 %v169_v53, %v11591_v17  ;;  %v13014_v41 = vand.u32 4294901760, %v11579_v63 }
 0x1d7   :  { %5292 = vmatprep.subr.mxu0 %v13157_v29  ;;  %5370 = vmatprep.subr.mxu1 %v13135_v12  ;;  %v11602_v12 = vand.u32 4294901760, %v145_v5  ;;  %9222 = vpow2.f32 %v8780_v42  ;;  %v11630_v51 = vsub.f32 %v170_v61, %v11589_v0  ;;  %v11636_v20 = vand.u32 4294901760, %v119_v11  ;;  %v9213_v31 = vpop.eup %9212 }
 0x1d8   :  { %5296 = vmatpush1.msra.mxu0 %v13158_v21  ;;  %5372 = vmatpush1.msra.mxu1 %v13136_v50  ;;  %v120_v50 = vld [vmem:[#allocation5 + $0x218] sm:$0xff]  ;;  %v11641_v53 = vsub.s32 %v8847_v40, %v11340_v18  ;;  %v5545_v61 = vand.u32 4294901760, %v11607_v2  ;;  %v13020_v14 = vand.u32 4294901760, %v11610_v33  ;;  %v11661_v25 = vand.u32 4294901760, %v95_v7 }
 0x1d9   :  { %5300 = vmatprep.subr.mxu0 %v13159_v27  ;;  %5374 = vmatprep.subr.mxu1 %v13138_v19  ;;  %v11618_v19 = vand.u32 4294901760, %v144_v35  ;;  %v11634_v36 = vand.u32 4294901760, %v120_v50  ;;  %v11651_v10 = vsub.f32 %v145_v5, %v11602_v12  ;;  %v13017_v29 = vand.u32 4294901760, %v11616_v56  ;;  %v9215_v21 = vpop.eup %9214 }
 0x1da   :  { %5304 = vmatpush1.msra.mxu0 %v13160_v24  ;;  %5376 = vmatpush1.msra.mxu1 %v13140_v58  ;;  %v94_v58 = vld [vmem:[#allocation5 + $0x148] sm:$0xff]  ;;  %13161 = vst [vmem:[#allocation26_spill] sm:$0xff] %v11641_v53  ;;  %v13019_v42 = vand.u32 4294901760, %v11626_v44  ;;  %v11676_v40 = vsub.f32 %v119_v11, %v11636_v20  ;;  %v11680_v27 = vand.u32 4294901760, %v69_v16  ;;  %v8842_v11 = vcombine.low %v9215_v21, %v9213_v31 }
 0x1db   :  { %5339 = vmatmul.mubr.f32.vlgmr.msra.gmra.mxu0 %v13130_v37  ;;  %5378 = vmatprep.subr.mxu1 %v13142_v45  ;;  %v5550_v45 = vsub.f32 %v11567_v23, %v13016_v48  ;;  %v11656_v18 = vsub.f32 %v144_v35, %v11618_v19  ;;  %v11669_v5 = vand.u32 4294901760, %v94_v58  ;;  %v13018_v35 = vand.u32 4294901760, %v11630_v51 }
 0x1dc   :  { %5450 = vmatprep.subr.mxu0 %v11530_v13  ;;  %5380 = vmatpush1.msra.mxu1 %v13144_v57  ;;  %v5556_v57 = vsub.f32 %v11584_v3, %v13015_v34  ;;  %v11683_v2 = vsub.f32 %v120_v50, %v11634_v36  ;;  %v9217_v34 = vpop.eup %9216 }
 0x1dd   :  { %5452 = vmatpush1.msra.mxu0 %v11546_v38  ;;  %5382 = vmatprep.subr.mxu1 %v11282_v6  ;;  %v5562_v6 = vsub.f32 %v11579_v63, %v13014_v41  ;;  %v5551_v24 = vand.u32 4294901760, %v5550_v45  ;;  %v13023_v41 = vand.u32 4294901760, %v11651_v10  ;;  %v13022_v50 = vand.u32 4294901760, %v11656_v18 }
 0x1de   :  { %5454 = vmatprep.subr.mxu0 %v11556_v30  ;;  %5384 = vmatpush1.msra.mxu1 %v11287_v22  ;;  %v11678_v22 = vand.u32 4294901760, %v70_v1  ;;  %v5557_v48 = vand.u32 4294901760, %v5556_v57  ;;  %v11698_v45 = vsub.f32 %v95_v7, %v11661_v25  ;;  %v11703_v21 = vsub.f32 %v94_v58, %v11669_v5 }
 0x1df   :  { %5456 = vmatpush1.msra.mxu0 %v11558_v59  ;;  %5386 = vmatprep.subr.mxu1 %v11301_v9  ;;  %v5568_v9 = vsub.f32 %v11610_v33, %v13020_v14  ;;  %v5563_v31 = vand.u32 4294901760, %v5562_v6  ;;  %v5586_v57 = vsub.f32 %v11626_v44, %v13019_v42  ;;  %v5592_v14 = vsub.f32 %v11651_v10, %v13023_v41 }
 0x1e0   :  { %5458 = vmatprep.subr.mxu0 %v11569_v43  ;;  %5388 = vmatpush1.msra.mxu1 %v11312_v46  ;;  %v5574_v46 = vsub.f32 %v11616_v56, %v13017_v29  ;;  %v9219_v29 = vpop.eup %9218  ;;  %v11719_v6 = vsub.f32 %v70_v1, %v11678_v22  ;;  %v5598_v1 = vsub.f32 %v11656_v18, %v13022_v50  ;;  %v5615_v7 = vand.u32 4294901760, %v11698_v45 }
 0x1e1   :  { %5460 = vmatpush1.msra.mxu0 %v11581_v60  ;;  %5390 = vmatprep.subr.mxu1 %v11322_v47  ;;  %v5580_v47 = vsub.f32 %v11630_v51, %v13018_v35  ;;  %v5569_v42 = vand.u32 4294901760, %v5568_v9  ;;  %v8843_v32 = vcombine.low %v9219_v29, %v9217_v34  ;;  %v5587_v29 = vand.u32 4294901760, %v5586_v57 }
 0x1e2   :  { %5462 = vmatprep.subr.mxu0 %v11589_v0  ;;  %5392 = vmatpush1.msra.mxu1 %v11336_v26  ;;  %v11714_v26 = vsub.f32 %v69_v16, %v11680_v27  ;;  %v9221_v35 = vpop.eup %9220  ;;  %v8858_v16 = vrot.slane %v8842_v11, %v11641_v53  ;;  %v5575_v58 = vand.u32 4294901760, %v5574_v46  ;;  %v5621_v11 = vand.u32 4294901760, %v11703_v21 }
 0x1e3   :  { %5425 = vmatprep.mubr.f32.mxu1 %v13107_v28  ;;  %5464 = vmatpush1.msra.mxu0 %v11591_v17  ;;  %v5581_v34 = vand.u32 4294901760, %v5580_v47  ;;  %v13163_v46 = vand.u32 4294901760, %v11683_v2  ;;  %v13164_v41 = vand.u32 4294901760, %v11676_v40  ;;  %v5593_v47 = vand.u32 4294901760, %v5592_v14 }
 0x1e4   :  { %5427 = vmatmul.mubr.f32.vlgmr.msra.gmra.mxu1 %v13130_v37  ;;  %5466 = vmatprep.subr.mxu0 %v11602_v12  ;;  %v9223_v49 = vpop.eup %9222  ;;  %v5599_v57 = vand.u32 4294901760, %v5598_v1  ;;  %v5622_v14 = vsub.f32 %v11703_v21, %v5621_v11 }
 0x1e5   :  { %5546 = vmatprep.subr.mxu1 %v5545_v61  ;;  %5468 = vmatpush1.msra.mxu0 %v11618_v19  ;;  %v13162_v61 = vcombine.low %v11621_v4, %v11597_v62  ;;  %v5604_v50 = vsub.f32 %v11683_v2, %v13163_v46  ;;  %v5610_v62 = vsub.f32 %v11676_v40, %v13164_v41  ;;  %v5627_v4 = vand.u32 4294901760, %v11719_v6 }
 0x1e6   :  { %5552 = vmatpush1.msra.mxu1 %v5551_v24  ;;  %5470 = vmatprep.subr.mxu0 %v11634_v36  ;;  %v8844_v24 = vcombine.low %v9221_v35, %v9223_v49  ;;  %v8865_v49 = vrot.slane %v8843_v32, %v11641_v53  ;;  %v5616_v41 = vsub.f32 %v11698_v45, %v5615_v7 }
 0x1e7   :  { %v8851_v9 = vrot.slane %v13162_v61, %v11641_v53  ;;  %5558 = vmatprep.subr.mxu1 %v5557_v48  ;;  %5472 = vmatpush1.msra.mxu0 %v11636_v20  ;;  %v5633_v48 = vand.u32 4294901760, %v11714_v26  ;;  %v5605_v32 = vand.u32 4294901760, %v5604_v50 }
 0x1e8   :  { %5564 = vmatpush1.msra.mxu1 %v5563_v31  ;;  %5474 = vmatprep.subr.mxu0 %v11661_v25  ;;  %v8872_v35 = vrot.slane %v8844_v24, %v11641_v53  ;;  %v5617_v50 = vand.u32 4294901760, %v5616_v41 }
 0x1e9   :  { %5570 = vmatprep.subr.mxu1 %v5569_v42  ;;  %v8873_v31 = vcombine.low %v8851_v9, %v8858_v16  ;;  %5476 = vmatpush1.msra.mxu0 %v11669_v5  ;;  %v5611_v16 = vand.u32 4294901760, %v5610_v62  ;;  %v5634_v1 = vsub.f32 %v11714_v26, %v5633_v48  ;;  %v13165_v62 = vand.u32 4294901760, %v11549_v52 }
 0x1ea   :  { %5576 = vmatpush1.msra.mxu1 %v5575_v58  ;;  %5478 = vmatprep.subr.mxu0 %v11678_v22  ;;  %v8874_v42 = vcombine.low %v8865_v49, %v8872_v35  ;;  %v5628_v58 = vsub.f32 %v11719_v6, %v5627_v4  ;;  %v247_v49 = vld [vmem:[#allocation5 + $0x610] sm:$0xff]  ;;  %v13167_v35 = vand.u32 4294901760, %v11584_v3 }
 0x1eb   :  { %5582 = vmatprep.subr.mxu1 %v5581_v34  ;;  %5480 = vmatpush1.msra.mxu0 %v11680_v27  ;;  %v8881_v61 = vrot.slane %v8873_v31, %v11641_v53  ;;  %v5623_v34 = vand.u32 4294901760, %v5622_v14  ;;  %v5635_v46 = vand.u32 4294901760, %v5634_v1  ;;  %v13168_v31 = vand.u32 4294901760, %v11579_v63 }
 0x1ec   :  { %5588 = vmatpush1.msra.mxu1 %v5587_v29  ;;  %5513 = vmatprep.mubr.f32.mxu0 %v13107_v28  ;;  %v8888_v9 = vrot.slane %v8874_v42, %v11641_v53  ;;  %v5629_v24 = vand.u32 4294901760, %v5628_v58  ;;  %v11811_v41 = vand.u32 4294901760, %v247_v49  ;;  %v13172_v14 = vand.u32 4294901760, %v11626_v44 }
 0x1ed   :  { %5594 = vmatprep.subr.mxu1 %v5593_v47  ;;  %5695 = vmatprep.subr.mxu0 %v11549_v52  ;;  %v13166_v47 = vand.u32 4294901760, %v11567_v23  ;;  %v13169_v52 = vand.u32 4294901760, %v11610_v33  ;;  %v13174_v1 = vand.u32 4294901760, %v11656_v18 }
 0x1ee   :  { %5519 = vmatmul.mubr.f32.vlgmr.msra.gmra.mxu0 %v9569_v15  ;;  %5600 = vmatpush1.msra.mxu1 %v5599_v57  ;;  %v8889_v29 = vcombine.low %v8881_v61, %v8888_v9  ;;  %v246_v57 = vld [vmem:[#allocation5 + $0x608] sm:$0xff]  ;;  %v172_v61 = vld [vmem:[#allocation5 + $0x3b8] sm:$0xff]  ;;  %v13175_v9 = vand.u32 4294901760, %v11683_v2 }
 0x1ef   :  { %5698 = vmatpush1.msra.mxu0 %v11567_v23  ;;  %5606 = vmatprep.subr.mxu1 %v5605_v32  ;;  %v13170_v23 = vand.u32 4294901760, %v11616_v56  ;;  %v11824_v42 = vand.u32 4294901760, %v246_v57  ;;  %v11827_v32 = vsub.f32 %v247_v49, %v11811_v41 }
 0x1f0   :  { %5701 = vmatprep.subr.mxu0 %v11584_v3  ;;  %5612 = vmatpush1.msra.mxu1 %v5611_v16  ;;  %9006 = vst [vmem:[#allocation8] sm:$0xff] %v8889_v29  ;;  %v13171_v3 = vand.u32 4294901760, %v11630_v51  ;;  %v196_v16 = vld [vmem:[#allocation5 + $0x478] sm:$0xff] }
 0x1f1   :  { %5704 = vmatpush1.msra.mxu0 %v11579_v63  ;;  %5618 = vmatprep.subr.mxu1 %v5617_v50  ;;  %v222_v63 = vld [vmem:[#allocation5 + $0x548] sm:$0xff]  ;;  %v171_v50 = vld [vmem:[#allocation5 + $0x3b0] sm:$0xff]  ;;  %v6190_v29 = vand.u32 4294901760, %v11827_v32 }
 0x1f2   :  { %5707 = vmatprep.subr.mxu0 %v11610_v33  ;;  %5624 = vmatpush1.msra.mxu1 %v5623_v34  ;;  %v221_v33 = vld [vmem:[#allocation5 + $0x540] sm:$0xff]  ;;  %v11832_v58 = vand.u32 4294901760, %v222_v63  ;;  %v147_v34 = vld [vmem:[#allocation5 + $0x2f0] sm:$0xff] }
 0x1f3   :  { %5710 = vmatpush1.msra.mxu0 %v11616_v56  ;;  %5630 = vmatprep.subr.mxu1 %v5629_v24  ;;  %v197_v56 = vld [vmem:[#allocation5 + $0x480] sm:$0xff]  ;;  %v146_v24 = vld [vmem:[#allocation5 + $0x2e8] sm:$0xff] }
 0x1f4   :  { %5713 = vmatprep.subr.mxu0 %v11630_v51  ;;  %5636 = vmatpush1.msra.mxu1 %v5635_v46  ;;  %v13173_v51 = vand.u32 4294901760, %v11651_v10 }
 0x1f5   :  { %5669 = vmatprep.mubr.f32.mxu1 %v13107_v28  ;;  %5716 = vmatpush1.msra.mxu0 %v11626_v44  ;;  %v11837_v44 = vand.u32 4294901760, %v221_v33 }
 0x1f6   :  { %5671 = vmatmul.mubr.f32.vlgmr.msra.gmra.mxu1 %v13130_v37  ;;  %5719 = vmatprep.subr.mxu0 %v11651_v10  ;;  %v11842_v10 = vand.u32 4294901760, %v197_v56 }
 0x1f7   :  { %5799 = vmatprep.subr.mxu1 %v11530_v13  ;;  %5722 = vmatpush1.msra.mxu0 %v11656_v18  ;;  %v11848_v18 = vsub.f32 %v246_v57, %v11824_v42 }
 0x1f8   :  { %5801 = vmatpush1.msra.mxu1 %v11546_v38  ;;  %5725 = vmatprep.subr.mxu0 %v11683_v2  ;;  %v11867_v2 = vand.u32 4294901760, %v171_v50 }
 0x1f9   :  { %5803 = vmatprep.subr.mxu1 %v11556_v30  ;;  %5728 = vmatpush1.msra.mxu0 %v11676_v40 }
 0x1fa   :  { %5805 = vmatpush1.msra.mxu1 %v11558_v59  ;;  %5731 = vmatprep.subr.mxu0 %v11698_v45  ;;  %v122_v45 = vld [vmem:[#allocation5 + $0x228] sm:$0xff]  ;;  %v11900_v46 = vsub.f32 %v171_v50, %v11867_v2 }
 0x1fb   :  { %5807 = vmatprep.subr.mxu1 %v11569_v43  ;;  %5734 = vmatpush1.msra.mxu0 %v11703_v21  ;;  %v11886_v21 = vsub.f32 %v11827_v32, %v6190_v29 }
 0x1fc   :  { %5809 = vmatpush1.msra.mxu1 %v11581_v60  ;;  %5737 = vmatprep.subr.mxu0 %v11719_v6  ;;  %v121_v6 = vld [vmem:[#allocation5 + $0x220] sm:$0xff] }
 0x1fd   :  { %5811 = vmatprep.subr.mxu1 %v11589_v0  ;;  %5740 = vmatpush1.msra.mxu0 %v11714_v26  ;;  %v11907_v49 = vand.u32 4294901760, %v121_v6 }
 0x1fe   :  { %5773 = vmatprep.mubr.f32.mxu0 %v13107_v28  ;;  %5813 = vmatpush1.msra.mxu1 %v11591_v17 }
 0x1ff   :  { %5776 = vmatmul.mubr.f32.vlgmr.msra.gmra.mxu0 %v13141_v54  ;;  %5815 = vmatprep.subr.mxu1 %v11602_v12 }
 0x200   :  { %5891 = vmatprep.subr.mxu0 %v13165_v62  ;;  %5817 = vmatpush1.msra.mxu1 %v11618_v19  ;;  %v11902_v62 = vand.u32 4294901760, %v122_v45 }
 0x201   :  { %5895 = vmatpush1.msra.mxu0 %v13166_v47  ;;  %5819 = vmatprep.subr.mxu1 %v11634_v36  ;;  %v96_v47 = vld [vmem:[#allocation5 + $0x158] sm:$0xff] }
 0x202   :  { %5899 = vmatprep.subr.mxu0 %v13167_v35  ;;  %5821 = vmatpush1.msra.mxu1 %v11636_v20 }
 0x203   :  { %5903 = vmatpush1.msra.mxu0 %v13168_v31  ;;  %5823 = vmatprep.subr.mxu1 %v11661_v25  ;;  %v72_v31 = vld [vmem:[#allocation5 + $0x98] sm:$0xff] }
 0x204   :  { %5907 = vmatprep.subr.mxu0 %v13169_v52  ;;  %5825 = vmatpush1.msra.mxu1 %v11669_v5  ;;  %v6192_v52 = vand.u32 4294901760, %v11886_v21 }
 0x205   :  { %5911 = vmatpush1.msra.mxu0 %v13170_v23  ;;  %5827 = vmatprep.subr.mxu1 %v11678_v22 }
 0x206   :  { %5915 = vmatprep.subr.mxu0 %v13171_v3  ;;  %5829 = vmatpush1.msra.mxu1 %v11680_v27  ;;  %v71_v3 = vld [vmem:[#allocation5 + $0x90] sm:$0xff] }
 0x207   :  { %5862 = vmatprep.mubr.f32.mxu1 %v13107_v28  ;;  %5919 = vmatpush1.msra.mxu0 %v13172_v14 }
 0x208   :  { %5866 = vmatmul.mubr.f32.vlgmr.msra.gmra.mxu1 %v13152_v39  ;;  %5923 = vmatprep.subr.mxu0 %v13173_v51  ;;  %v13024_v51 = vand.u32 4294901760, %v11900_v46 }
 0x209   :  { %6009 = vmatprep.subr.mxu1 %v11530_v13  ;;  %5927 = vmatpush1.msra.mxu0 %v13174_v1  ;;  %v13176_v13 = vand.u32 4294901760, %v11676_v40  ;;  %v11859_v40 = vsub.f32 %v222_v63, %v11832_v58  ;;  %v11947_v1 = vsub.f32 %v121_v6, %v11907_v49 }
 0x20a   :  { %6011 = vmatpush1.msra.mxu1 %v11546_v38  ;;  %5931 = vmatprep.subr.mxu0 %v13175_v9  ;;  %v11850_v38 = vand.u32 4294901760, %v196_v16 }
 0x20b   :  { %6013 = vmatprep.subr.mxu1 %v11556_v30  ;;  %5935 = vmatpush1.msra.mxu0 %v13176_v13  ;;  %v11856_v30 = vand.u32 4294901760, %v172_v61  ;;  %v6202_v26 = vand.u32 4294901760, %v11859_v40 }
 0x20c   :  { %6015 = vmatpush1.msra.mxu1 %v11558_v59  ;;  %5939 = vmatprep.subr.mxu0 %v5615_v7  ;;  %v11865_v59 = vsub.f32 %v221_v33, %v11837_v44  ;;  %v11875_v7 = vsub.f32 %v197_v56, %v11842_v10  ;;  %v11930_v33 = vand.u32 4294901760, %v96_v47  ;;  %v11938_v56 = vand.u32 4294901760, %v72_v31 }
 0x20d   :  { %6017 = vmatprep.subr.mxu1 %v11569_v43  ;;  %5943 = vmatpush1.msra.mxu0 %v5621_v11  ;;  %v11872_v43 = vand.u32 4294901760, %v147_v34  ;;  %v11891_v11 = vand.u32 4294901760, %v146_v24 }
 0x20e   :  { %6019 = vmatpush1.msra.mxu1 %v11581_v60  ;;  %5947 = vmatprep.subr.mxu0 %v5627_v4  ;;  %v11881_v60 = vsub.f32 %v196_v16, %v11850_v38  ;;  %v97_v4 = vld [vmem:[#allocation5 + $0x160] sm:$0xff]  ;;  %v6214_v35 = vand.u32 4294901760, %v11875_v7  ;;  %v11942_v16 = vsub.f32 %v122_v45, %v11902_v62 }
 0x20f   :  { %6021 = vmatprep.subr.mxu1 %v11589_v0  ;;  %5951 = vmatpush1.msra.mxu0 %v5633_v48  ;;  %v6196_v0 = vand.u32 4294901760, %v11848_v18  ;;  %v11895_v48 = vsub.f32 %v172_v61, %v11856_v30  ;;  %v11919_v23 = vand.u32 4294901760, %v97_v4  ;;  %v11925_v63 = vsub.f32 %v146_v24, %v11891_v11 }
 0x210   :  { %5984 = vmatprep.mubr.f32.mxu0 %v13107_v28  ;;  %6023 = vmatpush1.msra.mxu1 %v11591_v17  ;;  %v6208_v17 = vand.u32 4294901760, %v11865_v59  ;;  %v6220_v57 = vand.u32 4294901760, %v11881_v60  ;;  %v11952_v61 = vand.u32 4294901760, %v71_v3  ;;  %v11966_v24 = vsub.f32 %v96_v47, %v11930_v33 }
 0x211   :  { %5986 = vmatmul.mubr.f32.vlgmr.msra.gmra.mxu0 %v13130_v37  ;;  %6025 = vmatprep.subr.mxu1 %v11602_v12  ;;  %v11911_v12 = vsub.f32 %v147_v34, %v11872_v43  ;;  %v6226_v14 = vand.u32 4294901760, %v11895_v48  ;;  %v11961_v13 = vsub.f32 %v97_v4, %v11919_v23  ;;  %v13026_v45 = vand.u32 4294901760, %v11925_v63 }
 0x212   :  { %6097 = vmatprep.subr.mxu0 %v11811_v41  ;;  %6027 = vmatpush1.msra.mxu1 %v11618_v19  ;;  %v6197_v19 = vsub.f32 %v11848_v18, %v6196_v0  ;;  %v6250_v6 = vand.u32 4294901760, %v11942_v16  ;;  %v11979_v4 = vsub.f32 %v72_v31, %v11938_v56 }
 0x213   :  { %6099 = vmatpush1.msra.mxu0 %v11824_v42  ;;  %6029 = vmatprep.subr.mxu1 %v11634_v36  ;;  %v6203_v36 = vsub.f32 %v11859_v40, %v6202_v26  ;;  %v13025_v9 = vand.u32 4294901760, %v11911_v12  ;;  %v13027_v31 = vand.u32 4294901760, %v11961_v13 }
 0x214   :  { %6101 = vmatprep.subr.mxu0 %v11832_v58  ;;  %6031 = vmatpush1.msra.mxu1 %v11636_v20  ;;  %v6209_v20 = vsub.f32 %v11865_v59, %v6208_v17  ;;  %v6198_v50 = vand.u32 4294901760, %v6197_v19  ;;  %v11983_v19 = vsub.f32 %v71_v3, %v11952_v61  ;;  %v6245_v3 = vsub.f32 %v11925_v63, %v13026_v45 }
 0x215   :  { %6103 = vmatpush1.msra.mxu0 %v11837_v44  ;;  %6033 = vmatprep.subr.mxu1 %v11661_v25  ;;  %v6215_v25 = vsub.f32 %v11875_v7, %v6214_v35  ;;  %v6204_v34 = vand.u32 4294901760, %v6203_v36  ;;  %v6239_v36 = vsub.f32 %v11911_v12, %v13025_v9 }
 0x216   :  { %6105 = vmatprep.subr.mxu0 %v11842_v10  ;;  %6035 = vmatpush1.msra.mxu1 %v11669_v5  ;;  %v6221_v5 = vsub.f32 %v11881_v60, %v6220_v57  ;;  %v6210_v21 = vand.u32 4294901760, %v6209_v20  ;;  %v6256_v20 = vand.u32 4294901760, %v11947_v1  ;;  %v6280_v45 = vand.u32 4294901760, %v11983_v19 }
 0x217   :  { %6107 = vmatpush1.msra.mxu0 %v11850_v38  ;;  %6037 = vmatprep.subr.mxu1 %v11678_v22  ;;  %v6227_v22 = vsub.f32 %v11895_v48, %v6226_v14  ;;  %v6216_v47 = vand.u32 4294901760, %v6215_v25  ;;  %v6268_v25 = vand.u32 4294901760, %v11966_v24 }
 0x218   :  { %6109 = vmatprep.subr.mxu0 %v11856_v30  ;;  %6039 = vmatpush1.msra.mxu1 %v11680_v27  ;;  %v6233_v27 = vsub.f32 %v11900_v46, %v13024_v51  ;;  %v6222_v51 = vand.u32 4294901760, %v6221_v5  ;;  %v6274_v5 = vand.u32 4294901760, %v11979_v4 }
 0x219   :  { %6072 = vmatprep.mubr.f32.mxu1 %v13107_v28  ;;  %6111 = vmatpush1.msra.mxu0 %v11867_v2 }
 0x21a   :  { %6074 = vmatmul.mubr.f32.vlgmr.msra.gmra.mxu1 %v13130_v37  ;;  %6113 = vmatprep.subr.mxu0 %v11872_v43  ;;  %v6234_v9 = vand.u32 4294901760, %v6233_v27  ;;  %v6246_v27 = vand.u32 4294901760, %v6245_v3 }
 0x21b   :  { %6193 = vmatprep.subr.mxu1 %v6192_v52  ;;  %6115 = vmatpush1.msra.mxu0 %v11891_v11  ;;  %v6228_v52 = vand.u32 4294901760, %v6227_v22  ;;  %v6257_v22 = vsub.f32 %v11947_v1, %v6256_v20 }
 0x21c   :  { %6199 = vmatpush1.msra.mxu1 %v6198_v50  ;;  %6117 = vmatprep.subr.mxu0 %v11902_v62  ;;  %v6251_v50 = vsub.f32 %v11942_v16, %v6250_v6 }
 0x21d   :  { %6205 = vmatprep.subr.mxu1 %v6204_v34  ;;  %6119 = vmatpush1.msra.mxu0 %v11907_v49  ;;  %v6240_v34 = vand.u32 4294901760, %v6239_v36 }
 0x21e   :  { %6211 = vmatpush1.msra.mxu1 %v6210_v21  ;;  %6121 = vmatprep.subr.mxu0 %v11919_v23  ;;  %v6263_v21 = vsub.f32 %v11961_v13, %v13027_v31  ;;  %v6252_v36 = vand.u32 4294901760, %v6251_v50  ;;  %v6258_v31 = vand.u32 4294901760, %v6257_v22 }
 0x21f   :  { %6217 = vmatprep.subr.mxu1 %v6216_v47  ;;  %6123 = vmatpush1.msra.mxu0 %v11930_v33  ;;  %v6269_v47 = vsub.f32 %v11966_v24, %v6268_v25 }
 0x220   :  { %6223 = vmatpush1.msra.mxu1 %v6222_v51  ;;  %6125 = vmatprep.subr.mxu0 %v11938_v56  ;;  %v6275_v51 = vsub.f32 %v11979_v4, %v6274_v5  ;;  %v6264_v3 = vand.u32 4294901760, %v6263_v21 }
 0x221   :  { %6229 = vmatprep.subr.mxu1 %v6228_v52  ;;  %6127 = vmatpush1.msra.mxu0 %v11952_v61  ;;  %v6281_v52 = vsub.f32 %v11983_v19, %v6280_v45 }
 0x222   :  { %6235 = vmatpush1.msra.mxu1 %v6234_v9  ;;  %6160 = vmatprep.mubr.f32.mxu0 %v13107_v28  ;;  %v6270_v9 = vand.u32 4294901760, %v6269_v47  ;;  %v6276_v50 = vand.u32 4294901760, %v6275_v51 }
 0x223   :  { %6241 = vmatprep.subr.mxu1 %v6240_v34  ;;  %6342 = vmatprep.subr.mxu0 %v11827_v32  ;;  %v6282_v34 = vand.u32 4294901760, %v6281_v52 }
 0x224   :  { %6166 = vmatmul.mubr.f32.vlgmr.msra.gmra.mxu0 %v9569_v15  ;;  %6247 = vmatpush1.msra.mxu1 %v6246_v27 }
 0x225   :  { %6345 = vmatpush1.msra.mxu0 %v11848_v18  ;;  %6253 = vmatprep.subr.mxu1 %v6252_v36  ;;  %v248_v18 = vld [vmem:[#allocation5 + $0x618] sm:$0xff]  ;;  %v98_v36 = vld [vmem:[#allocation5 + $0x168] sm:$0xff] }
 0x226   :  { %6348 = vmatprep.subr.mxu0 %v11859_v40  ;;  %6259 = vmatpush1.msra.mxu1 %v6258_v31  ;;  %v249_v31 = vld [vmem:[#allocation5 + $0x620] sm:$0xff]  ;;  %v223_v40 = vld [vmem:[#allocation5 + $0x550] sm:$0xff] }
 0x227   :  { %6351 = vmatpush1.msra.mxu0 %v11865_v59  ;;  %6265 = vmatprep.subr.mxu1 %v6264_v3  ;;  %v12066_v32 = vand.u32 4294901760, %v249_v31  ;;  %v13177_v59 = vand.u32 4294901760, %v11900_v46  ;;  %v74_v3 = vld [vmem:[#allocation5 + $0xa8] sm:$0xff] }
 0x228   :  { %6354 = vmatprep.subr.mxu0 %v11875_v7  ;;  %6271 = vmatpush1.msra.mxu1 %v6270_v9  ;;  %v12079_v7 = vand.u32 4294901760, %v248_v18 }
 0x229   :  { %6357 = vmatpush1.msra.mxu0 %v11881_v60  ;;  %6277 = vmatprep.subr.mxu1 %v6276_v50  ;;  %v199_v60 = vld [vmem:[#allocation5 + $0x490] sm:$0xff] }
 0x22a   :  { %6360 = vmatprep.subr.mxu0 %v11895_v48  ;;  %6283 = vmatpush1.msra.mxu1 %v6282_v34 }
 0x22b   :  { %6316 = vmatprep.mubr.f32.mxu1 %v13107_v28  ;;  %6363 = vmatpush1.msra.mxu0 %v11900_v46  ;;  %v12092_v46 = vand.u32 4294901760, %v223_v40 }
 0x22c   :  { %6318 = vmatmul.mubr.f32.vlgmr.msra.gmra.mxu1 %v13130_v37  ;;  %6366 = vmatprep.subr.mxu0 %v11911_v12 }
 0x22d   :  { %6446 = vmatprep.subr.mxu1 %v11811_v41  ;;  %6369 = vmatpush1.msra.mxu0 %v11925_v63 }
 0x22e   :  { %6448 = vmatpush1.msra.mxu1 %v11824_v42  ;;  %6372 = vmatprep.subr.mxu0 %v11942_v16  ;;  %v13180_v16 = vand.u32 4294901760, %v11961_v13 }
 0x22f   :  { %6450 = vmatprep.subr.mxu1 %v11832_v58  ;;  %6375 = vmatpush1.msra.mxu0 %v11947_v1 }
 0x230   :  { %6452 = vmatpush1.msra.mxu1 %v11837_v44  ;;  %6378 = vmatprep.subr.mxu0 %v11961_v13  ;;  %v124_v13 = vld [vmem:[#allocation5 + $0x238] sm:$0xff] }
 0x231   :  { %6454 = vmatprep.subr.mxu1 %v11842_v10  ;;  %6381 = vmatpush1.msra.mxu0 %v11966_v24  ;;  %v12157_v47 = vand.u32 4294901760, %v124_v13 }
 0x232   :  { %6456 = vmatpush1.msra.mxu1 %v11850_v38  ;;  %6384 = vmatprep.subr.mxu0 %v11979_v4  ;;  %v123_v4 = vld [vmem:[#allocation5 + $0x230] sm:$0xff] }
 0x233   :  { %6458 = vmatprep.subr.mxu1 %v11856_v30  ;;  %6387 = vmatpush1.msra.mxu0 %v11983_v19  ;;  %v99_v19 = vld [vmem:[#allocation5 + $0x170] sm:$0xff]  ;;  %v12162_v51 = vand.u32 4294901760, %v123_v4 }
 0x234   :  { %6420 = vmatprep.mubr.f32.mxu0 %v13107_v28  ;;  %6460 = vmatpush1.msra.mxu1 %v11867_v2  ;;  %v12174_v50 = vand.u32 4294901760, %v99_v19 }
 0x235   :  { %6423 = vmatmul.mubr.f32.vlgmr.msra.gmra.mxu0 %v13141_v54  ;;  %6462 = vmatprep.subr.mxu1 %v11872_v43 }
 0x236   :  { %6538 = vmatprep.subr.mxu0 %v6190_v29  ;;  %6464 = vmatpush1.msra.mxu1 %v11891_v11  ;;  %v224_v29 = vld [vmem:[#allocation5 + $0x558] sm:$0xff] }
 0x237   :  { %6542 = vmatpush1.msra.mxu0 %v6196_v0  ;;  %6466 = vmatprep.subr.mxu1 %v11902_v62  ;;  %v12082_v0 = vsub.f32 %v249_v31, %v12066_v32  ;;  %v12087_v48 = vand.u32 4294901760, %v224_v29  ;;  %v73_v31 = vld [vmem:[#allocation5 + $0xa0] sm:$0xff] }
 0x238   :  { %6546 = vmatprep.subr.mxu0 %v6202_v26  ;;  %6468 = vmatpush1.msra.mxu1 %v11907_v49  ;;  %v13178_v26 = vand.u32 4294901760, %v11911_v12  ;;  %v12097_v12 = vand.u32 4294901760, %v199_v60 }
 0x239   :  { %6550 = vmatpush1.msra.mxu0 %v6208_v17  ;;  %6470 = vmatprep.subr.mxu1 %v11919_v23  ;;  %v198_v17 = vld [vmem:[#allocation5 + $0x488] sm:$0xff]  ;;  %v6837_v22 = vand.u32 4294901760, %v12082_v0  ;;  %v12114_v1 = vsub.f32 %v224_v29, %v12087_v48  ;;  %v12185_v29 = vand.u32 4294901760, %v98_v36 }
 0x23a   :  { %6554 = vmatprep.subr.mxu0 %v6214_v35  ;;  %6472 = vmatpush1.msra.mxu1 %v11930_v33  ;;  %v13179_v35 = vand.u32 4294901760, %v11925_v63  ;;  %v149_v63 = vld [vmem:[#allocation5 + $0x300] sm:$0xff]  ;;  %v12130_v21 = vsub.f32 %v199_v60, %v12097_v12 }
 0x23b   :  { %6558 = vmatpush1.msra.mxu0 %v6220_v57  ;;  %6474 = vmatprep.subr.mxu1 %v11938_v56  ;;  %v174_v57 = vld [vmem:[#allocation5 + $0x3c8] sm:$0xff]  ;;  %v12141_v24 = vsub.f32 %v12082_v0, %v6837_v22 }
 0x23c   :  { %6562 = vmatprep.subr.mxu0 %v6226_v14  ;;  %6476 = vmatpush1.msra.mxu1 %v11952_v61  ;;  %v173_v14 = vld [vmem:[#allocation5 + $0x3c0] sm:$0xff]  ;;  %v6861_v52 = vand.u32 4294901760, %v12130_v21 }
 0x23d   :  { %6509 = vmatprep.mubr.f32.mxu1 %v13107_v28  ;;  %6566 = vmatpush1.msra.mxu0 %v13177_v59  ;;  %v6839_v9 = vand.u32 4294901760, %v12141_v24  ;;  %v12193_v59 = vand.u32 4294901760, %v74_v3 }
 0x23e   :  { %6513 = vmatmul.mubr.f32.vlgmr.msra.gmra.mxu1 %v13152_v39  ;;  %6570 = vmatprep.subr.mxu0 %v13178_v26  ;;  %v12197_v26 = vsub.f32 %v124_v13, %v12157_v47 }
 0x23f   :  { %6656 = vmatprep.subr.mxu1 %v11811_v41  ;;  %6574 = vmatpush1.msra.mxu0 %v13179_v35  ;;  %v12103_v41 = vsub.f32 %v248_v18, %v12079_v7  ;;  %v12207_v35 = vand.u32 4294901760, %v73_v31 }
 0x240   :  { %6658 = vmatpush1.msra.mxu1 %v11824_v42  ;;  %6578 = vmatprep.subr.mxu0 %v6250_v6  ;;  %v12105_v42 = vand.u32 4294901760, %v198_v17  ;;  %v12122_v6 = vand.u32 4294901760, %v173_v14 }
 0x241   :  { %6660 = vmatprep.subr.mxu1 %v11832_v58  ;;  %6582 = vmatpush1.msra.mxu0 %v6256_v20  ;;  %v12111_v58 = vand.u32 4294901760, %v174_v57  ;;  %v148_v20 = vld [vmem:[#allocation5 + $0x2f8] sm:$0xff] }
 0x242   :  { %6662 = vmatpush1.msra.mxu1 %v11837_v44  ;;  %6586 = vmatprep.subr.mxu0 %v13180_v16  ;;  %v12120_v44 = vsub.f32 %v223_v40, %v12092_v46  ;;  %v12155_v27 = vsub.f32 %v173_v14, %v12122_v6 }
 0x243   :  { %6664 = vmatprep.subr.mxu1 %v11842_v10  ;;  %6590 = vmatpush1.msra.mxu0 %v6268_v25  ;;  %v12127_v10 = vand.u32 4294901760, %v149_v63  ;;  %v12146_v25 = vand.u32 4294901760, %v148_v20 }
 0x244   :  { %6666 = vmatpush1.msra.mxu1 %v11850_v38  ;;  %6594 = vmatprep.subr.mxu0 %v6274_v5  ;;  %v12136_v38 = vsub.f32 %v198_v17, %v12105_v42  ;;  %v12150_v5 = vsub.f32 %v174_v57, %v12111_v58  ;;  %v13028_v60 = vand.u32 4294901760, %v12155_v27  ;;  %v12202_v17 = vsub.f32 %v123_v4, %v12162_v51 }
 0x245   :  { %6668 = vmatprep.subr.mxu1 %v11856_v30  ;;  %6598 = vmatpush1.msra.mxu0 %v6280_v45  ;;  %v6843_v30 = vand.u32 4294901760, %v12103_v41  ;;  %v6849_v45 = vand.u32 4294901760, %v12114_v1  ;;  %v12180_v18 = vsub.f32 %v148_v20, %v12146_v25  ;;  %v12221_v20 = vsub.f32 %v98_v36, %v12185_v29 }
 0x246   :  { %6631 = vmatprep.mubr.f32.mxu0 %v13107_v28  ;;  %6670 = vmatpush1.msra.mxu1 %v11867_v2  ;;  %v6855_v2 = vand.u32 4294901760, %v12120_v44  ;;  %v6867_v34 = vand.u32 4294901760, %v12136_v38  ;;  %v6873_v40 = vand.u32 4294901760, %v12150_v5  ;;  %v6897_v4 = vand.u32 4294901760, %v12197_v26 }
 0x247   :  { %6633 = vmatmul.mubr.f32.vlgmr.msra.gmra.mxu0 %v13130_v37  ;;  %6672 = vmatprep.subr.mxu1 %v11872_v43  ;;  %v12166_v43 = vsub.f32 %v149_v63, %v12127_v10  ;;  %v12216_v63 = vsub.f32 %v99_v19, %v12174_v50  ;;  %v13030_v13 = vand.u32 4294901760, %v12180_v18  ;;  %v12234_v19 = vsub.f32 %v74_v3, %v12193_v59 }
 0x248   :  { %6744 = vmatprep.subr.mxu0 %v12066_v32  ;;  %6674 = vmatpush1.msra.mxu1 %v11891_v11  ;;  %v6844_v11 = vsub.f32 %v12103_v41, %v6843_v30 }
 0x249   :  { %6746 = vmatpush1.msra.mxu0 %v12079_v7  ;;  %6676 = vmatprep.subr.mxu1 %v11902_v62  ;;  %v6850_v62 = vsub.f32 %v12114_v1, %v6849_v45  ;;  %v13029_v57 = vand.u32 4294901760, %v12166_v43  ;;  %v13031_v3 = vand.u32 4294901760, %v12216_v63 }
 0x24a   :  { %6748 = vmatprep.subr.mxu0 %v12087_v48  ;;  %6678 = vmatpush1.msra.mxu1 %v11907_v49  ;;  %v6856_v49 = vsub.f32 %v12120_v44, %v6855_v2  ;;  %v6845_v14 = vand.u32 4294901760, %v6844_v11  ;;  %v12238_v11 = vsub.f32 %v73_v31, %v12207_v35  ;;  %v6892_v31 = vsub.f32 %v12180_v18, %v13030_v13 }
 0x24b   :  { %6750 = vmatpush1.msra.mxu0 %v12092_v46  ;;  %6680 = vmatprep.subr.mxu1 %v11919_v23  ;;  %v6862_v23 = vsub.f32 %v12130_v21, %v6861_v52  ;;  %v6851_v16 = vand.u32 4294901760, %v6850_v62  ;;  %v6886_v62 = vsub.f32 %v12166_v43, %v13029_v57 }
 0x24c   :  { %6752 = vmatprep.subr.mxu0 %v12097_v12  ;;  %6682 = vmatpush1.msra.mxu1 %v11930_v33  ;;  %v6868_v33 = vsub.f32 %v12136_v38, %v6867_v34  ;;  %v6857_v24 = vand.u32 4294901760, %v6856_v49  ;;  %v13035_v49 = vand.u32 4294901760, %v12202_v17  ;;  %v13032_v13 = vand.u32 4294901760, %v12238_v11 }
 0x24d   :  { %6754 = vmatpush1.msra.mxu0 %v12105_v42  ;;  %6684 = vmatprep.subr.mxu1 %v11938_v56  ;;  %v6874_v56 = vsub.f32 %v12150_v5, %v6873_v40  ;;  %v6863_v36 = vand.u32 4294901760, %v6862_v23  ;;  %v13034_v23 = vand.u32 4294901760, %v12221_v20 }
 0x24e   :  { %6756 = vmatprep.subr.mxu0 %v12111_v58  ;;  %6686 = vmatpush1.msra.mxu1 %v11952_v61  ;;  %v6880_v61 = vsub.f32 %v12155_v27, %v13028_v60  ;;  %v6869_v60 = vand.u32 4294901760, %v6868_v33  ;;  %v13033_v33 = vand.u32 4294901760, %v12234_v19 }
 0x24f   :  { %6719 = vmatprep.mubr.f32.mxu1 %v13107_v28  ;;  %6758 = vmatpush1.msra.mxu0 %v12122_v6 }
 0x250   :  { %6721 = vmatmul.mubr.f32.vlgmr.msra.gmra.mxu1 %v13130_v37  ;;  %6760 = vmatprep.subr.mxu0 %v12127_v10  ;;  %v6881_v57 = vand.u32 4294901760, %v6880_v61  ;;  %v6893_v61 = vand.u32 4294901760, %v6892_v31 }
 0x251   :  { %6840 = vmatprep.subr.mxu1 %v6839_v9  ;;  %6762 = vmatpush1.msra.mxu0 %v12146_v25  ;;  %v6875_v9 = vand.u32 4294901760, %v6874_v56  ;;  %v6904_v56 = vsub.f32 %v12202_v17, %v13035_v49  ;;  %v176_v49 = vld [vmem:[#allocation5 + $0x3d8] sm:$0xff] }
 0x252   :  { %6846 = vmatpush1.msra.mxu1 %v6845_v14  ;;  %6764 = vmatprep.subr.mxu0 %v12157_v47  ;;  %v6898_v14 = vsub.f32 %v12197_v26, %v6897_v4  ;;  %v12404_v53 = vand.u32 4294901760, %v176_v49 }
 0x253   :  { %6852 = vmatprep.subr.mxu1 %v6851_v16  ;;  %6766 = vmatpush1.msra.mxu0 %v12162_v51  ;;  %v6887_v16 = vand.u32 4294901760, %v6886_v62 }
 0x254   :  { %6858 = vmatpush1.msra.mxu1 %v6857_v24  ;;  %6768 = vmatprep.subr.mxu0 %v12174_v50  ;;  %v6910_v24 = vsub.f32 %v12216_v63, %v13031_v3  ;;  %v6899_v62 = vand.u32 4294901760, %v6898_v14  ;;  %v6905_v3 = vand.u32 4294901760, %v6904_v56  ;;  %v12280_v14 = vpop.f32.mrf.mxu0  ;;  %13195 = vst [vmem:[#allocation24_spill] sm:$0xff] %v12404_v53 }
 0x255   :  { %6864 = vmatprep.subr.mxu1 %v6863_v36  ;;  %6770 = vmatpush1.msra.mxu0 %v12185_v29  ;;  %v6916_v36 = vsub.f32 %v12221_v20, %v13034_v23 }
 0x256   :  { %6870 = vmatpush1.msra.mxu1 %v6869_v60  ;;  %6772 = vmatprep.subr.mxu0 %v12193_v59  ;;  %v6922_v60 = vsub.f32 %v12234_v19, %v13033_v33  ;;  %v6911_v31 = vand.u32 4294901760, %v6910_v24  ;;  %v12286_v24 = vpop.f32.mrf.mxu0  ;;  %v200_v33 = vld [vmem:[#allocation5 + $0x498] sm:$0xff] }
 0x257   :  { %6876 = vmatprep.subr.mxu1 %v6875_v9  ;;  %6774 = vmatpush1.msra.mxu0 %v12207_v35  ;;  %v6928_v9 = vsub.f32 %v12238_v11, %v13032_v13 }
 0x258   :  { %6882 = vmatpush1.msra.mxu1 %v6881_v57  ;;  %6807 = vmatprep.mubr.f32.mxu0 %v13107_v28  ;;  %v6917_v57 = vand.u32 4294901760, %v6916_v36 }
 0x259   :  { %6888 = vmatprep.subr.mxu1 %v6887_v16  ;;  %6989 = vmatprep.subr.mxu0 %v12082_v0  ;;  %v6923_v16 = vand.u32 4294901760, %v6922_v60  ;;  %v6929_v56 = vand.u32 4294901760, %v6928_v9 }
 0x25a   :  { %6813 = vmatmul.mubr.f32.vlgmr.msra.gmra.mxu0 %v9569_v15  ;;  %6894 = vmatpush1.msra.mxu1 %v6893_v61  ;;  %v12288_v61 = vpop.f32.mrf.mxu1 }
 0x25b   :  { %6992 = vmatpush1.msra.mxu0 %v12103_v41  ;;  %6900 = vmatprep.subr.mxu1 %v6899_v62 }
 0x25c   :  { %6995 = vmatprep.subr.mxu0 %v12114_v1  ;;  %6906 = vmatpush1.msra.mxu1 %v6905_v3  ;;  %v12292_v3 = vpop.f32.mrf.mxu0  ;;  %v12298_v36 = vpop.f32.mrf.mxu1 }
 0x25d   :  { %6998 = vmatpush1.msra.mxu0 %v12120_v44  ;;  %6912 = vmatprep.subr.mxu1 %v6911_v31  ;;  %v226_v44 = vld [vmem:[#allocation5 + $0x568] sm:$0xff] }
 0x25e   :  { %7001 = vmatprep.subr.mxu0 %v12130_v21  ;;  %6918 = vmatpush1.msra.mxu1 %v6917_v57  ;;  %v12304_v62 = vpop.f32.mrf.mxu0  ;;  %v12306_v60 = vpop.f32.mrf.mxu1  ;;  %v225_v21 = vld [vmem:[#allocation5 + $0x560] sm:$0xff] }
 0x25f   :  { %7004 = vmatpush1.msra.mxu0 %v12136_v38  ;;  %6924 = vmatprep.subr.mxu1 %v6923_v16  ;;  %v13185_v38 = vand.u32 4294901760, %v12155_v27 }
 0x260   :  { %7007 = vmatprep.subr.mxu0 %v12150_v5  ;;  %6930 = vmatpush1.msra.mxu1 %v6929_v56  ;;  %v12312_v9 = vpop.f32.mrf.mxu0  ;;  %v12318_v31 = vpop.f32.mrf.mxu1  ;;  %v251_v56 = vld [vmem:[#allocation5 + $0x630] sm:$0xff]  ;;  %v13187_v5 = vand.u32 4294901760, %v12166_v43 }
 0x261   :  { %6963 = vmatprep.mubr.f32.mxu1 %v13107_v28  ;;  %7010 = vmatpush1.msra.mxu0 %v12155_v27  ;;  %13181 = vst [vmem:[#allocation30_spill] sm:$0xff] %v12312_v9  ;;  %v12347_v41 = vand.u32 4294901760, %v251_v56  ;;  %v13189_v27 = vand.u32 4294901760, %v12180_v18 }
 0x262   :  { %6965 = vmatmul.mubr.f32.vlgmr.msra.gmra.mxu1 %v13130_v37  ;;  %7013 = vmatprep.subr.mxu0 %v12166_v43  ;;  %v12324_v57 = vpop.f32.mrf.mxu0  ;;  %v12326_v16 = vpop.f32.mrf.mxu1 }
 0x263   :  { %7093 = vmatprep.subr.mxu1 %v12066_v32  ;;  %7016 = vmatpush1.msra.mxu0 %v12180_v18  ;;  %13182 = vst [vmem:[#allocation28_spill] sm:$0xff] %v12326_v16  ;;  %13184 = vst [vmem:[#allocation16_spill] sm:$0xff] %v12347_v41  ;;  %v13192_v18 = vand.u32 4294901760, %v12202_v17  ;;  %v76_v16 = vld [vmem:[#allocation5 + $0xb8] sm:$0xff] }
 0x264   :  { %7095 = vmatpush1.msra.mxu1 %v12079_v7  ;;  %7019 = vmatprep.subr.mxu0 %v12197_v26  ;;  %v12334_v13 = vpop.f32.mrf.mxu0  ;;  %v12342_v0 = vpop.f32.mrf.mxu1  ;;  %v151_v26 = vld [vmem:[#allocation5 + $0x310] sm:$0xff] }
 0x265   :  { %7097 = vmatprep.subr.mxu1 %v12087_v48  ;;  %7022 = vmatpush1.msra.mxu0 %v12202_v17  ;;  %13183 = vst [vmem:[#allocation15_spill] sm:$0xff] %v12342_v0 }
 0x266   :  { %7099 = vmatpush1.msra.mxu1 %v12092_v46  ;;  %7025 = vmatprep.subr.mxu0 %v12216_v63  ;;  %v12352_v1 = vpop.f32.mrf.mxu0 }
 0x267   :  { %7101 = vmatprep.subr.mxu1 %v12097_v12  ;;  %7028 = vmatpush1.msra.mxu0 %v12221_v20 }
 0x268   :  { %7103 = vmatpush1.msra.mxu1 %v12105_v42  ;;  %7031 = vmatprep.subr.mxu0 %v12234_v19 }
 0x269   :  { %7105 = vmatprep.subr.mxu1 %v12111_v58  ;;  %7034 = vmatpush1.msra.mxu0 %v12238_v11 }
 0x26a   :  { %7067 = vmatprep.mubr.f32.mxu0 %v13107_v28  ;;  %7107 = vmatpush1.msra.mxu1 %v12122_v6 }
 0x26b   :  { %7070 = vmatmul.mubr.f32.vlgmr.msra.gmra.mxu0 %v13141_v54  ;;  %7109 = vmatprep.subr.mxu1 %v12127_v10 }
 0x26c   :  { %7185 = vmatprep.subr.mxu0 %v6837_v22  ;;  %7111 = vmatpush1.msra.mxu1 %v12146_v25  ;;  %v250_v22 = vld [vmem:[#allocation5 + $0x628] sm:$0xff] }
 0x26d   :  { %7189 = vmatpush1.msra.mxu0 %v6843_v30  ;;  %7113 = vmatprep.subr.mxu1 %v12157_v47  ;;  %v12354_v30 = vpop.f32.mrf.mxu1 }
 0x26e   :  { %7193 = vmatprep.subr.mxu0 %v6849_v45  ;;  %7115 = vmatpush1.msra.mxu1 %v12162_v51  ;;  %v12361_v45 = vpop.f32.mrf.mxu0 }
 0x26f   :  { %7197 = vmatpush1.msra.mxu0 %v6855_v2  ;;  %7117 = vmatprep.subr.mxu1 %v12174_v50  ;;  %v12366_v2 = vand.u32 4294901760, %v250_v22  ;;  %v12376_v23 = vpop.f32.mrf.mxu1 }
 0x270   :  { %7201 = vmatprep.subr.mxu0 %v6861_v52  ;;  %7119 = vmatpush1.msra.mxu1 %v12185_v29  ;;  %v201_v52 = vld [vmem:[#allocation5 + $0x4a0] sm:$0xff] }
 0x271   :  { %7205 = vmatpush1.msra.mxu0 %v6867_v34  ;;  %7121 = vmatprep.subr.mxu1 %v12193_v59  ;;  %13186 = vst [vmem:[#allocation17_spill] sm:$0xff] %v12366_v2  ;;  %v12369_v34 = vsub.f32 %v251_v56, %v12347_v41  ;;  %v12386_v43 = vand.u32 4294901760, %v201_v52  ;;  %v12388_v56 = vpop.f32.mrf.mxu0 }
 0x272   :  { %7209 = vmatprep.subr.mxu0 %v6873_v40  ;;  %7123 = vmatpush1.msra.mxu1 %v12207_v35  ;;  %v12374_v40 = vand.u32 4294901760, %v226_v44 }
 0x273   :  { %7156 = vmatprep.mubr.f32.mxu1 %v13107_v28  ;;  %7213 = vmatpush1.msra.mxu0 %v13185_v38  ;;  %v12381_v38 = vand.u32 4294901760, %v225_v21  ;;  %13191 = vst [vmem:[#allocation20_spill] sm:$0xff] %v12386_v43 }
 0x274   :  { %7160 = vmatmul.mubr.f32.vlgmr.msra.gmra.mxu1 %v13152_v39  ;;  %7217 = vmatprep.subr.mxu0 %v13187_v5  ;;  %13188 = vst [vmem:[#allocation18_spill] sm:$0xff] %v12374_v40  ;;  %v12390_v5 = vpop.f32.mrf.mxu1  ;;  %v12407_v17 = vsub.f32 %v226_v44, %v12374_v40  ;;  %v12422_v44 = vand.u32 4294901760, %v151_v26  ;;  %v12425_v39 = vsub.f32 %v201_v52, %v12386_v43 }
 0x275   :  { %7303 = vmatprep.subr.mxu1 %v12066_v32  ;;  %7221 = vmatpush1.msra.mxu0 %v13189_v27  ;;  %13190 = vst [vmem:[#allocation19_spill] sm:$0xff] %v12381_v38  ;;  %v175_v32 = vld [vmem:[#allocation5 + $0x3d0] sm:$0xff]  ;;  %v12398_v27 = vand.u32 4294901760, %v200_v33 }
 0x276   :  { %7305 = vmatpush1.msra.mxu1 %v12079_v7  ;;  %7225 = vmatprep.subr.mxu0 %v6897_v4  ;;  %v12396_v7 = vsub.f32 %v250_v22, %v12366_v2  ;;  %v13194_v4 = vand.u32 4294901760, %v12216_v63  ;;  %v12415_v22 = vsub.f32 %v225_v21, %v12381_v38  ;;  %v150_v63 = vld [vmem:[#allocation5 + $0x308] sm:$0xff]  ;;  %13199 = vst [vmem:[#allocation27_spill] sm:$0xff] %v12422_v44  ;;  %13200 = vst [vmem:[#allocation36_spill] sm:$0xff] %v12425_v39 }
 0x277   :  { %7307 = vmatprep.subr.mxu1 %v12087_v48  ;;  %7229 = vmatpush1.msra.mxu0 %v13192_v18  ;;  %13193 = vst [vmem:[#allocation21_spill] sm:$0xff] %v12398_v27  ;;  %v12409_v18 = vpop.f32.mrf.mxu0  ;;  %v12417_v48 = vand.u32 4294901760, %v175_v32  ;;  %v12433_v21 = vsub.f32 %v200_v33, %v12398_v27  ;;  %v12443_v52 = vand.u32 4294901760, %v150_v63  ;;  %v12447_v33 = vsub.f32 %v176_v49, %v12404_v53 }
 0x278   :  { %7309 = vmatpush1.msra.mxu1 %v12092_v46  ;;  %7233 = vmatprep.subr.mxu0 %v13194_v4  ;;  %v13196_v46 = vand.u32 4294901760, %v12221_v20  ;;  %v126_v4 = vld [vmem:[#allocation5 + $0x248] sm:$0xff]  ;;  %v12427_v20 = vpop.f32.mrf.mxu1 }
 0x279   :  { %7311 = vmatprep.subr.mxu1 %v12097_v12  ;;  %13197 = vst [vmem:[#allocation25_spill] sm:$0xff] %v12417_v48  ;;  %v13198_v12 = vand.u32 4294901760, %v12234_v19  ;;  %7278 = vmatprep.mubr.f32.mxu0 %v13107_v28  ;;  %v13202_v19 = vand.u32 4294901760, %v12369_v34  ;;  %13203 = vst [vmem:[#allocation37_spill] sm:$0xff] %v12447_v33  ;;  %v12449_v8 = vpop.f32.mrf.mxu0 }
 0x27a   :  { %7237 = vmatpush1.msra.mxu0 %v13196_v46  ;;  %7313 = vmatpush1.msra.mxu1 %v12105_v42  ;;  %v13201_v42 = vand.u32 4294901760, %v12238_v11  ;;  %v12451_v55 = vpop.f32.mrf.mxu1  ;;  %v100_v11 = vld [vmem:[#allocation5 + $0x178] sm:$0xff] }
 0x27b   :  { %7241 = vmatprep.subr.mxu0 %v13198_v12  ;;  %7315 = vmatprep.subr.mxu1 %v12111_v58  ;;  %v12438_v58 = vsub.f32 %v12369_v34, %v13202_v19  ;;  %v125_v12 = vld [vmem:[#allocation5 + $0x240] sm:$0xff]  ;;  %13204 = vst [vmem:[#allocation38_spill] sm:$0xff] %v12451_v55  ;;  %v12458_v19 = vand.u32 4294901760, %v126_v4  ;;  %v75_v55 = vld [vmem:[#allocation5 + $0xb0] sm:$0xff] }
 0x27c   :  { %7245 = vmatpush1.msra.mxu0 %v13201_v42  ;;  %7317 = vmatpush1.msra.mxu1 %v12122_v6  ;;  %v101_v42 = vld [vmem:[#allocation5 + $0x180] sm:$0xff]  ;;  %v12456_v6 = vsub.f32 %v175_v32, %v12417_v48  ;;  %v12463_v49 = vand.u32 4294901760, %v125_v12  ;;  %v12491_v0 = vpop.f32.mrf.mxu1  ;;  %v12512_v9 = vand.u32 4294901760, %v75_v55 }
 0x27d   :  { %7280 = vmatmul.mubr.f32.vlgmr.msra.gmra.mxu0 %v13130_v37  ;;  %7319 = vmatprep.subr.mxu1 %v12127_v10  ;;  %13205 = vst [vmem:[#allocation39_spill] sm:$0xff] %v12458_v19  ;;  %v12467_v10 = vsub.f32 %v151_v26, %v12422_v44  ;;  %v7486_v32 = vand.u32 4294901760, %v12438_v58  ;;  %v12483_v26 = vsub.f32 %v150_v63, %v12443_v52  ;;  %13208 = vst [vmem:[#allocation40_spill] sm:$0xff] %v12491_v0 }
 0x27e   :  { %7391 = vmatprep.subr.mxu0 %v12347_v41  ;;  %7321 = vmatpush1.msra.mxu1 %v12146_v25  ;;  %v12469_v41 = vpop.f32.mrf.mxu0  ;;  %v13206_v25 = vand.u32 4294901760, %v12396_v7  ;;  %v12498_v63 = vand.u32 4294901760, %v76_v16  ;;  %13212 = vst [vmem:[#allocation42_spill] sm:$0xff] %v12512_v9 }
 0x27f   :  { %7393 = vmatpush1.msra.mxu0 %v12366_v2  ;;  %7323 = vmatprep.subr.mxu1 %v12157_v47  ;;  %v12477_v2 = vand.u32 4294901760, %v101_v42  ;;  %v13207_v47 = vand.u32 4294901760, %v12407_v17 }
 0x280   :  { %7395 = vmatprep.subr.mxu0 %v12374_v40  ;;  %v7491_v46 = vsub.f32 %v12396_v7, %v13206_v25  ;;  %7325 = vmatpush1.msra.mxu1 %v12162_v51  ;;  %v12488_v40 = vand.u32 4294901760, %v100_v11  ;;  %v13209_v51 = vand.u32 4294901760, %v12415_v22  ;;  %13210 = vst [vmem:[#allocation41_spill] sm:$0xff] %v12498_v63  ;;  %v12507_v25 = vsub.f32 %v125_v12, %v12463_v49  ;;  %v12515_v0 = vpop.f32.mrf.mxu0 }
 0x281   :  { %7397 = vmatpush1.msra.mxu0 %v12381_v38  ;;  %v7497_v58 = vsub.f32 %v12407_v17, %v13207_v47  ;;  %7327 = vmatprep.subr.mxu1 %v12174_v50  ;;  %v12502_v47 = vsub.f32 %v126_v4, %v12458_v19  ;;  %v13211_v50 = vand.u32 4294901760, %v12425_v39  ;;  %v12517_v38 = vpop.f32.mrf.mxu1  ;;  %v13213_v4 = vand.u32 4294901760, %v12433_v21 }
 0x282   :  { %7399 = vmatprep.subr.mxu0 %v12386_v43  ;;  %v7503_v54 = vsub.f32 %v12415_v22, %v13209_v51  ;;  %7329 = vmatpush1.msra.mxu1 %v12185_v29  ;;  %v7492_v29 = vand.u32 4294901760, %v7491_v46  ;;  %v12530_v51 = vsub.f32 %v100_v11, %v12488_v40  ;;  %v12549_v46 = vsub.f32 %v75_v55, %v12512_v9 }
 0x283   :  { %7401 = vmatpush1.msra.mxu0 %v12398_v27  ;;  %v7509_v43 = vsub.f32 %v12425_v39, %v13211_v50  ;;  %7331 = vmatprep.subr.mxu1 %v12193_v59  ;;  %v7515_v12 = vsub.f32 %v12433_v21, %v13213_v4  ;;  %v12525_v27 = vsub.f32 %v101_v42, %v12477_v2  ;;  %v7498_v50 = vand.u32 4294901760, %v7497_v58  ;;  %v12536_v39 = vpop.f32.mrf.mxu0 }
 0x284   :  { %7403 = vmatprep.subr.mxu0 %v12404_v53  ;;  %7333 = vmatpush1.msra.mxu1 %v12207_v35  ;;  %v13214_v59 = vand.u32 4294901760, %v12447_v33  ;;  %v7504_v42 = vand.u32 4294901760, %v7503_v54  ;;  %v13215_v35 = vand.u32 4294901760, %v12456_v6  ;;  %v12545_v4 = vsub.f32 %v76_v16, %v12498_v63 }
 0x285   :  { %7366 = vmatprep.mubr.f32.mxu1 %v13107_v28  ;;  %7405 = vmatpush1.msra.mxu0 %v12417_v48  ;;  %v13216_v48 = vand.u32 4294901760, %v12467_v10  ;;  %v13217_v55 = vand.u32 4294901760, %v12483_v26  ;;  %v3087_v11 = vadd.f32 %v12298_v36, %v12286_v24 }
 0x286   :  { %v7521_v53 = vsub.f32 %v12447_v33, %v13214_v59  ;;  %7368 = vmatmul.mubr.f32.vlgmr.msra.gmra.mxu1 %v13130_v37  ;;  %v7527_v58 = vsub.f32 %v12456_v6, %v13215_v35  ;;  %7407 = vmatprep.subr.mxu0 %v12422_v44  ;;  %v7510_v59 = vand.u32 4294901760, %v7509_v43  ;;  %v13069_v37 = vand.u32 4294901760, %v12507_v25  ;;  %v4380_v33 = vpop.f32.mrf.mxu1 }
 0x287   :  { %7487 = vmatprep.subr.mxu1 %v7486_v32  ;;  %v7533_v54 = vsub.f32 %v12467_v10, %v13216_v48  ;;  %7409 = vmatpush1.msra.mxu0 %v12443_v52  ;;  %v7516_v35 = vand.u32 4294901760, %v7515_v12  ;;  %v7539_v32 = vsub.f32 %v12483_v26, %v13217_v55  ;;  %v4485_v48 = vpop.f32.mrf.mxu0  ;;  %v13218_v12 = vand.u32 4294901760, %v12502_v47 }
 0x288   :  { %7493 = vmatpush1.msra.mxu1 %v7492_v29  ;;  %7411 = vmatprep.subr.mxu0 %v12458_v19  ;;  %v7522_v43 = vand.u32 4294901760, %v7521_v53  ;;  %v12562_v44 = vpop.f32.mrf.mxu1  ;;  %v7528_v29 = vand.u32 4294901760, %v7527_v58  ;;  %v7551_v55 = vsub.f32 %v12507_v25, %v13069_v37 }
 0x289   :  { %7499 = vmatprep.subr.mxu1 %v7498_v50  ;;  %7413 = vmatpush1.msra.mxu0 %v12463_v49  ;;  %v7545_v16 = vsub.f32 %v12502_v47, %v13218_v12  ;;  %v7534_v53 = vand.u32 4294901760, %v7533_v54  ;;  %v12574_v19 = vpop.f32.mrf.mxu0  ;;  %v3734_v12 = vadd.f32 %v12376_v23, %v12352_v1  ;;  %v13220_v54 = vand.u32 4294901760, %v12530_v51  ;;  %v12588_v50 = vld [vmem:[#allocation7 + $0x8] sm:$0xff] }
 0x28a   :  { %7505 = vmatpush1.msra.mxu1 %v7504_v42  ;;  %7415 = vmatprep.subr.mxu0 %v12477_v2  ;;  %v13219_v42 = vand.u32 4294901760, %v12525_v27  ;;  %v13221_v1 = vand.u32 4294901760, %v12545_v4  ;;  %v7552_v24 = vand.u32 4294901760, %v7551_v55  ;;  %v13224_v55 = vld [vmem:[#allocation34_spill] sm:$0xff] }
 0x28b   :  { %7511 = vmatprep.subr.mxu1 %v7510_v59  ;;  %7417 = vmatpush1.msra.mxu0 %v12488_v40  ;;  %v7540_v59 = vand.u32 4294901760, %v7539_v32  ;;  %v7563_v37 = vsub.f32 %v12530_v51, %v13220_v54  ;;  %v7546_v23 = vand.u32 4294901760, %v7545_v16  ;;  %v13222_v32 = vld [vmem:[#allocation32_spill] sm:$0xff]  ;;  %v3192_v16 = vadd.f32 %v12304_v62, %v3087_v11 }
 0x28c   :  { %7517 = vmatpush1.msra.mxu1 %v7516_v35  ;;  %v7557_v58 = vsub.f32 %v12525_v27, %v13219_v42  ;;  %7419 = vmatprep.subr.mxu0 %v12498_v63  ;;  %v3732_v35 = vadd.f32 %v12354_v30, %v12334_v13  ;;  %v4575_v42 = vpop.f32.mrf.mxu1  ;;  %v8605_v54 = vrot.slane %v12588_v50, %v13222_v32  ;;  %v13223_v13 = vand.u32 4294901760, %v12549_v46 }
 0x28d   :  { %7523 = vmatprep.subr.mxu1 %v7522_v43  ;;  %7421 = vmatpush1.msra.mxu0 %v12512_v9  ;;  %v7569_v43 = vsub.f32 %v12545_v4, %v13221_v1  ;;  %v3839_v63 = vadd.f32 %v12388_v56, %v3734_v12  ;;  %v3085_v30 = vadd.f32 %v12288_v61, %v12280_v14  ;;  %v4695_v1 = vpop.f32.mrf.mxu0  ;;  %v7564_v14 = vand.u32 4294901760, %v7563_v37 }
 0x28e   :  { %7529 = vmatpush1.msra.mxu1 %v7528_v29  ;;  %7454 = vmatprep.mubr.f32.mxu0 %v13107_v28  ;;  %v7575_v36 = vsub.f32 %v12549_v46, %v13223_v13  ;;  %v3837_v29 = vadd.f32 %v12361_v45, %v3732_v35  ;;  %v4781_v9 = vpop.f32.mrf.mxu1  ;;  %v7558_v56 = vand.u32 4294901760, %v7557_v58  ;;  %v8613_v12 = vrot.slane %v12588_v50, %v13224_v55  ;;  %v13226_v35 = vld [vmem:[#allocation40_spill] sm:$0xff] }
 0x28f   :  { %7535 = vmatprep.subr.mxu1 %v7534_v53  ;;  %7636 = vmatprep.subr.mxu0 %v12369_v34  ;;  %v3929_v53 = vadd.f32 %v12427_v20, %v3839_v63  ;;  %v4381_v13 = vadd.f32 %v4380_v33, %v12515_v0  ;;  %v3190_v61 = vadd.f32 %v12292_v3, %v3085_v30  ;;  %v4873_v11 = vpop.f32.mrf.mxu0  ;;  %v7570_v20 = vand.u32 4294901760, %v7569_v43  ;;  %v13228_v43 = vld [vmem:[#allocation15_spill] sm:$0xff] }
 0x290   :  { %7460 = vmatmul.mubr.f32.vlgmr.msra.gmra.mxu0 %v9569_v15  ;;  %7541 = vmatpush1.msra.mxu1 %v7540_v59  ;;  %v3282_v62 = vadd.f32 %v12318_v31, %v3192_v16  ;;  %v3927_v45 = vadd.f32 %v12390_v5, %v3837_v29  ;;  %v4379_v0 = vadd.f32 %v12517_v38, %v12469_v41  ;;  %v7576_v37 = vand.u32 4294901760, %v7575_v36  ;;  %v4783_v58 = vpop.f32.mrf.mxu1  ;;  %v13225_v59 = vld [vmem:[#allocation36_spill] sm:$0xff]  ;;  %v13227_v38 = vld [vmem:[#allocation30_spill] sm:$0xff] }
 0x291   :  { %7639 = vmatpush1.msra.mxu0 %v12396_v7  ;;  %7547 = vmatprep.subr.mxu1 %v7546_v23  ;;  %v4049_v63 = vadd.f32 %v12449_v8, %v3929_v53  ;;  %v4486_v33 = vadd.f32 %v4485_v48, %v4381_v13  ;;  %v3280_v3 = vadd.f32 %v12306_v60, %v3190_v61  ;;  %v4875_v36 = vpop.f32.mrf.mxu0  ;;  %v13231_v16 = vld [vmem:[#allocation38_spill] sm:$0xff]  ;;  %v13233_v13 = vld [vmem:[#allocation33_spill] sm:$0xff] }
 0x292   :  { %7642 = vmatprep.subr.mxu0 %v12407_v17  ;;  %7553 = vmatpush1.msra.mxu1 %v7552_v24  ;;  %v3402_v31 = vadd.f32 %v12324_v57, %v3282_v62  ;;  %v4047_v5 = vadd.f32 %v12409_v18, %v3927_v45  ;;  %v4484_v23 = vadd.f32 %v12536_v39, %v4379_v0  ;;  %v13229_v24 = vld [vmem:[#allocation35_spill] sm:$0xff]  ;;  %v13230_v18 = vld [vmem:[#allocation37_spill] sm:$0xff]  ;;  %v5025_v30 = vpop.f32.mrf.mxu1  ;;  %v13235_v45 = vld [vmem:[#allocation12_spill] sm:$0xff] }
 0x293   :  { %7645 = vmatpush1.msra.mxu0 %v12415_v22  ;;  %7559 = vmatprep.subr.mxu1 %v7558_v56  ;;  %v4137_v8 = vadd.f32 %v13226_v35, %v4049_v63  ;;  %v4576_v41 = vadd.f32 %v4575_v42, %v4486_v33  ;;  %v3400_v48 = vadd.f32 %v13227_v38, %v3280_v3  ;;  %v13232_v56 = vld [vmem:[#allocation28_spill] sm:$0xff]  ;;  %v13234_v61 = vld [vmem:[#allocation29_spill] sm:$0xff]  ;;  %v13238_v35 = vld [vmem:[#allocation31_spill] sm:$0xff] }
 0x294   :  { %7648 = vmatprep.subr.mxu0 %v13225_v59  ;;  %7565 = vmatpush1.msra.mxu1 %v7564_v14  ;;  %v3490_v60 = vadd.f32 %v13228_v43, %v3402_v31  ;;  %v8609_v57 = vrot.slane %v12588_v50, %v13229_v24  ;;  %v4135_v29 = vadd.f32 %v13231_v16, %v4047_v5  ;;  %v13236_v0 = vld [vmem:[#allocation16_spill] sm:$0xff]  ;;  %v5027_v3 = vpop.f32.mrf.mxu1 }
 0x295   :  { %7651 = vmatpush1.msra.mxu0 %v12433_v21  ;;  %7571 = vmatprep.subr.mxu1 %v7570_v20  ;;  %v4574_v39 = vadd.f32 %v12562_v44, %v4484_v23  ;;  %v4696_v42 = vadd.f32 %v4695_v1, %v4576_v41  ;;  %v3488_v53 = vadd.f32 %v13232_v56, %v3400_v48  ;;  %v5130_v20 = vpop.f32.mrf.mxu0 }
 0x296   :  { %7654 = vmatprep.subr.mxu0 %v13230_v18  ;;  %7577 = vmatpush1.msra.mxu1 %v7576_v37  ;;  %v8601_v14 = vrot.slane %v12588_v50, %v13233_v13  ;;  %v8621_v62 = vrot.slane %v12588_v50, %v13234_v61  ;;  %v8702_v63 = vsub.f32 %v4137_v8, %v8613_v12  ;;  %v13237_v37 = vld [vmem:[#allocation17_spill] sm:$0xff]  ;;  %v13240_v8 = vld [vmem:[#allocation19_spill] sm:$0xff]  ;;  %v5220_v23 = vpop.f32.mrf.mxu1 }
 0x297   :  { %7610 = vmatprep.mubr.f32.mxu1 %v13107_v28  ;;  %7657 = vmatpush1.msra.mxu0 %v12456_v6  ;;  %v4694_v44 = vadd.f32 %v12574_v19, %v4574_v39  ;;  %v4784_v1 = vadd.f32 %v4783_v58, %v4696_v42  ;;  %v8700_v33 = vsub.f32 %v3490_v60, %v8605_v54  ;;  %v13239_v19 = vld [vmem:[#allocation18_spill] sm:$0xff]  ;;  %v5132_v54 = vpop.f32.mrf.mxu0  ;;  %v13242_v60 = vld [vmem:[#allocation21_spill] sm:$0xff]  ;;  %v13243_v42 = vld [vmem:[#allocation24_spill] sm:$0xff] }
 0x298   :  { %7612 = vmatmul.mubr.f32.vlgmr.msra.gmra.mxu1 %v13235_v45  ;;  %7660 = vmatprep.subr.mxu0 %v12467_v10  ;;  %v8701_v31 = vsub.f32 %v4135_v29, %v8609_v57  ;;  %v8617_v12 = vrot.slane %v12588_v50, %v13238_v35  ;;  %v8699_v58 = vsub.f32 %v3488_v53, %v8601_v14  ;;  %v8727_v41 = vmul.f32 -48.019997, %v8702_v63 }
 0x299   :  { %7740 = vmatprep.subr.mxu1 %v13236_v0  ;;  %7663 = vmatpush1.msra.mxu0 %v12483_v26  ;;  %v4782_v5 = vadd.f32 %v4781_v9, %v4694_v44  ;;  %v8704_v38 = vsub.f32 %v4784_v1, %v8621_v62  ;;  %v5026_v48 = vadd.f32 %v5025_v30, %v4873_v11  ;;  %v13241_v9 = vld [vmem:[#allocation20_spill] sm:$0xff]  ;;  %v8725_v43 = vmul.f32 -48.019997, %v8700_v33  ;;  %v5222_v11 = vpop.f32.mrf.mxu1  ;;  %v13244_v62 = vld [vmem:[#allocation25_spill] sm:$0xff] }
 0x29a   :  { %7742 = vmatpush1.msra.mxu1 %v13237_v37  ;;  %7666 = vmatprep.subr.mxu0 %v12502_v47  ;;  %v8726_v16 = vmul.f32 -48.019997, %v8701_v31  ;;  %v5028_v39 = vadd.f32 %v5027_v3, %v4875_v36  ;;  %v8724_v53 = vmul.f32 -48.019997, %v8699_v58  ;;  %v8752_v30 = vmul.f32 %v8727_v41, %v8702_v63  ;;  %v13245_v44 = vld [vmem:[#allocation13_spill] sm:$0xff]  ;;  %v13246_v3 = vld [vmem:[#allocation27_spill] sm:$0xff] }
 0x29b   :  { %7744 = vmatprep.subr.mxu1 %v13239_v19  ;;  %7669 = vmatpush1.msra.mxu0 %v12507_v25  ;;  %v5340_v57 = vpop.f32.mrf.mxu0  ;;  %v8703_v29 = vsub.f32 %v4782_v5, %v8617_v12  ;;  %v5131_v56 = vadd.f32 %v5130_v20, %v5026_v48  ;;  %v8729_v14 = vmul.f32 -48.019997, %v8704_v38  ;;  %v8750_v36 = vmul.f32 %v8725_v43, %v8700_v33  ;;  %v13248_v48 = vld [vmem:[#allocation23_spill] sm:$0xff] }
 0x29c   :  { %7746 = vmatpush1.msra.mxu1 %v13240_v8  ;;  %7672 = vmatprep.subr.mxu0 %v12525_v27  ;;  %v5133_v1 = vadd.f32 %v5132_v54, %v5028_v39  ;;  %v13247_v12 = vand.u32 4294901760, %v12369_v34  ;;  %v8625_v35 = vrot.slane %v12588_v50, %v13248_v48  ;;  %v8751_v61 = vmul.f32 %v8726_v16, %v8701_v31  ;;  %v13250_v33 = vld [vmem:[#allocation39_spill] sm:$0xff]  ;;  %v13252_v39 = vld [vmem:[#allocation22_spill] sm:$0xff] }
 0x29d   :  { %7748 = vmatprep.subr.mxu1 %v13241_v9  ;;  %7675 = vmatpush1.msra.mxu0 %v12530_v51  ;;  %v5221_v5 = vadd.f32 %v5220_v23, %v5131_v56  ;;  %v5342_v20 = vpop.f32.mrf.mxu0  ;;  %v8728_v13 = vmul.f32 -48.019997, %v8703_v29  ;;  %v13249_v63 = vand.u32 4294901760, %v12396_v7  ;;  %v8749_v23 = vmul.f32 %v8724_v53, %v8699_v58 }
 0x29e   :  { %7750 = vmatpush1.msra.mxu1 %v13242_v60  ;;  %7678 = vmatprep.subr.mxu0 %v12545_v4  ;;  %v5223_v41 = vadd.f32 %v5222_v11, %v5133_v1  ;;  %v13251_v43 = vand.u32 4294901760, %v12407_v17  ;;  %v8629_v56 = vrot.slane %v12588_v50, %v13252_v39  ;;  %v8754_v31 = vmul.f32 %v8729_v14, %v8704_v38  ;;  %v252_v38 = vld [vmem:[#allocation5 + $0x638] sm:$0xff] }
 0x29f   :  { %7752 = vmatprep.subr.mxu1 %v13243_v42  ;;  %7681 = vmatpush1.msra.mxu0 %v12549_v46  ;;  %v5341_v54 = vadd.f32 %v5340_v57, %v5221_v5  ;;  %v13253_v16 = vand.u32 4294901760, %v12415_v22  ;;  %v8784_v57 = vmul.f32 1.442695, %v8750_v36  ;;  %v13254_v58 = vand.u32 4294901760, %v13225_v59  ;;  %v13256_v5 = vld [vmem:[#allocation41_spill] sm:$0xff] }
 0x2a0   :  { %7714 = vmatprep.mubr.f32.mxu0 %v13107_v28  ;;  %7754 = vmatpush1.msra.mxu1 %v13244_v62  ;;  %v5343_v7 = vadd.f32 %v5342_v20, %v5223_v41  ;;  %v8786_v53 = vmul.f32 1.442695, %v8751_v61  ;;  %v8753_v1 = vmul.f32 %v8728_v13, %v8703_v29  ;;  %v13255_v50 = vand.u32 4294901760, %v12433_v21  ;;  %v13258_v20 = vld [vmem:[#allocation42_spill] sm:$0xff]  ;;  %v227_v13 = vld [vmem:[#allocation5 + $0x570] sm:$0xff] }
 0x2a1   :  { %7717 = vmatmul.mubr.f32.vlgmr.msra.gmra.mxu0 %v13245_v44  ;;  %7756 = vmatprep.subr.mxu1 %v13246_v3  ;;  %v8782_v14 = vmul.f32 1.442695, %v8749_v23  ;;  %v13257_v36 = vand.u32 4294901760, %v13230_v18  ;;  %v8792_v59 = vmul.f32 1.442695, %v8754_v31  ;;  %v13259_v21 = vand.u32 4294901760, %v12456_v6 }
 0x2a2   :  { %7832 = vmatprep.subr.mxu0 %v13247_v12  ;;  %7758 = vmatpush1.msra.mxu1 %v12443_v52  ;;  %v8788_v12 = vmul.f32 1.442695, %v8752_v30  ;;  %v8790_v18 = vmul.f32 1.442695, %v8753_v1  ;;  %v13261_v41 = vand.u32 4294901760, %v12467_v10  ;;  %v12706_v6 = vand.u32 4294901760, %v227_v13 }
 0x2a3   :  { %7836 = vmatpush1.msra.mxu0 %v13249_v63  ;;  %7760 = vmatprep.subr.mxu1 %v13250_v33  ;;  %v12698_v63 = vand.u32 4294901760, %v252_v38  ;;  %v177_v10 = vld [vmem:[#allocation5 + $0x3e0] sm:$0xff]  ;;  %v13264_v31 = vand.u32 4294901760, %v12507_v25 }
 0x2a4   :  { %7840 = vmatprep.subr.mxu0 %v13251_v43  ;;  %v5428_v34 = vpop.f32.mrf.mxu1  ;;  %7762 = vmatpush1.msra.mxu1 %v12463_v49  ;;  %9224 = vpow2.f32 %v8788_v12  ;;  %v12726_v25 = vsub.f32 %v227_v13, %v12706_v6 }
 0x2a5   :  { %7844 = vmatpush1.msra.mxu0 %v13253_v16  ;;  %v5429_v11 = vadd.f32 %v5428_v34, %v5341_v54  ;;  %7764 = vmatprep.subr.mxu1 %v12477_v2  ;;  %9226 = vpow2.f32 %v8784_v57  ;;  %v202_v54 = vld [vmem:[#allocation5 + $0x4a8] sm:$0xff]  ;;  %v13262_v34 = vand.u32 4294901760, %v12483_v26  ;;  %v12715_v26 = vsub.f32 %v252_v38, %v12698_v63 }
 0x2a6   :  { %7848 = vmatprep.subr.mxu0 %v13254_v58  ;;  %v5430_v17 = vpop.f32.mrf.mxu1  ;;  %7766 = vmatpush1.msra.mxu1 %v12488_v40  ;;  %9228 = vpow2.f32 %v8786_v53  ;;  %v13265_v16 = vand.u32 4294901760, %v12525_v27  ;;  %v127_v27 = vld [vmem:[#allocation5 + $0x250] sm:$0xff]  ;;  %v8130_v57 = vand.u32 4294901760, %v12726_v25  ;;  %v102_v58 = vld [vmem:[#allocation5 + $0x188] sm:$0xff]  ;;  %v77_v53 = vld [vmem:[#allocation5 + $0xc0] sm:$0xff] }
 0x2a7   :  { %7852 = vmatpush1.msra.mxu0 %v13255_v50  ;;  %v8705_v30 = vsub.f32 %v5429_v11, %v8625_v35  ;;  %v5431_v22 = vadd.f32 %v5430_v17, %v5343_v7  ;;  %7768 = vmatprep.subr.mxu1 %v13256_v5  ;;  %v13260_v35 = vld [vmem:[#allocation14_spill] sm:$0xff]  ;;  %9230 = vpow2.f32 %v8782_v14  ;;  %v152_v7 = vld [vmem:[#allocation5 + $0x318] sm:$0xff]  ;;  %v13267_v11 = vand.u32 4294901760, %v12545_v4 }
 0x2a8   :  { %7856 = vmatprep.subr.mxu0 %v13257_v36  ;;  %7770 = vmatpush1.msra.mxu1 %v13258_v20  ;;  %9232 = vpow2.f32 %v8792_v59  ;;  %v12742_v4 = vand.u32 4294901760, %v152_v7  ;;  %v12765_v50 = vand.u32 4294901760, %v102_v58  ;;  %v12778_v14 = vand.u32 4294901760, %v77_v53 }
 0x2a9   :  { %7803 = vmatprep.mubr.f32.mxu1 %v13107_v28  ;;  %v8730_v61 = vmul.f32 -48.019997, %v8705_v30  ;;  %v8706_v29 = vsub.f32 %v5431_v22, %v8629_v56  ;;  %7860 = vmatpush1.msra.mxu0 %v13259_v21  ;;  %v13263_v56 = vand.u32 4294901760, %v12502_v47  ;;  %9234 = vpow2.f32 %v8790_v18 }
 0x2aa   :  { %7807 = vmatmul.mubr.f32.vlgmr.msra.gmra.mxu1 %v13260_v35  ;;  %7864 = vmatprep.subr.mxu0 %v13261_v41 }
 0x2ab   :  { %7950 = vmatprep.subr.mxu1 %v13236_v0  ;;  %v8755_v23 = vmul.f32 %v8730_v61, %v8705_v30  ;;  %v8731_v43 = vmul.f32 -48.019997, %v8706_v29  ;;  %7868 = vmatpush1.msra.mxu0 %v13262_v34  ;;  %v8131_v30 = vsub.f32 %v12726_v25, %v8130_v57 }
 0x2ac   :  { %7952 = vmatpush1.msra.mxu1 %v13237_v37  ;;  %7872 = vmatprep.subr.mxu0 %v13263_v56  ;;  %v12717_v37 = vand.u32 4294901760, %v202_v54 }
 0x2ad   :  { %7954 = vmatprep.subr.mxu1 %v13239_v19  ;;  %v8794_v12 = vmul.f32 1.442695, %v8755_v23  ;;  %v8756_v0 = vmul.f32 %v8731_v43, %v8706_v29  ;;  %7876 = vmatpush1.msra.mxu0 %v13264_v31  ;;  %v13266_v19 = vand.u32 4294901760, %v12530_v51  ;;  %v13269_v43 = vld [vmem:[#allocation26_spill] sm:$0xff] }
 0x2ae   :  { %7956 = vmatpush1.msra.mxu1 %v13240_v8  ;;  %7880 = vmatprep.subr.mxu0 %v13265_v16  ;;  %v12728_v8 = vand.u32 4294901760, %v177_v10  ;;  %v12737_v51 = vsub.f32 %v202_v54, %v12717_v37  ;;  %v12800_v54 = vsub.f32 %v77_v53, %v12778_v14 }
 0x2af   :  { %7958 = vmatprep.subr.mxu1 %v13241_v9  ;;  %v8796_v47 = vmul.f32 1.442695, %v8756_v0  ;;  %7884 = vmatpush1.msra.mxu0 %v13266_v19  ;;  %9236 = vpow2.f32 %v8794_v12  ;;  %v13268_v9 = vand.u32 4294901760, %v12549_v46 }
 0x2b0   :  { %7960 = vmatpush1.msra.mxu1 %v13242_v60  ;;  %7888 = vmatprep.subr.mxu0 %v13267_v11  ;;  %v8123_v60 = vand.u32 4294901760, %v12715_v26  ;;  %v12747_v46 = vsub.f32 %v177_v10, %v12728_v8  ;;  %v8137_v17 = vand.u32 4294901760, %v12737_v51 }
 0x2b1   :  { %7962 = vmatprep.subr.mxu1 %v13243_v42  ;;  %9238 = vpow2.f32 %v8796_v47  ;;  %7892 = vmatpush1.msra.mxu0 %v13268_v9  ;;  %v12749_v42 = vand.u32 4294901760, %v127_v27 }
 0x2b2   :  { %7925 = vmatprep.mubr.f32.mxu0 %v13107_v28  ;;  %7964 = vmatpush1.msra.mxu1 %v13244_v62  ;;  %v9225_v62 = vpop.eup %9224  ;;  %v8138_v13 = vsub.f32 %v12737_v51, %v8137_v17 }
 0x2b3   :  { %7927 = vmatmul.mubr.f32.vlgmr.msra.gmra.mxu0 %v13235_v45  ;;  %7966 = vmatprep.subr.mxu1 %v13246_v3  ;;  %v8124_v3 = vsub.f32 %v12715_v26, %v8123_v60  ;;  %v9227_v1 = vpop.eup %9226  ;;  %v12770_v38 = vsub.f32 %v127_v27, %v12749_v42 }
 0x2b4   :  { %9085 = vmatprep.subr.mxu0 %v13107_v28  ;;  %7968 = vmatpush1.msra.mxu1 %v12443_v52  ;;  %v12763_v52 = vsub.f32 %v152_v7, %v12742_v4  ;;  %v8139_v10 = vand.u32 4294901760, %v8138_v13  ;;  %v8172_v7 = vand.u32 4294901760, %v12800_v54 }
 0x2b5   :  { %9086 = vmatpush3.msra.mxu0 %v12698_v63  ;;  %7970 = vmatprep.subr.mxu1 %v13250_v33  ;;  %v9229_v33 = vpop.eup %9228  ;;  %v8125_v59 = vand.u32 4294901760, %v8124_v3 }
 0x2b6   :  { %9087 = vmatprep.subr.mxu0 %v13107_v28  ;;  %7972 = vmatpush1.msra.mxu1 %v12463_v49  ;;  %v8144_v49 = vand.u32 4294901760, %v12747_v46  ;;  %v9231_v22 = vpop.eup %9230  ;;  %v8891_v36 = vcombine.low %v9229_v33, %v9225_v62  ;;  %v8151_v61 = vand.u32 4294901760, %v12763_v52 }
 0x2b7   :  { %9088 = vmatpush3.msra.mxu0 %v12706_v6  ;;  %7974 = vmatprep.subr.mxu1 %v12477_v2  ;;  %v9233_v2 = vpop.eup %9232  ;;  %v8890_v29 = vcombine.low %v9231_v22, %v9227_v1  ;;  %v8173_v1 = vsub.f32 %v12800_v54, %v8172_v7 }
 0x2b8   :  { %9089 = vmatprep.subr.mxu0 %v13107_v28  ;;  %7976 = vmatpush1.msra.mxu1 %v12488_v40  ;;  %v12788_v40 = vsub.f32 %v102_v58, %v12765_v50  ;;  %v9235_v21 = vpop.eup %9234  ;;  %v8145_v18 = vsub.f32 %v12747_v46, %v8144_v49  ;;  %v8907_v34 = vrot.slane %v8891_v36, %v13269_v43 }
 0x2b9   :  { %9090 = vmatpush3.msra.mxu0 %v12717_v37  ;;  %7978 = vmatprep.subr.mxu1 %v13256_v5  ;;  %v8132_v5 = vand.u32 4294901760, %v8131_v30  ;;  %v8892_v23 = vcombine.low %v9235_v21, %v9233_v2  ;;  %v8152_v12 = vsub.f32 %v12763_v52, %v8151_v61  ;;  %v8900_v16 = vrot.slane %v8890_v29, %v13269_v43 }
 0x2ba   :  { %9091 = vmatprep.subr.mxu0 %v13107_v28  ;;  %7980 = vmatpush1.msra.mxu1 %v13258_v20  ;;  %v8158_v20 = vand.u32 4294901760, %v12770_v38  ;;  %v8165_v0 = vand.u32 4294901760, %v12788_v40  ;;  %v8146_v47 = vand.u32 4294901760, %v8145_v18  ;;  %v8174_v2 = vand.u32 4294901760, %v8173_v1 }
 0x2bb   :  { %8013 = vmatprep.mubr.f32.mxu1 %v13107_v28  ;;  %9092 = vmatpush3.msra.mxu0 %v12728_v8  ;;  %v8914_v11 = vrot.slane %v8892_v23, %v13269_v43  ;;  %v8922_v9 = vcombine.low %v8900_v16, %v8907_v34  ;;  %v8153_v58 = vand.u32 4294901760, %v8152_v12 }
 0x2bc   :  { %8015 = vmatmul.mubr.f32.vlgmr.msra.gmra.mxu1 %v13235_v45  ;;  %v9237_v41 = vpop.eup %9236  ;;  %9093 = vmatprep.subr.mxu0 %v13107_v28  ;;  %v8159_v19 = vsub.f32 %v12770_v38, %v8158_v20  ;;  %v8166_v62 = vsub.f32 %v12788_v40, %v8165_v0 }
 0x2bd   :  { %9104 = vmatprep.subr.mxu1 %v13107_v28  ;;  %9094 = vmatpush3.msra.mxu0 %v12742_v4  ;;  %v8930_v33 = vrot.slane %v8922_v9, %v13269_v43  ;;  %v12926_v9 = vld [vmem:[#allocation7 + $0x10] sm:$0xff] }
 0x2be   :  { %v9239_v56 = vpop.eup %9238  ;;  %9105 = vmatpush3.msra.mxu1 %v8125_v59  ;;  %9095 = vmatprep.subr.mxu0 %v13107_v28  ;;  %v8160_v53 = vand.u32 4294901760, %v8159_v19  ;;  %v8167_v22 = vand.u32 4294901760, %v8166_v62 }
 0x2bf   :  { %9106 = vmatprep.subr.mxu1 %v13107_v28  ;;  %v8893_v31 = vcombine.low %v9237_v41, %v9239_v56  ;;  %9096 = vmatpush3.msra.mxu0 %v12749_v42 }
 0x2c0   :  { %9107 = vmatpush3.msra.mxu1 %v8132_v5  ;;  %9097 = vmatprep.subr.mxu0 %v13107_v28 }
 0x2c1   :  { %9108 = vmatprep.subr.mxu1 %v13107_v28  ;;  %v8921_v27 = vrot.slane %v8893_v31, %v13269_v43  ;;  %9098 = vmatpush3.msra.mxu0 %v12765_v50 }
 0x2c2   :  { %9109 = vmatpush3.msra.mxu1 %v8139_v10  ;;  %9099 = vmatprep.subr.mxu0 %v13107_v28 }
 0x2c3   :  { %9110 = vmatprep.subr.mxu1 %v13107_v28  ;;  %v8923_v3 = vcombine.low %v8914_v11, %v8921_v27  ;;  %9100 = vmatpush3.msra.mxu0 %v12778_v14 }
 0x2c4   :  { %9111 = vmatpush3.msra.mxu1 %v8146_v47  ;;  %9101 = vmatprep.mubr.msk.f32.mxu0 %vm9351_vm1, %v13107_v28 }
 0x2c5   :  { %9112 = vmatprep.subr.mxu1 %v13107_v28  ;;  %v8937_v30 = vrot.slane %v8923_v3, %v13269_v43  ;;  %9123 = vmatprep.subr.mxu0 %v13107_v28 }
 0x2c6   :  { %9102 = vmatmul.mubr.f32.vlgmr.msra.gmra.mxu0 %v9569_v15  ;;  %9113 = vmatpush3.msra.mxu1 %v8153_v58  ;;  %v5520_v15 = vpop.f32.mrf.mxu0 }
 0x2c7   :  { %9124 = vmatpush3.msra.mxu0 %v12715_v26  ;;  %v8938_v36 = vcombine.low %v8930_v33, %v8937_v30  ;;  %9114 = vmatprep.subr.mxu1 %v13107_v28  ;;  %v8645_v30 = vrot.slane %v12926_v9, %v13224_v55  ;;  %v13270_v55 = vld [vmem:[#allocation33_spill] sm:$0xff] }
 0x2c8   :  { %9125 = vmatprep.subr.mxu0 %v13107_v28  ;;  %9115 = vmatpush3.msra.mxu1 %v8160_v53 }
 0x2c9   :  { %9126 = vmatpush3.msra.mxu0 %v12726_v25  ;;  %9007 = vst [vmem:[#allocation8 + $0x8] sm:$0xff] %v8938_v36  ;;  %9116 = vmatprep.subr.mxu1 %v13107_v28 }
 0x2ca   :  { %9127 = vmatprep.subr.mxu0 %v13107_v28  ;;  %9117 = vmatpush3.msra.mxu1 %v8167_v22 }
 0x2cb   :  { %9128 = vmatpush3.msra.mxu0 %v12737_v51  ;;  %9118 = vmatprep.subr.mxu1 %v13107_v28 }
 0x2cc   :  { %9129 = vmatprep.subr.mxu0 %v13107_v28  ;;  %9119 = vmatpush3.msra.mxu1 %v8174_v2 }
 0x2cd   :  { %9120 = vmatprep.mubr.msk.f32.mxu1 %vm9351_vm1, %v13107_v28  ;;  %9130 = vmatpush3.msra.mxu0 %v12747_v46 }
 0x2ce   :  { %9121 = vmatmul.mubr.f32.vlgmr.msra.gmra.mxu1 %v13235_v45  ;;  %9131 = vmatprep.subr.mxu0 %v13107_v28 }
 0x2cf   :  { %9142 = vmatprep.subr.mxu1 %v13107_v28  ;;  %9132 = vmatpush3.msra.mxu0 %v12763_v52 }
 0x2d0   :  { %9143 = vmatpush3.msra.mxu1 %v12698_v63  ;;  %9133 = vmatprep.subr.mxu0 %v13107_v28 }
 0x2d1   :  { %9144 = vmatprep.subr.mxu1 %v13107_v28  ;;  %9134 = vmatpush3.msra.mxu0 %v12770_v38 }
 0x2d2   :  { %9145 = vmatpush3.msra.mxu1 %v12706_v6  ;;  %9135 = vmatprep.subr.mxu0 %v13107_v28 }
 0x2d3   :  { %9146 = vmatprep.subr.mxu1 %v13107_v28  ;;  %9136 = vmatpush3.msra.mxu0 %v12788_v40 }
 0x2d4   :  { %9147 = vmatpush3.msra.mxu1 %v12717_v37  ;;  %9137 = vmatprep.subr.mxu0 %v13107_v28 }
 0x2d5   :  { %9148 = vmatprep.subr.mxu1 %v13107_v28  ;;  %9138 = vmatpush3.msra.mxu0 %v12800_v54 }
 0x2d6   :  { %9139 = vmatprep.mubr.msk.f32.mxu0 %vm9351_vm1, %v13107_v28  ;;  %9149 = vmatpush3.msra.mxu1 %v12728_v8 }
 0x2d7   :  { %9140 = vmatmul.mubr.f32.vlgmr.msra.gmra.mxu0 %v13245_v44  ;;  %9150 = vmatprep.subr.mxu1 %v13107_v28  ;;  %v5522_v44 = vpop.f32.mrf.mxu0 }
 0x2d8   :  { %9161 = vmatprep.subr.mxu0 %v13107_v28  ;;  %9151 = vmatpush3.msra.mxu1 %v12742_v4 }
 0x2d9   :  { %9162 = vmatpush3.msra.mxu0 %v8123_v60  ;;  %9152 = vmatprep.subr.mxu1 %v13107_v28 }
 0x2da   :  { %9163 = vmatprep.subr.mxu0 %v13107_v28  ;;  %9153 = vmatpush3.msra.mxu1 %v12749_v42 }
 0x2db   :  { %9164 = vmatpush3.msra.mxu0 %v8130_v57  ;;  %9154 = vmatprep.subr.mxu1 %v13107_v28 }
 0x2dc   :  { %9165 = vmatprep.subr.mxu0 %v13107_v28  ;;  %9155 = vmatpush3.msra.mxu1 %v12765_v50 }
 0x2dd   :  { %9166 = vmatpush3.msra.mxu0 %v8137_v17  ;;  %9156 = vmatprep.subr.mxu1 %v13107_v28 }
 0x2de   :  { %9167 = vmatprep.subr.mxu0 %v13107_v28  ;;  %9157 = vmatpush3.msra.mxu1 %v12778_v14 }
 0x2df   :  { %9158 = vmatprep.mubr.msk.f32.mxu1 %vm9351_vm1, %v13107_v28  ;;  %9168 = vmatpush3.msra.mxu0 %v8144_v49 }
 0x2e0   :  { %9159 = vmatmul.mubr.f32.vlgmr.msra.gmra.mxu1 %v13260_v35  ;;  %9169 = vmatprep.subr.mxu0 %v13107_v28  ;;  %v5672_v35 = vpop.f32.mrf.mxu1 }
 0x2e1   :  { %9180 = vmatprep.subr.mxu1 %v13107_v28  ;;  %9170 = vmatpush3.msra.mxu0 %v8151_v61  ;;  %v5673_v10 = vadd.f32 %v5672_v35, %v5520_v15 }
 0x2e2   :  { %9181 = vmatpush3.msra.mxu1 %v12698_v63  ;;  %9171 = vmatprep.subr.mxu0 %v13107_v28  ;;  %v5777_v63 = vpop.f32.mrf.mxu0 }
 0x2e3   :  { %9182 = vmatprep.subr.mxu1 %v13107_v28  ;;  %9172 = vmatpush3.msra.mxu0 %v8158_v20 }
 0x2e4   :  { %9183 = vmatpush3.msra.mxu1 %v12706_v6  ;;  %9173 = vmatprep.subr.mxu0 %v13107_v28  ;;  %v5674_v6 = vpop.f32.mrf.mxu1  ;;  %v5779_v26 = vpop.f32.mrf.mxu0 }
 0x2e5   :  { %9184 = vmatprep.subr.mxu1 %v13107_v28  ;;  %9174 = vmatpush3.msra.mxu0 %v8165_v0  ;;  %v5675_v54 = vadd.f32 %v5674_v6, %v5522_v44  ;;  %v8637_v6 = vrot.slane %v12926_v9, %v13222_v32 }
 0x2e6   :  { %9185 = vmatpush3.msra.mxu1 %v12717_v37  ;;  %9175 = vmatprep.subr.mxu0 %v13107_v28  ;;  %v5867_v37 = vpop.f32.mrf.mxu1  ;;  %v5987_v25 = vpop.f32.mrf.mxu0 }
 0x2e7   :  { %9186 = vmatprep.subr.mxu1 %v13107_v28  ;;  %9176 = vmatpush3.msra.mxu0 %v8172_v7  ;;  %v5780_v12 = vadd.f32 %v5779_v26, %v5675_v54  ;;  %v5778_v7 = vadd.f32 %v5777_v63, %v5673_v10 }
 0x2e8   :  { %9177 = vmatprep.mubr.msk.f32.mxu0 %vm9351_vm1, %v13107_v28  ;;  %9187 = vmatpush3.msra.mxu1 %v12728_v8  ;;  %v5869_v8 = vpop.f32.mrf.mxu1  ;;  %v5989_v51 = vpop.f32.mrf.mxu0 }
 0x2e9   :  { %9178 = vmatmul.mubr.f32.vlgmr.msra.gmra.mxu0 %v13235_v45  ;;  %9188 = vmatprep.subr.mxu1 %v13107_v28  ;;  %v5870_v11 = vadd.f32 %v5869_v8, %v5780_v12  ;;  %v5868_v1 = vadd.f32 %v5867_v37, %v5778_v7  ;;  %v8641_v37 = vrot.slane %v12926_v9, %v13229_v24 }
 0x2ea   :  { %9196 = vmatprep.mubr.msk.f32.mxu1 %vm9351_vm1, %v13107_v28  ;;  %9189 = vmatpush3.msra.mxu1 %v12742_v4  ;;  %v6075_v60 = vpop.f32.mrf.mxu1  ;;  %v6167_v4 = vpop.f32.mrf.mxu0 }
 0x2eb   :  { %9190 = vmatprep.subr.mxu1 %v13107_v28  ;;  %v5990_v33 = vadd.f32 %v5989_v51, %v5870_v11  ;;  %v5988_v35 = vadd.f32 %v5987_v25, %v5868_v1 }
 0x2ec   :  { %9191 = vmatpush3.msra.mxu1 %v12749_v42  ;;  %v6077_v46 = vpop.f32.mrf.mxu1  ;;  %v6169_v42 = vpop.f32.mrf.mxu0 }
 0x2ed   :  { %9192 = vmatprep.subr.mxu1 %v13107_v28  ;;  %v6078_v63 = vadd.f32 %v6077_v46, %v5990_v33  ;;  %v13271_v46 = vld [vmem:[#allocation29_spill] sm:$0xff] }
 0x2ee   :  { %9193 = vmatpush3.msra.mxu1 %v12765_v50  ;;  %v6319_v57 = vpop.f32.mrf.mxu1 }
 0x2ef   :  { %9194 = vmatprep.subr.mxu1 %v13107_v28  ;;  %v6320_v34 = vadd.f32 %v6319_v57, %v6167_v4  ;;  %v6076_v57 = vadd.f32 %v6075_v60, %v5988_v35  ;;  %v8708_v32 = vsub.f32 %v6078_v63, %v8637_v6 }
 0x2f0   :  { %9195 = vmatpush3.msra.mxu1 %v12778_v14  ;;  %v6321_v17 = vpop.f32.mrf.mxu1 }
 0x2f1   :  { %9197 = vmatmul.mubr.f32.vlgmr.msra.gmra.mxu1 %v13235_v45  ;;  %v6322_v41 = vadd.f32 %v6321_v17, %v6169_v42 }
 0x2f5   :  { %v6424_v28 = vpop.f32.mrf.mxu0 }
 0x2f6   :  { %v6425_v16 = vadd.f32 %v6424_v28, %v6320_v34  ;;  %v8633_v28 = vrot.slane %v12926_v9, %v13270_v55 }
 0x2f7   :  { %v6426_v52 = vpop.f32.mrf.mxu0 }
 0x2f8   :  { %v6427_v56 = vadd.f32 %v6426_v52, %v6322_v41 }
 0x2fe   :  { %v6514_v50 = vpop.f32.mrf.mxu1 }
 0x2ff   :  { %v6515_v58 = vadd.f32 %v6514_v50, %v6425_v16 }
 0x300   :  { %v6516_v38 = vpop.f32.mrf.mxu1 }
 0x301   :  { %v6517_v47 = vadd.f32 %v6516_v38, %v6427_v56 }
 0x307   :  { %v6634_v45 = vpop.f32.mrf.mxu0 }
 0x308   :  { %v6635_v36 = vadd.f32 %v6634_v45, %v6515_v58  ;;  %v8653_v45 = vrot.slane %v12926_v9, %v13271_v46 }
 0x309   :  { %v6636_v49 = vpop.f32.mrf.mxu0 }
 0x30a   :  { %v6637_v62 = vadd.f32 %v6636_v49, %v6517_v47 }
 0x310   :  { %v6722_v14 = vpop.f32.mrf.mxu1 }
 0x311   :  { %v6723_v4 = vadd.f32 %v6722_v14, %v6635_v36 }
 0x312   :  { %v6724_v13 = vpop.f32.mrf.mxu1 }
 0x313   :  { %v6725_v2 = vadd.f32 %v6724_v13, %v6637_v62  ;;  %v8709_v49 = vsub.f32 %v6723_v4, %v8641_v37  ;;  %v8707_v13 = vsub.f32 %v6076_v57, %v8633_v28 }
 0x315   :  { %v8710_v52 = vsub.f32 %v6725_v2, %v8645_v30  ;;  %v8732_v34 = vmul.f32 -48.019997, %v8707_v13 }
 0x317   :  { %v8757_v62 = vmul.f32 %v8732_v34, %v8707_v13 }
 0x31a   :  { %v6814_v59 = vpop.f32.mrf.mxu0 }
 0x31c   :  { %v6816_v40 = vpop.f32.mrf.mxu0 }
 0x322   :  { %v6966_v61 = vpop.f32.mrf.mxu1 }
 0x323   :  { %v6967_v3 = vadd.f32 %v6966_v61, %v6814_v59  ;;  %v13272_v59 = vld [vmem:[#allocation31_spill] sm:$0xff]  ;;  %v8735_v61 = vmul.f32 -48.019997, %v8710_v52 }
 0x324   :  { %v6968_v21 = vpop.f32.mrf.mxu1  ;;  %v8649_v24 = vrot.slane %v12926_v9, %v13272_v59 }
 0x325   :  { %v6969_v19 = vadd.f32 %v6968_v21, %v6816_v40  ;;  %v8760_v10 = vmul.f32 %v8735_v61, %v8710_v52 }
 0x327   :  { %v8804_v1 = vmul.f32 1.442695, %v8760_v10 }
 0x329   :  { %9240 = vpow2.f32 %v8804_v1 }
 0x32b   :  { %v7071_v29 = vpop.f32.mrf.mxu0 }
 0x32c   :  { %v7072_v15 = vadd.f32 %v7071_v29, %v6967_v3 }
 0x32d   :  { %v7073_v5 = vpop.f32.mrf.mxu0 }
 0x32e   :  { %v7074_v53 = vadd.f32 %v7073_v5, %v6969_v19  ;;  %v8733_v5 = vmul.f32 -48.019997, %v8708_v32  ;;  %v8657_v19 = vrot.slane %v12926_v9, %v13248_v48  ;;  %v8798_v48 = vmul.f32 1.442695, %v8757_v62 }
 0x330   :  { %v8758_v16 = vmul.f32 %v8733_v5, %v8708_v32 }
 0x332   :  { %v8800_v36 = vmul.f32 1.442695, %v8758_v16 }
 0x334   :  { %v7161_v18 = vpop.f32.mrf.mxu1  ;;  %9242 = vpow2.f32 %v8800_v36 }
 0x335   :  { %v7162_v51 = vadd.f32 %v7161_v18, %v7072_v15 }
 0x336   :  { %v7163_v23 = vpop.f32.mrf.mxu1  ;;  %v9241_v28 = vpop.eup %9240 }
 0x337   :  { %v7164_v44 = vadd.f32 %v7163_v23, %v7074_v53  ;;  %v8661_v53 = vrot.slane %v12926_v9, %v13252_v39 }
 0x33d   :  { %v7281_v20 = vpop.f32.mrf.mxu0 }
 0x33e   :  { %v7282_v50 = vadd.f32 %v7281_v20, %v7162_v51  ;;  %v8734_v20 = vmul.f32 -48.019997, %v8709_v49 }
 0x33f   :  { %v7283_v0 = vpop.f32.mrf.mxu0 }
 0x340   :  { %v7284_v42 = vadd.f32 %v7283_v0, %v7164_v44  ;;  %v8759_v7 = vmul.f32 %v8734_v20, %v8709_v49 }
 0x341   :  { %v9243_v52 = vpop.eup %9242 }
 0x342   :  { %v8802_v15 = vmul.f32 1.442695, %v8759_v7  ;;  %v9030_v7 = vld [vmem:[#allocation7 + $0x18] ss:$0 sm:$0xff] }
 0x344   :  { %9244 = vpow2.f32 %v8802_v15 }
 0x345   :  { %9246 = vpow2.f32 %v8798_v48 }
 0x346   :  { %v7369_v31 = vpop.f32.mrf.mxu1 }
 0x347   :  { %v7370_v14 = vadd.f32 %v7369_v31, %v7282_v50 }
 0x348   :  { %v7371_v22 = vpop.f32.mrf.mxu1 }
 0x349   :  { %v7372_v25 = vadd.f32 %v7371_v22, %v7284_v42  ;;  %v8711_v41 = vsub.f32 %v7370_v14, %v8649_v24 }
 0x34b   :  { %v8712_v29 = vsub.f32 %v7372_v25, %v8653_v45  ;;  %v8736_v11 = vmul.f32 -48.019997, %v8711_v41 }
 0x34d   :  { %v8737_v12 = vmul.f32 -48.019997, %v8712_v29  ;;  %v8761_v44 = vmul.f32 %v8736_v11, %v8711_v41 }
 0x34f   :  { %v8762_v33 = vmul.f32 %v8737_v12, %v8712_v29  ;;  %v8806_v4 = vmul.f32 1.442695, %v8761_v44 }
 0x350   :  { %v7461_v27 = vpop.f32.mrf.mxu0 }
 0x351   :  { %v8808_v6 = vmul.f32 1.442695, %v8762_v33  ;;  %v9245_v50 = vpop.eup %9244 }
 0x352   :  { %v7463_v26 = vpop.f32.mrf.mxu0  ;;  %v9247_v46 = vpop.eup %9246  ;;  %v8940_v45 = vcombine.low %v9245_v50, %v9241_v28 }
 0x353   :  { %9248 = vpow2.f32 %v8808_v6 }
 0x354   :  { %9250 = vpow2.f32 %v8806_v4  ;;  %v8956_v24 = vrot.slane %v8940_v45, %v13269_v43 }
 0x358   :  { %v7613_v8 = vpop.f32.mrf.mxu1 }
 0x359   :  { %v7614_v21 = vadd.f32 %v7613_v8, %v7461_v27 }
 0x35a   :  { %v7615_v38 = vpop.f32.mrf.mxu1 }
 0x35b   :  { %v7616_v54 = vadd.f32 %v7615_v38, %v7463_v26  ;;  %v8939_v38 = vcombine.low %v9247_v46, %v9243_v52 }
 0x35d   :  { %v8949_v61 = vrot.slane %v8939_v38, %v13269_v43 }
 0x360   :  { %v9249_v32 = vpop.eup %9248 }
 0x361   :  { %v7718_v17 = vpop.f32.mrf.mxu0  ;;  %v9251_v49 = vpop.eup %9250 }
 0x362   :  { %v7719_v23 = vadd.f32 %v7718_v17, %v7614_v21  ;;  %v8941_v59 = vcombine.low %v9251_v49, %v9249_v32 }
 0x363   :  { %v7720_v40 = vpop.f32.mrf.mxu0 }
 0x364   :  { %v7721_v0 = vadd.f32 %v7720_v40, %v7616_v54  ;;  %v8963_v21 = vrot.slane %v8941_v59, %v13269_v43 }
 0x36a   :  { %v7808_v60 = vpop.f32.mrf.mxu1 }
 0x36b   :  { %v7809_v31 = vadd.f32 %v7808_v60, %v7719_v23 }
 0x36c   :  { %v7810_v56 = vpop.f32.mrf.mxu1 }
 0x36d   :  { %v7811_v27 = vadd.f32 %v7810_v56, %v7721_v0 }
 0x373   :  { %v7928_v18 = vpop.f32.mrf.mxu0 }
 0x374   :  { %v7929_v58 = vadd.f32 %v7928_v18, %v7809_v31  ;;  %v8971_v18 = vcombine.low %v8949_v61, %v8956_v24 }
 0x375   :  { %v7930_v47 = vpop.f32.mrf.mxu0 }
 0x376   :  { %v7931_v30 = vadd.f32 %v7930_v47, %v7811_v27  ;;  %v8979_v41 = vrot.slane %v8971_v18, %v13269_v43 }
 0x37c   :  { %v8016_v3 = vpop.f32.mrf.mxu1 }
 0x37d   :  { %v8017_v22 = vadd.f32 %v8016_v3, %v7929_v58 }
 0x37e   :  { %v8018_v2 = vpop.f32.mrf.mxu1 }
 0x37f   :  { %v8713_v35 = vsub.f32 %v8017_v22, %v8657_v19  ;;  %v8019_v63 = vadd.f32 %v8018_v2, %v7931_v30  ;;  %v13273_v30 = vlaneseq }
 0x381   :  { %v8738_v26 = vmul.f32 -48.019997, %v8713_v35  ;;  %v8714_v8 = vsub.f32 %v8019_v63, %v8661_v53  ;;  %vm9011_vm2 = vcmp.lt.s32.totalorder %v13273_v30, 128 }
 0x383   :  { %v8763_v37 = vmul.f32 %v8738_v26, %v8713_v35  ;;  %v8739_v39 = vmul.f32 -48.019997, %v8714_v8 }
 0x385   :  { %v8810_v9 = vmul.f32 1.442695, %v8763_v37  ;;  %v8764_v51 = vmul.f32 %v8739_v39, %v8714_v8 }
 0x386   :  { %v8100_v42 = vpop.f32.mrf.mxu0 }
 0x387   :  { %v8812_v57 = vmul.f32 1.442695, %v8764_v51  ;;  %9252 = vpow2.f32 %v8810_v9 }
 0x388   :  { %v9103_v55 = vpop.f32.mrf.mxu0 }
 0x389   :  { %9254 = vpow2.f32 %v8812_v57 }
 0x38e   :  { %v8211_v17 = vpop.f32.mrf.mxu1 }
 0x38f   :  { %v8212_v12 = vadd.f32 %v8211_v17, %v8100_v42 }
 0x390   :  { %v9122_v25 = vpop.f32.mrf.mxu1 }
 0x394   :  { %v9253_v14 = vpop.eup %9252 }
 0x396   :  { %v9255_v13 = vpop.eup %9254 }
 0x397   :  { %v8299_v40 = vpop.f32.mrf.mxu0  ;;  %v8942_v60 = vcombine.low %v9253_v14, %v9255_v13 }
 0x398   :  { %v8300_v31 = vadd.f32 %v8299_v40, %v8212_v12 }
 0x399   :  { %v9141_v29 = vpop.f32.mrf.mxu0  ;;  %v8970_v5 = vrot.slane %v8942_v60, %v13269_v43 }
 0x39b   :  { %v8972_v20 = vcombine.low %v8963_v21, %v8970_v5 }
 0x39d   :  { %v8986_v54 = vrot.slane %v8972_v20, %v13269_v43 }
 0x39f   :  { %v8987_v23 = vcombine.low %v8979_v41, %v8986_v54 }
 0x3a0   :  { %v8380_v34 = vpop.f32.mrf.mxu1 }
 0x3a1   :  { %9008 = vst [vmem:[#allocation8 + $0x10] sm:$0xff] %v8987_v23  ;;  %v8381_v16 = vadd.f32 %v8380_v34, %v8300_v31 }
 0x3a2   :  { %v9160_v56 = vpop.f32.mrf.mxu1 }
 0x3a9   :  { %v8475_v10 = vpop.f32.mrf.mxu0 }
 0x3aa   :  { %v8476_v47 = vadd.f32 %v8475_v10, %v8381_v16 }
 0x3ab   :  { %v9179_v0 = vpop.f32.mrf.mxu0 }
 0x3b1   :  { %v8554_v19 = vpop.f32.mrf.mxu1 }
 0x3b2   :  { %v8555_v11 = vadd.f32 %v8554_v19, %v8476_v47 }
 0x3b3   :  { %v9198_v27 = vpop.f32.mrf.mxu1 }
 0x3b4   :  { %v8715_v58 = vsub.f32 %v8555_v11, %v9030_v7 }
 0x3b6   :  { %v8740_v62 = vmul.f32 -48.019997, %v8715_v58 }
 0x3b8   :  { %v8765_v3 = vmul.f32 %v8740_v62, %v8715_v58 }
 0x3ba   :  { %v8814_v53 = vmul.f32 1.442695, %v8765_v3 }
 0x3bc   :  { %9256 = vpow2.f32 %v8814_v53 }
 0x3c9   :  { %v9257_v1 = vpop.eup %9256 }
 0x3ca   :  { %v8994_v33 = vrot.slane %v9257_v1, %v13269_v43 }
 0x3cc   :  { %v9001_v22 = vrot.slane %v8994_v33, %v13269_v43 }
 0x3ce   :  { %9013 = vst.msk [vmem:[#allocation8 + $0x18] sm:$0x1] %vm9011_vm2, %v9001_v22 }
 0x3cf   :  { %9329 = shalt.err (!%p9326_p5)
}
 0x3d0   :  { %9023 = dma.vmem_to_hbm [thread:$0]  %s9021_s2, 400, %s12959_s3, [#allocation4]  }
 0x3d1   :  { %9342 = dma.done.wait [#allocation4], 400  }
 0x3d2   :  { %9343 = vsyncadd [#allocation4], 4294966896 }
 0x3d3   :  { %9027 = vsyncpa [#allocation3], 1 }
 0x3d4   :  { %9028 = vsyncpa [#allocation6], 1 }
 0x3d5   :  { %9029 = vsyncpa [#allocation4], 1 }

</bundles_post_ra>
